<compile_context>
chip_gen: v6e
topology: v6e:2x2x1
jax: 0.10.0
libtpu: 0.0.40
codegen_flags: <defaults>
</compile_context>

<pallas_src>
import functools

import jax
import jax.numpy as jnp
from jax import lax
from jax.experimental import pallas as pl
from jax.experimental.pallas import tpu as pltpu

OUT_W = 128  # lane-dense packed head output width


# ----------------------------------------------------------------------------
# The single fused Pallas kernel (one grid step per batch *block*)
# ----------------------------------------------------------------------------
def _transt_kernel(tok_s_ref, tok_t_ref, qb_ref, kvb_ref,
                   w_bb_ref, b_bb_ref, w_proj_ref, b_proj_ref,
                   w_q_ref, w_kv_ref, w_o_ref, b_o_ref,
                   w_h1_ref, b_h1_ref, w_h2_ref, b_h2_ref, w_h3_ref, b_h3_ref,
                   out_ref, attn_ref, *, num_heads, n_cls_out, d_model):
    f32, bf16 = jnp.float32, jnp.bfloat16
    Bt, Ls, Cin = tok_s_ref.shape
    _, Lt, _ = tok_t_ref.shape
    Ms, Mt = Bt * Ls, Bt * Lt
    D = d_model
    dh = D // num_heads

    def mm(x_bf16, w_ref):
        # bf16 MXU inputs, f32 accumulation.
        return jnp.dot(x_bf16, w_ref[...], preferred_element_type=f32)

    # --- shared backbone stand-in (patch-embed 1x1 conv + ReLU) + input_proj;
    #     search and template streams fused into one matmul pair --------------
    tok_all = jnp.concatenate(
        [tok_s_ref[...].reshape(Ms, Cin), tok_t_ref[...].reshape(Mt, Cin)],
        axis=0).astype(bf16)                                    # [Ms+Mt, Cin]
    feat = jnp.maximum(mm(tok_all, w_bb_ref) + b_bb_ref[...], 0.0)
    src = mm(feat.astype(bf16), w_proj_ref) + b_proj_ref[...]   # [Ms+Mt, D] f32
    src_s = src[:Ms]                                            # [Ms, D]
    src_t_bf = src[Ms:].astype(bf16)                            # [Mt, D]

    # --- Q (pos-projection + score scale folded into weight/bias) and fused K|V
    q = mm(src_s.astype(bf16), w_q_ref) + qb_ref[...]           # [Ms, D]
    kv = mm(src_t_bf, w_kv_ref) + kvb_ref[...]                  # [Mt, 2D]

    q3 = q.reshape(Bt, Ls, D).astype(bf16)
    k3 = kv[:, :D].reshape(Bt, Lt, D).astype(bf16)
    v3 = kv[:, D:].reshape(Bt, Lt, D).astype(bf16)

    # --- multi-head cross attention: Bt-batched dot_generals per head;
    #     head outputs written into a VMEM slab (no concatenate) -------------
    for h in range(num_heads):  # unrolled at trace time
        sl = slice(h * dh, (h + 1) * dh)
        s = lax.dot_general(q3[:, :, sl], k3[:, :, sl],
                            (((2,), (2,)), ((0,), (0,))),
                            preferred_element_type=f32)         # [Bt, Ls, Lt]
        s = s - jnp.max(s, axis=-1, keepdims=True)
        p = jnp.exp(s)
        p = p * pl.reciprocal(jnp.sum(p, axis=-1, keepdims=True))
        o = lax.dot_general(p.astype(bf16), v3[:, :, sl],
                            (((2,), (1,)), ((0,), (0,))),
                            preferred_element_type=f32)         # [Bt, Ls, dh]
        attn_ref[:, h * dh:(h + 1) * dh] = o.reshape(Ms, dh)

    # --- out-projection + residual connection (search stream) ---------------
    hs = src_s + mm(attn_ref[...].astype(bf16), w_o_ref) + b_o_ref[...]

    # --- fused cls + bbox 3-layer MLP heads (block-diag packed weights,
    #     final layer lane-padded to OUT_W=128 -> unmasked lane-dense store) --
    h1 = jnp.maximum(mm(hs.astype(bf16), w_h1_ref) + b_h1_ref[...], 0.0)
    h2 = jnp.maximum(mm(h1.astype(bf16), w_h2_ref) + b_h2_ref[...], 0.0)
    raw = mm(h2.astype(bf16), w_h3_ref) + b_h3_ref[...]         # [Ms, OUT_W]
    col = lax.broadcasted_iota(jnp.int32, raw.shape, 1)
    packed = jnp.where(col < n_cls_out, raw, jax.nn.sigmoid(raw))
    out_ref[...] = packed.reshape(Bt, Ls, raw.shape[-1]).astype(out_ref.dtype)


# ----------------------------------------------------------------------------
# Plain-JAX glue (tokenization, positional embedding, weight packing)
# ----------------------------------------------------------------------------
def _tokenize(img_nchw, stride):
    # TODO(synk): the real ResNet backbone is an external module; stand-in =
    # stride x stride mean-pool + 1x1 conv whose reduction and matmul both run
    # inside the fused kernel (patch pixels are lane-packed into the channel dim).
    B, C, H, W = img_nchw.shape
    hf, wf = H // stride, W // stride
    x = img_nchw.reshape(B, C, hf, stride, wf, stride)
    x = x.transpose(0, 2, 4, 1, 3, 5).reshape(B, hf * wf, C * stride * stride)
    return x.astype(jnp.float32), hf, wf


def _sine_pos_embed(hf, wf, d):
    """DETR-style fixed 2D sine positional embedding, shared across the batch: [Hf*Wf, d]."""
    assert d % 4 == 0
    half = d // 2
    yy, xx = jnp.meshgrid(jnp.arange(hf, dtype=jnp.float32),
                          jnp.arange(wf, dtype=jnp.float32), indexing="ij")
    dim_t = 10000.0 ** (2.0 * jnp.arange(half // 2, dtype=jnp.float32) / half)
    px = xx[..., None] / dim_t
    py = yy[..., None] / dim_t
    pe = jnp.concatenate([jnp.sin(px), jnp.cos(px), jnp.sin(py), jnp.cos(py)], axis=-1)
    return pe.reshape(hf * wf, d).astype(jnp.float32)


def _block_diag(a, b):
    top = jnp.concatenate([a, jnp.zeros((a.shape[0], b.shape[1]), a.dtype)], axis=1)
    bot = jnp.concatenate([jnp.zeros((b.shape[0], a.shape[1]), b.dtype), b], axis=1)
    return jnp.concatenate([top, bot], axis=0)


def _pack_params(p, Bt, stride, hfs, wfs, hft, wft, num_heads, out_width=OUT_W):
    """Pack per-layer weights for the fused kernel (weights bf16, biases f32)."""
    D = p["w_proj"].shape[1]
    P = stride * stride
    dh = D // num_heads
    scale = 1.0 / (dh ** 0.5)

    def w(x):
        return x.astype(jnp.bfloat16)

    def b(x):
        return x.reshape(1, -1).astype(jnp.float32)

    # Backbone 1x1 conv with the stride x stride mean folded in (lane-dense tokens).
    w_bb = jnp.repeat(p["w_bb"], P, axis=0) / P                      # [3*P, Cb]

    # Batch-invariant positional projections folded into per-row Q/K biases,
    # attention scale folded into Wq / q-bias, K and V fused into one matmul.
    Ls, Lt = hfs * wfs, hft * wft
    pos_s = _sine_pos_embed(hfs, wfs, D)
    pos_t = _sine_pos_embed(hft, wft, D)
    w_q = p["w_q"] * scale
    q_bias = (pos_s @ p["w_q"] + p["b_q"]) * scale                   # [Ls, D]
    k_bias = pos_t @ p["w_k"] + p["b_k"]                             # [Lt, D]
    v_bias = jnp.broadcast_to(p["b_v"], (Lt, D))
    kv_bias = jnp.concatenate([k_bias, v_bias], axis=1)              # [Lt, 2D]
    q_bias = jnp.tile(q_bias, (Bt, 1)).astype(jnp.float32)           # [Bt*Ls, D]
    kv_bias = jnp.tile(kv_bias, (Bt, 1)).astype(jnp.float32)         # [Bt*Lt, 2D]
    w_kv = jnp.concatenate([p["w_k"], p["w_v"]], axis=1)             # [D, 2D]

    # cls/box heads: layer-1 concatenated along N, layers 2/3 block-diagonal,
    # final layer lane-padded to OUT_W.
    w1 = jnp.concatenate([p["cls_w"][0], p["box_w"][0]], axis=1)
    b1 = jnp.concatenate([p["cls_b"][0], p["box_b"][0]])
    w2 = _block_diag(p["cls_w"][1], p["box_w"][1])
    b2 = jnp.concatenate([p["cls_b"][1], p["box_b"][1]])
    w3 = _block_diag(p["cls_w"][2], p["box_w"][2])
    b3 = jnp.concatenate([p["cls_b"][2], p["box_b"][2]])
    assert w3.shape[1] <= out_width
    pad = out_width - w3.shape[1]
    w3 = jnp.pad(w3, ((0, 0), (0, pad)))
    b3 = jnp.pad(b3, ((0, pad),))

    weights = (w(w_bb), b(p["b_bb"]), w(p["w_proj"]), b(p["b_proj"]),
               w(w_q), w(w_kv), w(p["w_o"]), b(p["b_o"]),
               w(w1), b(b1), w(w2), b(b2), w(w3), b(b3))
    return q_bias, kv_bias, weights


def _tensorcores_per_chip():
    """2 TensorCores per device on v7x / v4 / v5p, else 1 (v5e / v6e)."""
    try:
        kind = jax.devices()[0].device_kind.lower()
    except Exception:
        return 1
    return 2 if ("v7" in kind or "v4" in kind or "v5p" in kind) else 1


# ----------------------------------------------------------------------------
# Forward pass
# ----------------------------------------------------------------------------
def transt_forward(search, template, params, num_heads=4, stride=4):
    """search/template: [B, 3, H, W] float32 (NCHW like PyTorch)."""
    # TODO(synk): the full ECA/CFA featurefusion transformer is an external module;
    # stand-in = single multi-head cross-attention (search attends to template) + residual.
    B = search.shape[0]
    D = params["w_proj"].shape[1]
    n_cls_out = params["cls_w"][2].shape[1]          # num_classes + 1
    assert D % num_heads == 0

    tok_s, hfs, wfs = _tokenize(search, stride)      # [B, Ls, Cin]
    tok_t, hft, wft = _tokenize(template, stride)    # [B, Lt, Cin]
    Ls, Lt = hfs * wfs, hft * wft
    Cin = tok_s.shape[-1]

    # Whole batch in one grid step on single-TC chips; 2 "parallel" steps on
    # 2-TC chips so the batch axis still shards across TensorCores.
    n_tc = _tensorcores_per_chip()
    n_steps = n_tc if (n_tc > 1 and B >= n_tc and B % n_tc == 0) else 1
    Bt = B // n_steps

    q_bias, kv_bias, weights = _pack_params(params, Bt, stride,
                                            hfs, wfs, hft, wft, num_heads)
    args = (tok_s, tok_t, q_bias, kv_bias) + weights

    def inv_spec(a):  # grid-invariant full-array block (DMA'd once, re-used)
        return pl.BlockSpec(a.shape, lambda b: (0,) * a.ndim)

    in_specs = [
        pl.BlockSpec((Bt, Ls, Cin), lambda b: (b, 0, 0)),
        pl.BlockSpec((Bt, Lt, Cin), lambda b: (b, 0, 0)),
    ] + [inv_spec(a) for a in args[2:]]

    kernel = functools.partial(_transt_kernel, num_heads=num_heads,
                               n_cls_out=n_cls_out, d_model=D)

    out_packed = pl.pallas_call(
        kernel,
        out_shape=jax.ShapeDtypeStruct((B, Ls, OUT_W), jnp.float32),
        grid=(n_steps,),
        in_specs=in_specs,
        out_specs=pl.BlockSpec((Bt, Ls, OUT_W), lambda b: (b, 0, 0)),
        scratch_shapes=[pltpu.VMEM((Bt * Ls, D), jnp.float32)],
        compiler_params=pltpu.CompilerParams(dimension_semantics=("parallel",)),
    )(*args)

    return {"pred_logits": out_packed[:, :, :n_cls_out],
            "pred_boxes": out_packed[:, :, n_cls_out:n_cls_out + 4]}


# ----------------------------------------------------------------------------
# Deterministic parameter initialization
# ----------------------------------------------------------------------------
def init_params(key, num_channels=8, hidden_dim=32, num_classes=1):
    keys = jax.random.split(key, 32)
    it = iter(keys)

    def lin(k, fan_in, fan_out, scale=0.05):
        return (scale * jax.random.normal(k, (fan_in, fan_out), jnp.float32),
                jnp.zeros((fan_out,), jnp.float32))

    p = {}
    p["w_bb"], p["b_bb"] = lin(next(it), 3, num_channels)
    p["w_proj"], p["b_proj"] = lin(next(it), num_channels, hidden_dim)
    for nm in ("q", "k", "v", "o"):
        p[f"w_{nm}"], p[f"b_{nm}"] = lin(next(it), hidden_dim, hidden_dim)
    # class_embed: MLP(hidden, hidden, num_classes+1, 3)
    cw, cb = [], []
    for fi, fo in [(hidden_dim, hidden_dim), (hidden_dim, hidden_dim),
                   (hidden_dim, num_classes + 1)]:
        w_, b_ = lin(next(it), fi, fo)
        cw.append(w_); cb.append(b_)
    p["cls_w"], p["cls_b"] = cw, cb
    # bbox_embed: MLP(hidden, hidden, 4, 3)
    bw, bb = [], []
    for fi, fo in [(hidden_dim, hidden_dim), (hidden_dim, hidden_dim), (hidden_dim, 4)]:
        w_, b_ = lin(next(it), fi, fo)
        bw.append(w_); bb.append(b_)
    p["box_w"], p["box_b"] = bw, bb
    return p


# ----------------------------------------------------------------------------
if __name__ == "__main__":
    key = jax.random.PRNGKey(0)
    k_p, k_s, k_t = jax.random.split(key, 3)

    params = init_params(k_p, num_channels=8, hidden_dim=32, num_classes=1)

    # Small shapes: batch=2, RGB images; search 32x32, template 16x16.
    search = jax.random.normal(k_s, (2, 3, 32, 32), jnp.float32)
    template = jax.random.normal(k_t, (2, 3, 16, 16), jnp.float32)

    fwd = jax.jit(transt_forward, static_argnames=("num_heads", "stride"))
    out = fwd(search, template, params, num_heads=4)
    jax.block_until_ready(out)

    assert out["pred_logits"].shape == (2, 64, 2), out["pred_logits"].shape
    assert out["pred_boxes"].shape == (2, 64, 4), out["pred_boxes"].shape
    assert bool(jnp.all((out["pred_boxes"] >= 0.0) & (out["pred_boxes"] <= 1.0)))
    assert bool(jnp.all(jnp.isfinite(out["pred_logits"])))
    print("KERNEL_OK")
</pallas_src>

<mosaic_0001>
module attributes {stable_mosaic.version = 11 : i64} {
  func.func @_transt_kernel(%arg0: i32, %arg1: memref<2x64x48xf32, #tpu.memory_space<vmem>>, %arg2: memref<2x16x48xf32, #tpu.memory_space<vmem>>, %arg3: memref<128x32xf32, #tpu.memory_space<vmem>>, %arg4: memref<32x64xf32, #tpu.memory_space<vmem>>, %arg5: memref<48x8xbf16, #tpu.memory_space<vmem>>, %arg6: memref<1x8xf32, #tpu.memory_space<vmem>>, %arg7: memref<8x32xbf16, #tpu.memory_space<vmem>>, %arg8: memref<1x32xf32, #tpu.memory_space<vmem>>, %arg9: memref<32x32xbf16, #tpu.memory_space<vmem>>, %arg10: memref<32x64xbf16, #tpu.memory_space<vmem>>, %arg11: memref<32x32xbf16, #tpu.memory_space<vmem>>, %arg12: memref<1x32xf32, #tpu.memory_space<vmem>>, %arg13: memref<32x64xbf16, #tpu.memory_space<vmem>>, %arg14: memref<1x64xf32, #tpu.memory_space<vmem>>, %arg15: memref<64x64xbf16, #tpu.memory_space<vmem>>, %arg16: memref<1x64xf32, #tpu.memory_space<vmem>>, %arg17: memref<64x128xbf16, #tpu.memory_space<vmem>>, %arg18: memref<1x128xf32, #tpu.memory_space<vmem>>, %arg19: memref<2x64x128xf32, #tpu.memory_space<vmem>>, %arg20: memref<128x32xf32, #tpu.memory_space<vmem>>) attributes {dimension_semantics = [#tpu.dimension_semantics<parallel>], iteration_bounds = array<i64: 1>, scalar_prefetch = 0 : i64, scratch_operands = 1 : i64, tpu.core_type = #tpu.core_type<tc>, window_params = [{transform_indices = @transform_0, window_bounds = array<i64: 2, 64, 48>}, {transform_indices = @transform_1, window_bounds = array<i64: 2, 16, 48>}, {pipeline_mode = #tpu.pipeline_mode<synchronous>, transform_indices = @transform_2, window_bounds = array<i64: 128, 32>}, {pipeline_mode = #tpu.pipeline_mode<synchronous>, transform_indices = @transform_3, window_bounds = array<i64: 32, 64>}, {pipeline_mode = #tpu.pipeline_mode<synchronous>, transform_indices = @transform_4, window_bounds = array<i64: 48, 8>}, {pipeline_mode = #tpu.pipeline_mode<synchronous>, transform_indices = @transform_5, window_bounds = array<i64: 1, 8>}, {pipeline_mode = #tpu.pipeline_mode<synchronous>, transform_indices = @transform_6, window_bounds = array<i64: 8, 32>}, {pipeline_mode = #tpu.pipeline_mode<synchronous>, transform_indices = @transform_7, window_bounds = array<i64: 1, 32>}, {pipeline_mode = #tpu.pipeline_mode<synchronous>, transform_indices = @transform_8, window_bounds = array<i64: 32, 32>}, {pipeline_mode = #tpu.pipeline_mode<synchronous>, transform_indices = @transform_9, window_bounds = array<i64: 32, 64>}, {pipeline_mode = #tpu.pipeline_mode<synchronous>, transform_indices = @transform_10, window_bounds = array<i64: 32, 32>}, {pipeline_mode = #tpu.pipeline_mode<synchronous>, transform_indices = @transform_11, window_bounds = array<i64: 1, 32>}, {pipeline_mode = #tpu.pipeline_mode<synchronous>, transform_indices = @transform_12, window_bounds = array<i64: 32, 64>}, {pipeline_mode = #tpu.pipeline_mode<synchronous>, transform_indices = @transform_13, window_bounds = array<i64: 1, 64>}, {pipeline_mode = #tpu.pipeline_mode<synchronous>, transform_indices = @transform_14, window_bounds = array<i64: 64, 64>}, {pipeline_mode = #tpu.pipeline_mode<synchronous>, transform_indices = @transform_15, window_bounds = array<i64: 1, 64>}, {pipeline_mode = #tpu.pipeline_mode<synchronous>, transform_indices = @transform_16, window_bounds = array<i64: 64, 128>}, {pipeline_mode = #tpu.pipeline_mode<synchronous>, transform_indices = @transform_17, window_bounds = array<i64: 1, 128>}, {transform_indices = @transform_18, window_bounds = array<i64: 2, 64, 128>}]} {
    %c0 = arith.constant 0 : index
    %c0_0 = arith.constant 0 : index
    %c0_1 = arith.constant 0 : index
    %0 = vector.load %arg1[%c0, %c0_0, %c0_1] : memref<2x64x48xf32, #tpu.memory_space<vmem>>, vector<2x64x48xf32>
    %1 = vector.shape_cast %0 : vector<2x64x48xf32> to vector<128x48xf32>
    %c0_2 = arith.constant 0 : index
    %c0_3 = arith.constant 0 : index
    %c0_4 = arith.constant 0 : index
    %2 = vector.load %arg2[%c0_2, %c0_3, %c0_4] : memref<2x16x48xf32, #tpu.memory_space<vmem>>, vector<2x16x48xf32>
    %3 = vector.shape_cast %2 : vector<2x16x48xf32> to vector<32x48xf32>
    %4 = tpu.concatenate %1, %3 in 0 : vector<128x48xf32>, vector<32x48xf32> -> vector<160x48xf32>
    %5 = arith.truncf %4 : vector<160x48xf32> to vector<160x48xbf16>
    %c0_5 = arith.constant 0 : index
    %c0_6 = arith.constant 0 : index
    %6 = vector.load %arg5[%c0_5, %c0_6] : memref<48x8xbf16, #tpu.memory_space<vmem>>, vector<48x8xbf16>
    %cst = arith.constant dense<0.000000e+00> : vector<160x8xf32>
    %7 = tpu.matmul %5, %6, %cst {dimension_numbers = #tpu.dot_dimension_numbers<[1], [0], [0], [1], [0, 0, 1, 1], [], []>} : vector<160x48xbf16>, vector<48x8xbf16>, vector<160x8xf32> -> vector<160x8xf32>
    %c0_7 = arith.constant 0 : index
    %c0_8 = arith.constant 0 : index
    %8 = vector.load %arg6[%c0_7, %c0_8] : memref<1x8xf32, #tpu.memory_space<vmem>>, vector<1x8xf32>
    %9 = vector.broadcast %8 : vector<1x8xf32> to vector<160x8xf32>
    %10 = arith.addf %7, %9 : vector<160x8xf32>
    %cst_9 = arith.constant 0.000000e+00 : f32
    %11 = vector.broadcast %cst_9 : f32 to vector<160x8xf32>
    %12 = arith.maximumf %10, %11 : vector<160x8xf32>
    %13 = arith.truncf %12 : vector<160x8xf32> to vector<160x8xbf16>
    %c0_10 = arith.constant 0 : index
    %c0_11 = arith.constant 0 : index
    %14 = vector.load %arg7[%c0_10, %c0_11] : memref<8x32xbf16, #tpu.memory_space<vmem>>, vector<8x32xbf16>
    %cst_12 = arith.constant dense<0.000000e+00> : vector<160x32xf32>
    %15 = tpu.matmul %13, %14, %cst_12 {dimension_numbers = #tpu.dot_dimension_numbers<[1], [0], [0], [1], [0, 0, 1, 1], [], []>} : vector<160x8xbf16>, vector<8x32xbf16>, vector<160x32xf32> -> vector<160x32xf32>
    %c0_13 = arith.constant 0 : index
    %c0_14 = arith.constant 0 : index
    %16 = vector.load %arg8[%c0_13, %c0_14] : memref<1x32xf32, #tpu.memory_space<vmem>>, vector<1x32xf32>
    %17 = vector.broadcast %16 : vector<1x32xf32> to vector<160x32xf32>
    %18 = arith.addf %15, %17 : vector<160x32xf32>
    %19 = vector.extract_strided_slice %18 {offsets = [0, 0], sizes = [128, 32], strides = [1, 1]} : vector<160x32xf32> to vector<128x32xf32>
    %20 = vector.extract_strided_slice %18 {offsets = [128, 0], sizes = [32, 32], strides = [1, 1]} : vector<160x32xf32> to vector<32x32xf32>
    %21 = arith.truncf %20 : vector<32x32xf32> to vector<32x32xbf16>
    %22 = arith.truncf %19 : vector<128x32xf32> to vector<128x32xbf16>
    %c0_15 = arith.constant 0 : index
    %c0_16 = arith.constant 0 : index
    %23 = vector.load %arg9[%c0_15, %c0_16] : memref<32x32xbf16, #tpu.memory_space<vmem>>, vector<32x32xbf16>
    %cst_17 = arith.constant dense<0.000000e+00> : vector<128x32xf32>
    %24 = tpu.matmul %22, %23, %cst_17 {dimension_numbers = #tpu.dot_dimension_numbers<[1], [0], [0], [1], [0, 0, 1, 1], [], []>} : vector<128x32xbf16>, vector<32x32xbf16>, vector<128x32xf32> -> vector<128x32xf32>
    %c0_18 = arith.constant 0 : index
    %c0_19 = arith.constant 0 : index
    %25 = vector.load %arg3[%c0_18, %c0_19] : memref<128x32xf32, #tpu.memory_space<vmem>>, vector<128x32xf32>
    %26 = arith.addf %24, %25 : vector<128x32xf32>
    %c0_20 = arith.constant 0 : index
    %c0_21 = arith.constant 0 : index
    %27 = vector.load %arg10[%c0_20, %c0_21] : memref<32x64xbf16, #tpu.memory_space<vmem>>, vector<32x64xbf16>
    %cst_22 = arith.constant dense<0.000000e+00> : vector<32x64xf32>
    %28 = tpu.matmul %21, %27, %cst_22 {dimension_numbers = #tpu.dot_dimension_numbers<[1], [0], [0], [1], [0, 0, 1, 1], [], []>} : vector<32x32xbf16>, vector<32x64xbf16>, vector<32x64xf32> -> vector<32x64xf32>
    %c0_23 = arith.constant 0 : index
    %c0_24 = arith.constant 0 : index
    %29 = vector.load %arg4[%c0_23, %c0_24] : memref<32x64xf32, #tpu.memory_space<vmem>>, vector<32x64xf32>
    %30 = arith.addf %28, %29 : vector<32x64xf32>
    %31 = vector.shape_cast %26 : vector<128x32xf32> to vector<2x64x32xf32>
    %32 = arith.truncf %31 : vector<2x64x32xf32> to vector<2x64x32xbf16>
    %33 = vector.extract_strided_slice %30 {offsets = [0, 0], sizes = [32, 32], strides = [1, 1]} : vector<32x64xf32> to vector<32x32xf32>
    %34 = vector.shape_cast %33 : vector<32x32xf32> to vector<2x16x32xf32>
    %35 = arith.truncf %34 : vector<2x16x32xf32> to vector<2x16x32xbf16>
    %36 = vector.extract_strided_slice %30 {offsets = [0, 32], sizes = [32, 32], strides = [1, 1]} : vector<32x64xf32> to vector<32x32xf32>
    %37 = vector.shape_cast %36 : vector<32x32xf32> to vector<2x16x32xf32>
    %38 = arith.truncf %37 : vector<2x16x32xf32> to vector<2x16x32xbf16>
    %39 = vector.extract_strided_slice %32 {offsets = [0, 0, 0], sizes = [2, 64, 8], strides = [1, 1, 1]} : vector<2x64x32xbf16> to vector<2x64x8xbf16>
    %40 = vector.extract_strided_slice %35 {offsets = [0, 0, 0], sizes = [2, 16, 8], strides = [1, 1, 1]} : vector<2x16x32xbf16> to vector<2x16x8xbf16>
    %cst_25 = arith.constant dense<0.000000e+00> : vector<2x64x16xf32>
    %41 = tpu.matmul %39, %40, %cst_25 {dimension_numbers = #tpu.dot_dimension_numbers<[2], [2], [1], [1], [0, 0, 0, 1, 1, 1], [0], [0]>} : vector<2x64x8xbf16>, vector<2x16x8xbf16>, vector<2x64x16xf32> -> vector<2x64x16xf32>
    %cst_26 = arith.constant dense<0xFF800000> : vector<2x64xf32>
    %42 = vector.multi_reduction <maximumf>, %41, %cst_26 [2] : vector<2x64x16xf32> to vector<2x64xf32>
    %43 = vector.shape_cast %42 : vector<2x64xf32> to vector<2x64x1xf32>
    %44 = vector.broadcast %43 : vector<2x64x1xf32> to vector<2x64x16xf32>
    %45 = arith.subf %41, %44 : vector<2x64x16xf32>
    %46 = math.exp %45 : vector<2x64x16xf32>
    %cst_27 = arith.constant dense<0.000000e+00> : vector<2x64xf32>
    %47 = vector.multi_reduction <add>, %46, %cst_27 [2] : vector<2x64x16xf32> to vector<2x64xf32>
    %48 = vector.shape_cast %47 : vector<2x64xf32> to vector<2x64x1xf32>
    %49 = tpu.reciprocal %48 : vector<2x64x1xf32> -> vector<2x64x1xf32>
    %50 = vector.broadcast %49 : vector<2x64x1xf32> to vector<2x64x16xf32>
    %51 = arith.mulf %46, %50 : vector<2x64x16xf32>
    %52 = arith.truncf %51 : vector<2x64x16xf32> to vector<2x64x16xbf16>
    %53 = vector.extract_strided_slice %38 {offsets = [0, 0, 0], sizes = [2, 16, 8], strides = [1, 1, 1]} : vector<2x16x32xbf16> to vector<2x16x8xbf16>
    %cst_28 = arith.constant dense<0.000000e+00> : vector<2x64x8xf32>
    %54 = tpu.matmul %52, %53, %cst_28 {dimension_numbers = #tpu.dot_dimension_numbers<[2], [1], [1], [2], [0, 0, 0, 1, 1, 2], [0], [0]>} : vector<2x64x16xbf16>, vector<2x16x8xbf16>, vector<2x64x8xf32> -> vector<2x64x8xf32>
    %55 = vector.shape_cast %54 : vector<2x64x8xf32> to vector<128x8xf32>
    %c0_29 = arith.constant 0 : index
    %c0_30 = arith.constant 0 : index
    %56 = vector.load %arg20[%c0_29, %c0_30] : memref<128x32xf32, #tpu.memory_space<vmem>>, vector<128x8xf32>
    tpu.vector_store %arg20[%c0_29, %c0_30], %55 {strides = array<i32>} : memref<128x32xf32, #tpu.memory_space<vmem>>, vector<128x8xf32>,
    %57 = vector.extract_strided_slice %32 {offsets = [0, 0, 8], sizes = [2, 64, 8], strides = [1, 1, 1]} : vector<2x64x32xbf16> to vector<2x64x8xbf16>
    %58 = vector.extract_strided_slice %35 {offsets = [0, 0, 8], sizes = [2, 16, 8], strides = [1, 1, 1]} : vector<2x16x32xbf16> to vector<2x16x8xbf16>
    %cst_31 = arith.constant dense<0.000000e+00> : vector<2x64x16xf32>
    %59 = tpu.matmul %57, %58, %cst_31 {dimension_numbers = #tpu.dot_dimension_numbers<[2], [2], [1], [1], [0, 0, 0, 1, 1, 1], [0], [0]>} : vector<2x64x8xbf16>, vector<2x16x8xbf16>, vector<2x64x16xf32> -> vector<2x64x16xf32>
    %cst_32 = arith.constant dense<0xFF800000> : vector<2x64xf32>
    %60 = vector.multi_reduction <maximumf>, %59, %cst_32 [2] : vector<2x64x16xf32> to vector<2x64xf32>
    %61 = vector.shape_cast %60 : vector<2x64xf32> to vector<2x64x1xf32>
    %62 = vector.broadcast %61 : vector<2x64x1xf32> to vector<2x64x16xf32>
    %63 = arith.subf %59, %62 : vector<2x64x16xf32>
    %64 = math.exp %63 : vector<2x64x16xf32>
    %cst_33 = arith.constant dense<0.000000e+00> : vector<2x64xf32>
    %65 = vector.multi_reduction <add>, %64, %cst_33 [2] : vector<2x64x16xf32> to vector<2x64xf32>
    %66 = vector.shape_cast %65 : vector<2x64xf32> to vector<2x64x1xf32>
    %67 = tpu.reciprocal %66 : vector<2x64x1xf32> -> vector<2x64x1xf32>
    %68 = vector.broadcast %67 : vector<2x64x1xf32> to vector<2x64x16xf32>
    %69 = arith.mulf %64, %68 : vector<2x64x16xf32>
    %70 = arith.truncf %69 : vector<2x64x16xf32> to vector<2x64x16xbf16>
    %71 = vector.extract_strided_slice %38 {offsets = [0, 0, 8], sizes = [2, 16, 8], strides = [1, 1, 1]} : vector<2x16x32xbf16> to vector<2x16x8xbf16>
    %cst_34 = arith.constant dense<0.000000e+00> : vector<2x64x8xf32>
    %72 = tpu.matmul %70, %71, %cst_34 {dimension_numbers = #tpu.dot_dimension_numbers<[2], [1], [1], [2], [0, 0, 0, 1, 1, 2], [0], [0]>} : vector<2x64x16xbf16>, vector<2x16x8xbf16>, vector<2x64x8xf32> -> vector<2x64x8xf32>
    %73 = vector.shape_cast %72 : vector<2x64x8xf32> to vector<128x8xf32>
    %c0_35 = arith.constant 0 : index
    %c8 = arith.constant 8 : index
    %74 = vector.load %arg20[%c0_35, %c8] : memref<128x32xf32, #tpu.memory_space<vmem>>, vector<128x8xf32>
    tpu.vector_store %arg20[%c0_35, %c8], %73 {strides = array<i32>} : memref<128x32xf32, #tpu.memory_space<vmem>>, vector<128x8xf32>,
    %75 = vector.extract_strided_slice %32 {offsets = [0, 0, 16], sizes = [2, 64, 8], strides = [1, 1, 1]} : vector<2x64x32xbf16> to vector<2x64x8xbf16>
    %76 = vector.extract_strided_slice %35 {offsets = [0, 0, 16], sizes = [2, 16, 8], strides = [1, 1, 1]} : vector<2x16x32xbf16> to vector<2x16x8xbf16>
    %cst_36 = arith.constant dense<0.000000e+00> : vector<2x64x16xf32>
    %77 = tpu.matmul %75, %76, %cst_36 {dimension_numbers = #tpu.dot_dimension_numbers<[2], [2], [1], [1], [0, 0, 0, 1, 1, 1], [0], [0]>} : vector<2x64x8xbf16>, vector<2x16x8xbf16>, vector<2x64x16xf32> -> vector<2x64x16xf32>
    %cst_37 = arith.constant dense<0xFF800000> : vector<2x64xf32>
    %78 = vector.multi_reduction <maximumf>, %77, %cst_37 [2] : vector<2x64x16xf32> to vector<2x64xf32>
    %79 = vector.shape_cast %78 : vector<2x64xf32> to vector<2x64x1xf32>
    %80 = vector.broadcast %79 : vector<2x64x1xf32> to vector<2x64x16xf32>
    %81 = arith.subf %77, %80 : vector<2x64x16xf32>
    %82 = math.exp %81 : vector<2x64x16xf32>
    %cst_38 = arith.constant dense<0.000000e+00> : vector<2x64xf32>
    %83 = vector.multi_reduction <add>, %82, %cst_38 [2] : vector<2x64x16xf32> to vector<2x64xf32>
    %84 = vector.shape_cast %83 : vector<2x64xf32> to vector<2x64x1xf32>
    %85 = tpu.reciprocal %84 : vector<2x64x1xf32> -> vector<2x64x1xf32>
    %86 = vector.broadcast %85 : vector<2x64x1xf32> to vector<2x64x16xf32>
    %87 = arith.mulf %82, %86 : vector<2x64x16xf32>
    %88 = arith.truncf %87 : vector<2x64x16xf32> to vector<2x64x16xbf16>
    %89 = vector.extract_strided_slice %38 {offsets = [0, 0, 16], sizes = [2, 16, 8], strides = [1, 1, 1]} : vector<2x16x32xbf16> to vector<2x16x8xbf16>
    %cst_39 = arith.constant dense<0.000000e+00> : vector<2x64x8xf32>
    %90 = tpu.matmul %88, %89, %cst_39 {dimension_numbers = #tpu.dot_dimension_numbers<[2], [1], [1], [2], [0, 0, 0, 1, 1, 2], [0], [0]>} : vector<2x64x16xbf16>, vector<2x16x8xbf16>, vector<2x64x8xf32> -> vector<2x64x8xf32>
    %91 = vector.shape_cast %90 : vector<2x64x8xf32> to vector<128x8xf32>
    %c0_40 = arith.constant 0 : index
    %c16 = arith.constant 16 : index
    %92 = vector.load %arg20[%c0_40, %c16] : memref<128x32xf32, #tpu.memory_space<vmem>>, vector<128x8xf32>
    tpu.vector_store %arg20[%c0_40, %c16], %91 {strides = array<i32>} : memref<128x32xf32, #tpu.memory_space<vmem>>, vector<128x8xf32>,
    %93 = vector.extract_strided_slice %32 {offsets = [0, 0, 24], sizes = [2, 64, 8], strides = [1, 1, 1]} : vector<2x64x32xbf16> to vector<2x64x8xbf16>
    %94 = vector.extract_strided_slice %35 {offsets = [0, 0, 24], sizes = [2, 16, 8], strides = [1, 1, 1]} : vector<2x16x32xbf16> to vector<2x16x8xbf16>
    %cst_41 = arith.constant dense<0.000000e+00> : vector<2x64x16xf32>
    %95 = tpu.matmul %93, %94, %cst_41 {dimension_numbers = #tpu.dot_dimension_numbers<[2], [2], [1], [1], [0, 0, 0, 1, 1, 1], [0], [0]>} : vector<2x64x8xbf16>, vector<2x16x8xbf16>, vector<2x64x16xf32> -> vector<2x64x16xf32>
    %cst_42 = arith.constant dense<0xFF800000> : vector<2x64xf32>
    %96 = vector.multi_reduction <maximumf>, %95, %cst_42 [2] : vector<2x64x16xf32> to vector<2x64xf32>
    %97 = vector.shape_cast %96 : vector<2x64xf32> to vector<2x64x1xf32>
    %98 = vector.broadcast %97 : vector<2x64x1xf32> to vector<2x64x16xf32>
    %99 = arith.subf %95, %98 : vector<2x64x16xf32>
    %100 = math.exp %99 : vector<2x64x16xf32>
    %cst_43 = arith.constant dense<0.000000e+00> : vector<2x64xf32>
    %101 = vector.multi_reduction <add>, %100, %cst_43 [2] : vector<2x64x16xf32> to vector<2x64xf32>
    %102 = vector.shape_cast %101 : vector<2x64xf32> to vector<2x64x1xf32>
    %103 = tpu.reciprocal %102 : vector<2x64x1xf32> -> vector<2x64x1xf32>
    %104 = vector.broadcast %103 : vector<2x64x1xf32> to vector<2x64x16xf32>
    %105 = arith.mulf %100, %104 : vector<2x64x16xf32>
    %106 = arith.truncf %105 : vector<2x64x16xf32> to vector<2x64x16xbf16>
    %107 = vector.extract_strided_slice %38 {offsets = [0, 0, 24], sizes = [2, 16, 8], strides = [1, 1, 1]} : vector<2x16x32xbf16> to vector<2x16x8xbf16>
    %cst_44 = arith.constant dense<0.000000e+00> : vector<2x64x8xf32>
    %108 = tpu.matmul %106, %107, %cst_44 {dimension_numbers = #tpu.dot_dimension_numbers<[2], [1], [1], [2], [0, 0, 0, 1, 1, 2], [0], [0]>} : vector<2x64x16xbf16>, vector<2x16x8xbf16>, vector<2x64x8xf32> -> vector<2x64x8xf32>
    %109 = vector.shape_cast %108 : vector<2x64x8xf32> to vector<128x8xf32>
    %c0_45 = arith.constant 0 : index
    %c24 = arith.constant 24 : index
    %110 = vector.load %arg20[%c0_45, %c24] : memref<128x32xf32, #tpu.memory_space<vmem>>, vector<128x8xf32>
    tpu.vector_store %arg20[%c0_45, %c24], %109 {strides = array<i32>} : memref<128x32xf32, #tpu.memory_space<vmem>>, vector<128x8xf32>,
    %c0_46 = arith.constant 0 : index
    %c0_47 = arith.constant 0 : index
    %111 = vector.load %arg20[%c0_46, %c0_47] : memref<128x32xf32, #tpu.memory_space<vmem>>, vector<128x32xf32>
    %112 = arith.truncf %111 : vector<128x32xf32> to vector<128x32xbf16>
    %c0_48 = arith.constant 0 : index
    %c0_49 = arith.constant 0 : index
    %113 = vector.load %arg11[%c0_48, %c0_49] : memref<32x32xbf16, #tpu.memory_space<vmem>>, vector<32x32xbf16>
    %cst_50 = arith.constant dense<0.000000e+00> : vector<128x32xf32>
    %114 = tpu.matmul %112, %113, %cst_50 {dimension_numbers = #tpu.dot_dimension_numbers<[1], [0], [0], [1], [0, 0, 1, 1], [], []>} : vector<128x32xbf16>, vector<32x32xbf16>, vector<128x32xf32> -> vector<128x32xf32>
    %115 = arith.addf %19, %114 : vector<128x32xf32>
    %c0_51 = arith.constant 0 : index
    %c0_52 = arith.constant 0 : index
    %116 = vector.load %arg12[%c0_51, %c0_52] : memref<1x32xf32, #tpu.memory_space<vmem>>, vector<1x32xf32>
    %117 = vector.broadcast %116 : vector<1x32xf32> to vector<128x32xf32>
    %118 = arith.addf %115, %117 : vector<128x32xf32>
    %119 = arith.truncf %118 : vector<128x32xf32> to vector<128x32xbf16>
    %c0_53 = arith.constant 0 : index
    %c0_54 = arith.constant 0 : index
    %120 = vector.load %arg13[%c0_53, %c0_54] : memref<32x64xbf16, #tpu.memory_space<vmem>>, vector<32x64xbf16>
    %cst_55 = arith.constant dense<0.000000e+00> : vector<128x64xf32>
    %121 = tpu.matmul %119, %120, %cst_55 {dimension_numbers = #tpu.dot_dimension_numbers<[1], [0], [0], [1], [0, 0, 1, 1], [], []>} : vector<128x32xbf16>, vector<32x64xbf16>, vector<128x64xf32> -> vector<128x64xf32>
    %c0_56 = arith.constant 0 : index
    %c0_57 = arith.constant 0 : index
    %122 = vector.load %arg14[%c0_56, %c0_57] : memref<1x64xf32, #tpu.memory_space<vmem>>, vector<1x64xf32>
    %123 = vector.broadcast %122 : vector<1x64xf32> to vector<128x64xf32>
    %124 = arith.addf %121, %123 : vector<128x64xf32>
    %cst_58 = arith.constant 0.000000e+00 : f32
    %125 = vector.broadcast %cst_58 : f32 to vector<128x64xf32>
    %126 = arith.maximumf %124, %125 : vector<128x64xf32>
    %127 = arith.truncf %126 : vector<128x64xf32> to vector<128x64xbf16>
    %c0_59 = arith.constant 0 : index
    %c0_60 = arith.constant 0 : index
    %128 = vector.load %arg15[%c0_59, %c0_60] : memref<64x64xbf16, #tpu.memory_space<vmem>>, vector<64x64xbf16>
    %cst_61 = arith.constant dense<0.000000e+00> : vector<128x64xf32>
    %129 = tpu.matmul %127, %128, %cst_61 {dimension_numbers = #tpu.dot_dimension_numbers<[1], [0], [0], [1], [0, 0, 1, 1], [], []>} : vector<128x64xbf16>, vector<64x64xbf16>, vector<128x64xf32> -> vector<128x64xf32>
    %c0_62 = arith.constant 0 : index
    %c0_63 = arith.constant 0 : index
    %130 = vector.load %arg16[%c0_62, %c0_63] : memref<1x64xf32, #tpu.memory_space<vmem>>, vector<1x64xf32>
    %131 = vector.broadcast %130 : vector<1x64xf32> to vector<128x64xf32>
    %132 = arith.addf %129, %131 : vector<128x64xf32>
    %cst_64 = arith.constant 0.000000e+00 : f32
    %133 = vector.broadcast %cst_64 : f32 to vector<128x64xf32>
    %134 = arith.maximumf %132, %133 : vector<128x64xf32>
    %135 = arith.truncf %134 : vector<128x64xf32> to vector<128x64xbf16>
    %c0_65 = arith.constant 0 : index
    %c0_66 = arith.constant 0 : index
    %136 = vector.load %arg17[%c0_65, %c0_66] : memref<64x128xbf16, #tpu.memory_space<vmem>>, vector<64x128xbf16>
    %cst_67 = arith.constant dense<0.000000e+00> : vector<128x128xf32>
    %137 = tpu.matmul %135, %136, %cst_67 {dimension_numbers = #tpu.dot_dimension_numbers<[1], [0], [0], [1], [0, 0, 1, 1], [], []>} : vector<128x64xbf16>, vector<64x128xbf16>, vector<128x128xf32> -> vector<128x128xf32>
    %c0_68 = arith.constant 0 : index
    %c0_69 = arith.constant 0 : index
    %138 = vector.load %arg18[%c0_68, %c0_69] : memref<1x128xf32, #tpu.memory_space<vmem>>, vector<1x128xf32>
    %139 = vector.broadcast %138 : vector<1x128xf32> to vector<128x128xf32>
    %140 = arith.addf %137, %139 : vector<128x128xf32>
    %141 = tpu.iota {dimensions = array<i32: 1>} : vector<128x128xi32>
    %c2_i32 = arith.constant 2 : i32
    %142 = vector.broadcast %c2_i32 : i32 to vector<128x128xi32>
    %143 = arith.cmpi slt, %141, %142 : vector<128x128xi32>
    %144 = arith.negf %140 : vector<128x128xf32>
    %145 = math.exp %144 : vector<128x128xf32>
    %cst_70 = arith.constant 1.000000e+00 : f32
    %146 = vector.broadcast %cst_70 : f32 to vector<128x128xf32>
    %147 = arith.addf %146, %145 : vector<128x128xf32>
    %148 = arith.divf %146, %147 : vector<128x128xf32>
    %149 = arith.select %143, %140, %148 : vector<128x128xi1>, vector<128x128xf32>
    %150 = vector.shape_cast %149 : vector<128x128xf32> to vector<2x64x128xf32>
    %c0_71 = arith.constant 0 : index
    %c0_72 = arith.constant 0 : index
    %c0_73 = arith.constant 0 : index
    %151 = vector.load %arg19[%c0_71, %c0_72, %c0_73] : memref<2x64x128xf32, #tpu.memory_space<vmem>>, vector<2x64x128xf32>
    tpu.vector_store %arg19[%c0_71, %c0_72, %c0_73], %150 {strides = array<i32>} : memref<2x64x128xf32, #tpu.memory_space<vmem>>, vector<2x64x128xf32>,
    return
  }
  func.func @transform_0(%arg0: i32) -> (i32, i32, i32) {
    %c0_i32 = arith.constant 0 : i32
    %c0_i32_0 = arith.constant 0 : i32
    %c0_i32_1 = arith.constant 0 : i32
    return %arg0, %c0_i32, %c0_i32_0 : i32, i32, i32
  }
  func.func @transform_1(%arg0: i32) -> (i32, i32, i32) {
    %c0_i32 = arith.constant 0 : i32
    %c0_i32_0 = arith.constant 0 : i32
    %c0_i32_1 = arith.constant 0 : i32
    return %arg0, %c0_i32, %c0_i32_0 : i32, i32, i32
  }
  func.func @transform_2(%arg0: i32) -> (i32, i32) {
    %c0_i32 = arith.constant 0 : i32
    %c0_i32_0 = arith.constant 0 : i32
    %c0_i32_1 = arith.constant 0 : i32
    return %c0_i32, %c0_i32_0 : i32, i32
  }
  func.func @transform_3(%arg0: i32) -> (i32, i32) {
    %c0_i32 = arith.constant 0 : i32
    %c0_i32_0 = arith.constant 0 : i32
    %c0_i32_1 = arith.constant 0 : i32
    return %c0_i32, %c0_i32_0 : i32, i32
  }
  func.func @transform_4(%arg0: i32) -> (i32, i32) {
    %c0_i32 = arith.constant 0 : i32
    %c0_i32_0 = arith.constant 0 : i32
    %c0_i32_1 = arith.constant 0 : i32
    return %c0_i32, %c0_i32_0 : i32, i32
  }
  func.func @transform_5(%arg0: i32) -> (i32, i32) {
    %c0_i32 = arith.constant 0 : i32
    %c0_i32_0 = arith.constant 0 : i32
    %c0_i32_1 = arith.constant 0 : i32
    return %c0_i32, %c0_i32_0 : i32, i32
  }
  func.func @transform_6(%arg0: i32) -> (i32, i32) {
    %c0_i32 = arith.constant 0 : i32
    %c0_i32_0 = arith.constant 0 : i32
    %c0_i32_1 = arith.constant 0 : i32
    return %c0_i32, %c0_i32_0 : i32, i32
  }
  func.func @transform_7(%arg0: i32) -> (i32, i32) {
    %c0_i32 = arith.constant 0 : i32
    %c0_i32_0 = arith.constant 0 : i32
    %c0_i32_1 = arith.constant 0 : i32
    return %c0_i32, %c0_i32_0 : i32, i32
  }
  func.func @transform_8(%arg0: i32) -> (i32, i32) {
    %c0_i32 = arith.constant 0 : i32
    %c0_i32_0 = arith.constant 0 : i32
    %c0_i32_1 = arith.constant 0 : i32
    return %c0_i32, %c0_i32_0 : i32, i32
  }
  func.func @transform_9(%arg0: i32) -> (i32, i32) {
    %c0_i32 = arith.constant 0 : i32
    %c0_i32_0 = arith.constant 0 : i32
    %c0_i32_1 = arith.constant 0 : i32
    return %c0_i32, %c0_i32_0 : i32, i32
  }
  func.func @transform_10(%arg0: i32) -> (i32, i32) {
    %c0_i32 = arith.constant 0 : i32
    %c0_i32_0 = arith.constant 0 : i32
    %c0_i32_1 = arith.constant 0 : i32
    return %c0_i32, %c0_i32_0 : i32, i32
  }
  func.func @transform_11(%arg0: i32) -> (i32, i32) {
    %c0_i32 = arith.constant 0 : i32
    %c0_i32_0 = arith.constant 0 : i32
    %c0_i32_1 = arith.constant 0 : i32
    return %c0_i32, %c0_i32_0 : i32, i32
  }
  func.func @transform_12(%arg0: i32) -> (i32, i32) {
    %c0_i32 = arith.constant 0 : i32
    %c0_i32_0 = arith.constant 0 : i32
    %c0_i32_1 = arith.constant 0 : i32
    return %c0_i32, %c0_i32_0 : i32, i32
  }
  func.func @transform_13(%arg0: i32) -> (i32, i32) {
    %c0_i32 = arith.constant 0 : i32
    %c0_i32_0 = arith.constant 0 : i32
    %c0_i32_1 = arith.constant 0 : i32
    return %c0_i32, %c0_i32_0 : i32, i32
  }
  func.func @transform_14(%arg0: i32) -> (i32, i32) {
    %c0_i32 = arith.constant 0 : i32
    %c0_i32_0 = arith.constant 0 : i32
    %c0_i32_1 = arith.constant 0 : i32
    return %c0_i32, %c0_i32_0 : i32, i32
  }
  func.func @transform_15(%arg0: i32) -> (i32, i32) {
    %c0_i32 = arith.constant 0 : i32
    %c0_i32_0 = arith.constant 0 : i32
    %c0_i32_1 = arith.constant 0 : i32
    return %c0_i32, %c0_i32_0 : i32, i32
  }
  func.func @transform_16(%arg0: i32) -> (i32, i32) {
    %c0_i32 = arith.constant 0 : i32
    %c0_i32_0 = arith.constant 0 : i32
    %c0_i32_1 = arith.constant 0 : i32
    return %c0_i32, %c0_i32_0 : i32, i32
  }
  func.func @transform_17(%arg0: i32) -> (i32, i32) {
    %c0_i32 = arith.constant 0 : i32
    %c0_i32_0 = arith.constant 0 : i32
    %c0_i32_1 = arith.constant 0 : i32
    return %c0_i32, %c0_i32_0 : i32, i32
  }
  func.func @transform_18(%arg0: i32) -> (i32, i32, i32) {
    %c0_i32 = arith.constant 0 : i32
    %c0_i32_0 = arith.constant 0 : i32
    %c0_i32_1 = arith.constant 0 : i32
    return %arg0, %c0_i32, %c0_i32_0 : i32, i32, i32
  }
}

</mosaic_0001>

<bundles_post_ra>
// kernel: transt_forward.1
= control target key start
LH: loop header
LB: loop body
LE: loop exit
PB: predicated region body
PF: predicated region fallthrough
CT: control target
= control target key end

     0   :  { %vm121_vm0 = vcmask 392192   ;;  %vm334_vm1 = vcmask 1043456   ;;  %vm303_vm2 = vcmask 64512   ;;  %vm493_vm3 = vcmask 261120   ;;  %s4917_s28 = smov 104   ;;  %s4918_s30 = smov 80   ;;  %s6545_s4 = inlined_call_operand.vmem [shape: bf16[48,8], index: 4, kind: input, shape index: {}]   ;;  %s6546_s0 = inlined_call_operand.vmem [shape: f32[2,64,48], index: 0, kind: input, shape index: {}]   ;;  %s6547_s1 = inlined_call_operand.vmem [shape: f32[2,16,48], index: 1, kind: input, shape index: {}]   ;;  %s6548_s6 = inlined_call_operand.vmem [shape: bf16[8,32], index: 6, kind: input, shape index: {}]   ;;  %s6549_s5 = inlined_call_operand.vmem [shape: f32[1,8], index: 5, kind: input, shape index: {}]   ;;  %s6550_s8 = inlined_call_operand.vmem [shape: bf16[32,32], index: 8, kind: input, shape index: {}]   ;;  %s6551_s9 = inlined_call_operand.vmem [shape: bf16[32,64], index: 9, kind: input, shape index: {}]   ;;  %s6552_s7 = inlined_call_operand.vmem [shape: f32[1,32], index: 7, kind: input, shape index: {}]   ;;  %s6553_s2 = inlined_call_operand.vmem [shape: f32[128,32], index: 2, kind: input, shape index: {}]   ;;  %s6554_s3 = inlined_call_operand.vmem [shape: f32[32,64], index: 3, kind: input, shape index: {}]   ;;  %s6555_s10 = inlined_call_operand.vmem [shape: bf16[32,32], index: 10, kind: input, shape index: {}]   ;;  %s6556_s12 = inlined_call_operand.vmem [shape: bf16[32,64], index: 12, kind: input, shape index: {}]   ;;  %s6557_s14 = inlined_call_operand.vmem [shape: bf16[64,64], index: 14, kind: input, shape index: {}]   ;;  %s6558_s11 = inlined_call_operand.vmem [shape: f32[1,32], index: 11, kind: input, shape index: {}]   ;;  %s6559_s16 = inlined_call_operand.vmem [shape: bf16[64,128], index: 16, kind: input, shape index: {}]   ;;  %s6560_s13 = inlined_call_operand.vmem [shape: f32[1,64], index: 13, kind: input, shape index: {}]   ;;  %s6561_s15 = inlined_call_operand.vmem [shape: f32[1,64], index: 15, kind: input, shape index: {}]   ;;  %s6562_s17 = inlined_call_operand.vmem [shape: f32[1,128], index: 17, kind: input, shape index: {}]   ;;  %s6563_s18 = inlined_call_operand.vmem [shape: f32[2,64,128], index: 18, kind: output, shape index: {}]  }
   0x1   :  { %6583 = sst [smem:[#allocation20_spill]] %s6545_s4  ;;  %v295_v33 = vld [vmem:[%s6548_s6] sm:$0xf]  ;;  %vm860_vm4 = vcmask 130048   ;;  %s4919_s4 = smov 72   ;;  %vm1819_vm5 = vcmask 130112  }
   0x2   :  { %6584 = sst [smem:[#allocation21_spill]] %s6546_s0  ;;  %4555 = vmatprep.subr.msk.bf16.mxu1 %vm334_vm1, %v295_v33  ;;  %v336_v34 = vsel %vm334_vm1, %v295_v33, 0  ;;  %v5103_v37 = vld [vmem:[%s6549_s5] ss:$0 sm:$0xff]  ;;  %s4920_s19 = smov 8   ;;  %vm2424_vm6 = vcmask 195712  }
   0x3   :  { %6585 = sst [smem:[#allocation22_spill]] %s6547_s1  ;;  %4258 = vmatpush3.bf16.msra.mxu1 %v336_v34  ;;  %s4922_s5 = smov 24   ;;  %vm3029_vm7 = vcmask 261312   ;;  %vm3461_vm8 = vcmask 523264  }
   0x4   :  { %s6586_s29 = sld [smem:[#allocation20_spill]] }
   0x5   :  { %s6587_s20 = sld [smem:[#allocation21_spill]] }
   0x6   :  { %s6588_s26 = sld [smem:[#allocation22_spill]] }
   0xa   :  { %v4574_v0 = vld [vmem:[%s6586_s29 + $0x10] sm:$0xff]   ;;  %v4575_v1 = vld [vmem:[%s6586_s29 + $0x8] sm:$0xff]   ;;  %v4576_v4 = vld [vmem:[%s6586_s29] sm:$0xff]  }
   0xb   :  { %4231 = vmatprep.subr.bf16.mxu0 %v4574_v0  ;;  %v60_v2 = vld [vmem:[%s6587_s20] sm:$0xff]  ;;  %v61_v3 = vld [vmem:[%s6587_s20 + $0x8] sm:$0xff]  ;;  %v62_v6 = vld [vmem:[%s6587_s20 + $0x10] sm:$0xff] }
   0xc   :  { %4232 = vmatpush3.bf16.msra.mxu0 %v4574_v0  ;;  %v80_v5 = vpack.c.bf16 %v61_v3, %v60_v2  ;;  %v63_v7 = vld [vmem:[%s6587_s20 + $0x18] sm:$0xff]  ;;  %v64_v8 = vld [vmem:[%s6587_s20 + $0x20] sm:$0xff]  ;;  %v65_v9 = vld [vmem:[%s6587_s20 + $0x28] sm:$0xff] }
   0xd   :  { %4233 = vmatprep.subr.bf16.mxu0 %v4575_v1  ;;  %v81_v10 = vpack.c.bf16 %v63_v7, %v62_v6  ;;  %v82_v11 = vpack.c.bf16 %v65_v9, %v64_v8  ;;  %v66_v12 = vld [vmem:[%s6587_s20 + $0x30] sm:$0xff]  ;;  %v67_v13 = vld [vmem:[%s6587_s20 + $0x38] sm:$0xff]  ;;  %v68_v14 = vld [vmem:[%s6587_s20 + $0x40] sm:$0xff] }
   0xe   :  { %4237 = vmatprep.mubr.msk.bf16.mxu0 %vm121_vm0, %v80_v5  ;;  %v69_v15 = vld [vmem:[%s6587_s20 + $0x48] sm:$0xff]  ;;  %v83_v16 = vpack.c.bf16 %v67_v13, %v66_v12  ;;  %v70_v18 = vld [vmem:[%s6587_s20 + $0x50] sm:$0xff]  ;;  %v71_v19 = vld [vmem:[%s6587_s20 + $0x58] sm:$0xff] }
   0xf   :  { %v84_v17 = vpack.c.bf16 %v69_v15, %v68_v14  ;;  %v72_v20 = vld [vmem:[%s6587_s20 + $0x60] sm:$0xff]  ;;  %v73_v21 = vld [vmem:[%s6587_s20 + $0x68] sm:$0xff]  ;;  %v85_v22 = vpack.c.bf16 %v71_v19, %v70_v18  ;;  %v74_v24 = vld [vmem:[%s6587_s20 + $0x70] sm:$0xff] }
  0x10   :  { %4234 = vmatpush3.bf16.msra.mxu0 %v4575_v1  ;;  %v86_v23 = vpack.c.bf16 %v73_v21, %v72_v20  ;;  %v75_v25 = vld [vmem:[%s6587_s20 + $0x78] sm:$0xff]  ;;  %v76_v26 = vld [vmem:[%s6588_s26] sm:$0xff]  ;;  %v77_v27 = vld [vmem:[%s6588_s26 + $0x8] sm:$0xff]  ;;  %s4921_s20 = smov 16  }
  0x11   :  { %4235 = vmatprep.subr.bf16.mxu0 %v4576_v4  ;;  %v87_v28 = vpack.c.bf16 %v75_v25, %v74_v24  ;;  %v88_v29 = vpack.c.bf16 %v77_v27, %v76_v26  ;;  %v78_v30 = vld [vmem:[%s6588_s26 + $0x10] sm:$0xff]  ;;  %v79_v31 = vld [vmem:[%s6588_s26 + $0x18] sm:$0xff] }
  0x12   :  { %v89_v32 = vpack.c.bf16 %v79_v31, %v78_v30 }
  0x14   :  { %4236 = vmatpush3.bf16.msra.mxu0 %v4576_v4 }
  0x17   :  { %4238 = vmatmul.mubr.msk.bf16.vlgmr.msra.gmra.mxu0 %vm121_vm0, %v81_v10 }
  0x18   :  { %4241 = vmatprep.mubr.msk.bf16.mxu0 %vm121_vm0, %v82_v11 }
  0x1f   :  { %4242 = vmatmul.mubr.msk.bf16.gmra.mxu0 %vm121_vm0, %v83_v16 }
  0x20   :  { %4245 = vmatprep.mubr.msk.bf16.mxu0 %vm121_vm0, %v84_v17 }
  0x27   :  { %4246 = vmatmul.mubr.msk.bf16.gmra.mxu0 %vm121_vm0, %v85_v22 }
  0x28   :  { %4249 = vmatprep.mubr.msk.bf16.mxu0 %vm121_vm0, %v86_v23 }
  0x2f   :  { %4250 = vmatmul.mubr.msk.bf16.gmra.mxu0 %vm121_vm0, %v87_v28 }
  0x30   :  { %4253 = vmatprep.mubr.msk.bf16.mxu0 %vm121_vm0, %v88_v29 }
  0x37   :  { %4254 = vmatmul.mubr.msk.bf16.gmra.mxu0 %vm121_vm0, %v89_v32 }
  0xd7   :  { %v4239_v35 = vpop.f32.mrf.mxu0 }
  0xd8   :  { %v195_v41 = vadd.f32 %v4239_v35, %v5103_v37 }
  0xd9   :  { %v186_v36 = vpop.f32.mrf.mxu0 }
  0xda   :  { %v187_v39 = vadd.f32 %v5103_v37, %v186_v36  ;;  %v267_v48 = vmax.f32 %v195_v41, 0.0 }
  0xdb   :  { %v4240_v38 = vpop.f32.mrf.mxu0 }
  0xdc   :  { %v198_v40 = vadd.f32 %v4240_v38, %v5103_v37  ;;  %v265_v46 = vmax.f32 %v187_v39, 0.0 }
  0xdd   :  { %v189_v42 = vpop.f32.mrf.mxu0 }
  0xde   :  { %v190_v43 = vadd.f32 %v5103_v37, %v189_v42  ;;  %v268_v44 = vmax.f32 %v198_v40, 0.0 }
  0xdf   :  { %v4243_v45 = vpop.f32.mrf.mxu0 }
  0xe0   :  { %v266_v47 = vmax.f32 %v190_v43, 0.0  ;;  %v286_v51 = vpack.c.bf16 %v268_v44, %v267_v48  ;;  %v211_v55 = vadd.f32 %v4243_v45, %v5103_v37  ;;  %v4577_v43 = vld [vmem:[%s6550_s8 + $0x8] sm:$0xff]   ;;  %v3916_v48 = vld [vmem:[%s6552_s7] ss:$0 sm:$0xff]  ;;  %s4915_s7 = smov 112  }
  0xe1   :  { %v202_v49 = vpop.f32.mrf.mxu0  ;;  %4279 = vmatprep.subr.bf16.mxu1 %v4577_v43  ;;  %v4579_v44 = vld [vmem:[%s6551_s9 + $0x8] sm:$0xff]  }
  0xe2   :  { %v285_v50 = vpack.c.bf16 %v266_v47, %v265_v46  ;;  %v203_v53 = vadd.f32 %v5103_v37, %v202_v49  ;;  %v271_v62 = vmax.f32 %v211_v55, 0.0 }
  0xe3   :  { %v4244_v52 = vpop.f32.mrf.mxu0 }
  0xe4   :  { %v214_v54 = vadd.f32 %v4244_v52, %v5103_v37  ;;  %4259 = vmatprep.mubr.msk.bf16.mxu1 %vm303_vm2, %v285_v50  ;;  %v269_v60 = vmax.f32 %v203_v53, 0.0 }
  0xe5   :  { %v205_v56 = vpop.f32.mrf.mxu0  ;;  %4260 = vmatmul.mubr.msk.bf16.vlgmr.msra.gmra.mxu1 %vm303_vm2, %v286_v51 }
  0xe6   :  { %v206_v57 = vadd.f32 %v5103_v37, %v205_v56  ;;  %v272_v58 = vmax.f32 %v214_v54, 0.0  ;;  %4280 = vmatpush3.bf16.msra.mxu1 %v4577_v43 }
  0xe7   :  { %v4247_v59 = vpop.f32.mrf.mxu0 }
  0xe8   :  { %v270_v61 = vmax.f32 %v206_v57, 0.0  ;;  %v288_v1 = vpack.c.bf16 %v272_v58, %v271_v62  ;;  %v227_v5 = vadd.f32 %v4247_v59, %v5103_v37  ;;  %v4580_v58 = vld [vmem:[%s6551_s9] sm:$0xff]   ;;  %s4916_s9 = smov 88  }
  0xe9   :  { %v218_v63 = vpop.f32.mrf.mxu0 }
  0xea   :  { %v287_v0 = vpack.c.bf16 %v270_v61, %v269_v60  ;;  %v219_v3 = vadd.f32 %v5103_v37, %v218_v63  ;;  %v275_v12 = vmax.f32 %v227_v5, 0.0 }
  0xeb   :  { %v4248_v2 = vpop.f32.mrf.mxu0 }
  0xec   :  { %v230_v4 = vadd.f32 %v4248_v2, %v5103_v37  ;;  %4263 = vmatprep.mubr.msk.bf16.mxu1 %vm303_vm2, %v287_v0  ;;  %v273_v10 = vmax.f32 %v219_v3, 0.0 }
  0xed   :  { %v221_v6 = vpop.f32.mrf.mxu0  ;;  %4264 = vmatmul.mubr.msk.bf16.gmra.mxu1 %vm303_vm2, %v288_v1 }
  0xee   :  { %v222_v7 = vadd.f32 %v5103_v37, %v221_v6  ;;  %v276_v8 = vmax.f32 %v230_v4, 0.0 }
  0xef   :  { %v4251_v9 = vpop.f32.mrf.mxu0 }
  0xf0   :  { %v274_v11 = vmax.f32 %v222_v7, 0.0  ;;  %v290_v15 = vpack.c.bf16 %v276_v8, %v275_v12  ;;  %v243_v19 = vadd.f32 %v4251_v9, %v5103_v37 }
  0xf1   :  { %v234_v13 = vpop.f32.mrf.mxu0 }
  0xf2   :  { %v289_v14 = vpack.c.bf16 %v274_v11, %v273_v10  ;;  %v235_v17 = vadd.f32 %v5103_v37, %v234_v13  ;;  %v279_v26 = vmax.f32 %v243_v19, 0.0 }
  0xf3   :  { %v4252_v16 = vpop.f32.mrf.mxu0 }
  0xf4   :  { %v246_v18 = vadd.f32 %v4252_v16, %v5103_v37  ;;  %4267 = vmatprep.mubr.msk.bf16.mxu1 %vm303_vm2, %v289_v14  ;;  %v277_v24 = vmax.f32 %v235_v17, 0.0 }
  0xf5   :  { %v237_v20 = vpop.f32.mrf.mxu0  ;;  %4268 = vmatmul.mubr.msk.bf16.gmra.mxu1 %vm303_vm2, %v290_v15 }
  0xf6   :  { %v238_v21 = vadd.f32 %v5103_v37, %v237_v20  ;;  %v280_v22 = vmax.f32 %v246_v18, 0.0 }
  0xf7   :  { %v4255_v23 = vpop.f32.mrf.mxu0 }
  0xf8   :  { %v278_v25 = vmax.f32 %v238_v21, 0.0  ;;  %v292_v29 = vpack.c.bf16 %v280_v22, %v279_v26  ;;  %v259_v33 = vadd.f32 %v4255_v23, %v5103_v37 }
  0xf9   :  { %v250_v27 = vpop.f32.mrf.mxu0 }
  0xfa   :  { %v291_v28 = vpack.c.bf16 %v278_v25, %v277_v24  ;;  %v251_v31 = vadd.f32 %v5103_v37, %v250_v27  ;;  %v283_v40 = vmax.f32 %v259_v33, 0.0 }
  0xfb   :  { %v4256_v30 = vpop.f32.mrf.mxu0 }
  0xfc   :  { %v262_v32 = vadd.f32 %v4256_v30, %v5103_v37  ;;  %4271 = vmatprep.mubr.msk.bf16.mxu1 %vm303_vm2, %v291_v28  ;;  %v281_v38 = vmax.f32 %v251_v31, 0.0 }
  0xfd   :  { %v253_v34 = vpop.f32.mrf.mxu0  ;;  %4272 = vmatmul.mubr.msk.bf16.gmra.mxu1 %vm303_vm2, %v292_v29 }
  0xfe   :  { %v254_v35 = vadd.f32 %v5103_v37, %v253_v34  ;;  %v284_v36 = vmax.f32 %v262_v32, 0.0  ;;  %v4578_v37 = vld [vmem:[%s6550_s8] sm:$0xff]   ;;  %s4914_s8 = smov 96  }
  0xff   :  { %4281 = vmatprep.subr.bf16.mxu1 %v4578_v37 }
 0x100   :  { %v282_v39 = vmax.f32 %v254_v35, 0.0  ;;  %v294_v42 = vpack.c.bf16 %v284_v36, %v283_v40  ;;  %4282 = vmatpush3.bf16.msra.mxu1 %v4578_v37  ;;  %v465_v35 = vld [vmem:[%s6553_s2] sm:$0xff] }
 0x101   :  { %4299 = vmatprep.subr.bf16.mxu1 %v4579_v44 }
 0x102   :  { %v293_v41 = vpack.c.bf16 %v282_v39, %v281_v38  ;;  %v466_v38 = vld [vmem:[%s6553_s2 + $0x8] sm:$0xff] }
 0x104   :  { %4275 = vmatprep.mubr.msk.bf16.mxu1 %vm303_vm2, %v293_v41 }
 0x105   :  { %4276 = vmatmul.mubr.msk.bf16.gmra.mxu1 %vm303_vm2, %v294_v42 }
 0x1a5   :  { %v4261_v45 = vpop.f32.mrf.mxu1 }
 0x1a6   :  { %v5153_v53 = vadd.f32 %v4261_v45, %v3916_v48 }
 0x1a7   :  { %v372_v46 = vpop.f32.mrf.mxu1 }
 0x1a8   :  { %v5149_v51 = vadd.f32 %v3916_v48, %v372_v46  ;;  %6592 = vst [vmem:[#allocation6_spill] sm:$0xff] %v5153_v53 }
 0x1a9   :  { %v4262_v47 = vpop.f32.mrf.mxu1 }
 0x1aa   :  { %v5147_v49 = vadd.f32 %v4262_v47, %v3916_v48  ;;  %6590 = vst [vmem:[#allocation4_spill] sm:$0xff] %v5149_v51 }
 0x1ab   :  { %v375_v50 = vpop.f32.mrf.mxu1 }
 0x1ac   :  { %6589 = vst [vmem:[#allocation3_spill] sm:$0xff] %v5147_v49  ;;  %v5151_v52 = vadd.f32 %v3916_v48, %v375_v50  ;;  %v454_v56 = vpack.c.bf16 %v5147_v49, %v5153_v53 }
 0x1ad   :  { %v4265_v54 = vpop.f32.mrf.mxu1 }
 0x1ae   :  { %6591 = vst [vmem:[#allocation5_spill] sm:$0xff] %v5151_v52  ;;  %v453_v55 = vpack.c.bf16 %v5151_v52, %v5149_v51  ;;  %v5170_v0 = vadd.f32 %v4265_v54, %v3916_v48 }
 0x1af   :  { %v388_v57 = vpop.f32.mrf.mxu1 }
 0x1b0   :  { %4283 = vmatprep.mubr.msk.bf16.mxu1 %vm493_vm3, %v453_v55  ;;  %v5166_v62 = vadd.f32 %v3916_v48, %v388_v57  ;;  %6596 = vst [vmem:[#allocation10_spill] sm:$0xff] %v5170_v0 }
 0x1b1   :  { %v4266_v59 = vpop.f32.mrf.mxu1  ;;  %4284 = vmatmul.mubr.msk.bf16.vlgmr.msra.gmra.mxu1 %vm493_vm3, %v454_v56 }
 0x1b2   :  { %4300 = vmatpush3.bf16.msra.mxu1 %v4579_v44  ;;  %v5164_v60 = vadd.f32 %v4266_v59, %v3916_v48  ;;  %6594 = vst [vmem:[#allocation8_spill] sm:$0xff] %v5166_v62 }
 0x1b3   :  { %v391_v61 = vpop.f32.mrf.mxu1  ;;  %4301 = vmatprep.subr.bf16.mxu1 %v4580_v58 }
 0x1b4   :  { %6593 = vst [vmem:[#allocation7_spill] sm:$0xff] %v5164_v60  ;;  %v5168_v63 = vadd.f32 %v3916_v48, %v391_v61  ;;  %v456_v3 = vpack.c.bf16 %v5164_v60, %v5170_v0  ;;  %v619_v61 = vld [vmem:[%s6554_s3] sm:$0xff] }
 0x1b5   :  { %v4269_v1 = vpop.f32.mrf.mxu1 }
 0x1b6   :  { %6595 = vst [vmem:[#allocation9_spill] sm:$0xff] %v5168_v63  ;;  %v455_v2 = vpack.c.bf16 %v5168_v63, %v5166_v62  ;;  %4302 = vmatpush3.bf16.msra.mxu1 %v4580_v58  ;;  %v5184_v10 = vadd.f32 %v4269_v1, %v3916_v48  ;;  %v622_v1 = vld [vmem:[%s6554_s3 + $0x18] sm:$0xff] }
 0x1b7   :  { %v404_v4 = vpop.f32.mrf.mxu1 }
 0x1b8   :  { %4287 = vmatprep.mubr.msk.bf16.mxu1 %vm493_vm3, %v455_v2  ;;  %v5180_v8 = vadd.f32 %v3916_v48, %v404_v4  ;;  %6600 = vst [vmem:[#allocation14_spill] sm:$0xff] %v5184_v10  ;;  %v621_v4 = vld [vmem:[%s6554_s3 + $0x10] sm:$0xff] }
 0x1b9   :  { %v4270_v5 = vpop.f32.mrf.mxu1  ;;  %4288 = vmatmul.mubr.msk.bf16.gmra.mxu1 %vm493_vm3, %v456_v3  ;;  %v620_v3 = vld [vmem:[%s6554_s3 + $0x8] sm:$0xff] }
 0x1ba   :  { %v5178_v6 = vadd.f32 %v4270_v5, %v3916_v48  ;;  %6598 = vst [vmem:[#allocation12_spill] sm:$0xff] %v5180_v8 }
 0x1bb   :  { %v407_v7 = vpop.f32.mrf.mxu1 }
 0x1bc   :  { %6597 = vst [vmem:[#allocation11_spill] sm:$0xff] %v5178_v6  ;;  %v5182_v9 = vadd.f32 %v3916_v48, %v407_v7  ;;  %v458_v13 = vpack.c.bf16 %v5178_v6, %v5184_v10 }
 0x1bd   :  { %v4273_v11 = vpop.f32.mrf.mxu1 }
 0x1be   :  { %6599 = vst [vmem:[#allocation13_spill] sm:$0xff] %v5182_v9  ;;  %v457_v12 = vpack.c.bf16 %v5182_v9, %v5180_v8  ;;  %v5198_v20 = vadd.f32 %v4273_v11, %v3916_v48 }
 0x1bf   :  { %v420_v14 = vpop.f32.mrf.mxu1 }
 0x1c0   :  { %4291 = vmatprep.mubr.msk.bf16.mxu1 %vm493_vm3, %v457_v12  ;;  %v5194_v18 = vadd.f32 %v3916_v48, %v420_v14  ;;  %6604 = vst [vmem:[#allocation18_spill] sm:$0xff] %v5198_v20 }
 0x1c1   :  { %v4274_v15 = vpop.f32.mrf.mxu1  ;;  %4292 = vmatmul.mubr.msk.bf16.gmra.mxu1 %vm493_vm3, %v458_v13 }
 0x1c2   :  { %v5192_v16 = vadd.f32 %v4274_v15, %v3916_v48  ;;  %6602 = vst [vmem:[#allocation16_spill] sm:$0xff] %v5194_v18  ;;  %v468_v15 = vld [vmem:[%s6553_s2 + $0x18] sm:$0xff] }
 0x1c3   :  { %v423_v17 = vpop.f32.mrf.mxu1 }
 0x1c4   :  { %6601 = vst [vmem:[#allocation15_spill] sm:$0xff] %v5192_v16  ;;  %v5196_v19 = vadd.f32 %v3916_v48, %v423_v17  ;;  %v460_v23 = vpack.c.bf16 %v5192_v16, %v5198_v20  ;;  %v470_v17 = vld [vmem:[%s6553_s2 + $0x28] sm:$0xff] }
 0x1c5   :  { %v4277_v21 = vpop.f32.mrf.mxu1 }
 0x1c6   :  { %6603 = vst [vmem:[#allocation17_spill] sm:$0xff] %v5196_v19  ;;  %v459_v22 = vpack.c.bf16 %v5196_v19, %v5194_v18  ;;  %v445_v30 = vadd.f32 %v4277_v21, %v3916_v48 }
 0x1c7   :  { %v436_v24 = vpop.f32.mrf.mxu1 }
 0x1c8   :  { %4295 = vmatprep.mubr.msk.bf16.mxu1 %vm493_vm3, %v459_v22  ;;  %v437_v28 = vadd.f32 %v3916_v48, %v436_v24 }
 0x1c9   :  { %v4278_v25 = vpop.f32.mrf.mxu1  ;;  %4296 = vmatmul.mubr.msk.bf16.gmra.mxu1 %vm493_vm3, %v460_v23  ;;  %v467_v23 = vld [vmem:[%s6553_s2 + $0x10] sm:$0xff] }
 0x1ca   :  { %v448_v26 = vadd.f32 %v4278_v25, %v3916_v48  ;;  %v469_v25 = vld [vmem:[%s6553_s2 + $0x20] sm:$0xff] }
 0x1cb   :  { %v439_v27 = vpop.f32.mrf.mxu1 }
 0x1cc   :  { %v440_v29 = vadd.f32 %v3916_v48, %v439_v27  ;;  %v452_v32 = vpack.c.bf16 %v448_v26, %v445_v30  ;;  %v472_v30 = vld [vmem:[%s6553_s2 + $0x38] sm:$0xff] }
 0x1ce   :  { %v451_v31 = vpack.c.bf16 %v440_v29, %v437_v28 }
 0x1d0   :  { %4303 = vmatprep.mubr.msk.bf16.mxu1 %vm493_vm3, %v451_v31 }
 0x1d1   :  { %4304 = vmatmul.mubr.msk.bf16.vlgmr.msra.gmra.mxu1 %vm493_vm3, %v452_v32  ;;  %v474_v32 = vld [vmem:[%s6553_s2 + $0x48] sm:$0xff] }
 0x271   :  { %v4285_v33 = vpop.f32.mrf.mxu1 }
 0x272   :  { %v561_v27 = vadd.f32 %v4285_v33, %v467_v23  ;;  %v471_v33 = vld [vmem:[%s6553_s2 + $0x30] sm:$0xff] }
 0x273   :  { %v552_v34 = vpop.f32.mrf.mxu1 }
 0x274   :  { %v553_v40 = vadd.f32 %v552_v34, %v465_v35 }
 0x275   :  { %v4286_v36 = vpop.f32.mrf.mxu1 }
 0x276   :  { %v564_v24 = vadd.f32 %v4286_v36, %v468_v15  ;;  %v473_v36 = vld [vmem:[%s6553_s2 + $0x40] sm:$0xff] }
 0x277   :  { %v555_v39 = vpop.f32.mrf.mxu1 }
 0x278   :  { %v556_v41 = vadd.f32 %v555_v39, %v466_v38  ;;  %v5254_v29 = vpack.c.bf16 %v564_v24, %v561_v27 }
 0x279   :  { %v4289_v42 = vpop.f32.mrf.mxu1 }
 0x27a   :  { %v5214_v43 = vpack.c.bf16 %v556_v41, %v553_v40  ;;  %v577_v39 = vadd.f32 %v4289_v42, %v471_v33  ;;  %v475_v42 = vld [vmem:[%s6553_s2 + $0x50] sm:$0xff] }
 0x27b   :  { %v568_v37 = vpop.f32.mrf.mxu1 }
 0x27c   :  { %4309 = vmatprep.mubr.msk.bf16.mxu0 %vm303_vm2, %v5214_v43  ;;  %v569_v28 = vadd.f32 %v568_v37, %v469_v25  ;;  %v476_v37 = vld [vmem:[%s6553_s2 + $0x58] sm:$0xff] }
 0x27d   :  { %v4290_v44 = vpop.f32.mrf.mxu1 }
 0x27e   :  { %v580_v35 = vadd.f32 %v4290_v44, %v472_v30 }
 0x27f   :  { %v571_v45 = vpop.f32.mrf.mxu1 }
 0x280   :  { %v572_v26 = vadd.f32 %v571_v45, %v470_v17  ;;  %v5276_v41 = vpack.c.bf16 %v580_v35, %v577_v39 }
 0x281   :  { %v4293_v46 = vpop.f32.mrf.mxu1 }
 0x282   :  { %v5259_v31 = vpack.c.bf16 %v572_v26, %v569_v28 }
 0x283   :  { %v584_v47 = vpop.f32.mrf.mxu1 }
 0x284   :  { %v585_v40 = vadd.f32 %v584_v47, %v473_v36  ;;  %v477_v47 = vld [vmem:[%s6553_s2 + $0x60] sm:$0xff] }
 0x285   :  { %v4294_v48 = vpop.f32.mrf.mxu1 }
 0x286   :  { %v596_v44 = vadd.f32 %v4294_v48, %v476_v37  ;;  %v479_v48 = vld [vmem:[%s6553_s2 + $0x70] sm:$0xff] }
 0x287   :  { %v587_v50 = vpop.f32.mrf.mxu1 }
 0x288   :  { %v588_v38 = vadd.f32 %v587_v50, %v474_v32 }
 0x289   :  { %v5218_v54 = vpop.f32.mrf.mxu1 }
 0x28a   :  { %v5281_v45 = vpack.c.bf16 %v588_v38, %v585_v40 }
 0x28b   :  { %v600_v55 = vpop.f32.mrf.mxu1 }
 0x28d   :  { %v4298_v56 = vpop.f32.mrf.mxu1 }
 0x28f   :  { %v603_v57 = vpop.f32.mrf.mxu1 }
 0x291   :  { %v4305_v58 = vpop.f32.mrf.mxu1 }
 0x292   :  { %v684_v13 = vadd.f32 %v4305_v58, %v621_v4  ;;  %v478_v58 = vld [vmem:[%s6553_s2 + $0x68] sm:$0xff] }
 0x293   :  { %v675_v59 = vpop.f32.mrf.mxu1  ;;  %v604_v50 = vadd.f32 %v603_v57, %v478_v58 }
 0x294   :  { %v676_v7 = vadd.f32 %v675_v59, %v619_v61  ;;  %v593_v59 = vadd.f32 %v4293_v46, %v475_v42  ;;  %v601_v61 = vadd.f32 %v600_v55, %v477_v47  ;;  %v609_v55 = vadd.f32 %v5218_v54, %v479_v48 }
 0x295   :  { %v4306_v2 = vpop.f32.mrf.mxu1 }
 0x296   :  { %v687_v11 = vadd.f32 %v4306_v2, %v622_v1  ;;  %v5296_v1 = vpack.c.bf16 %v596_v44, %v593_v59  ;;  %v480_v2 = vld [vmem:[%s6553_s2 + $0x78] sm:$0xff]  ;;  %s4913_s2 = smov 120  }
 0x297   :  { %v678_v5 = vpop.f32.mrf.mxu1  ;;  %v612_v46 = vadd.f32 %v4298_v56, %v480_v2 }
 0x298   :  { %v679_v12 = vadd.f32 %v678_v5, %v620_v3  ;;  %v5240_v21 = vpack.c.bf16 %v687_v11, %v684_v13  ;;  %v5301_v3 = vpack.c.bf16 %v604_v50, %v601_v61 }
 0x299   :  { %v5311_v57 = vpack.c.bf16 %v612_v46, %v609_v55 }
 0x29a   :  { %v5232_v14 = vpack.c.bf16 %v679_v12, %v676_v7  ;;  %v793_v34 = vsel %vm303_vm2, %v5240_v21, 0 }
 0x29c   :  { %4556 = vmatprep.subr.msk.bf16.mxu0 %vm303_vm2, %v5232_v14  ;;  %v713_v22 = vsel %vm303_vm2, %v5232_v14, 0 }
 0x29d   :  { %4308 = vmatpush3.bf16.xpose.msra.mxu0 %v713_v22 }
 0x29e   :  { %4557 = vmatprep.subr.msk.bf16.mxu0 %vm303_vm2, %v5240_v21 }
 0x2a4   :  { %4310 = vmatmul.mubr.msk.bf16.vlgmr.msra.gmra.mxu0 %vm303_vm2, %v5254_v29 }
 0x2a5   :  { %4313 = vmatprep.mubr.msk.bf16.mxu0 %vm303_vm2, %v5259_v31  ;;  %4318 = vmatpush3.bf16.xpose.msra.mxu0 %v793_v34 }
 0x2ac   :  { %4314 = vmatmul.mubr.msk.bf16.gmra.mxu0 %vm303_vm2, %v5276_v41 }
 0x2ad   :  { %4319 = vmatprep.mubr.msk.bf16.mxu0 %vm303_vm2, %v5281_v45 }
 0x2b4   :  { %4320 = vmatmul.mubr.msk.bf16.vlgmr.msra.gmra.mxu0 %vm303_vm2, %v5296_v1 }
 0x2b5   :  { %4323 = vmatprep.mubr.msk.bf16.mxu0 %vm303_vm2, %v5301_v3 }
 0x2bc   :  { %4324 = vmatmul.mubr.msk.bf16.gmra.mxu0 %vm303_vm2, %v5311_v57 }
 0x364   :  { %v4311_v4 = vpop.f32.mrf.mxu0 }
 0x365   :  { %v867_v5 = vsel %vm860_vm4, %v4311_v4, -inf }
 0x366   :  { %868 = vmax.xlane.f32.xlu1 %v867_v5  ;;  %v749_v7 = vpop.f32.mrf.mxu0 }
 0x367   :  { %v861_v11 = vsel %vm860_vm4, %v749_v7, -inf }
 0x368   :  { %862 = vmax.xlane.f32.xlu0 %v861_v11  ;;  %v4312_v12 = vpop.f32.mrf.mxu0 }
 0x369   :  { %v870_v13 = vsel %vm860_vm4, %v4312_v12, -inf }
 0x36a   :  { %871 = vmax.xlane.f32.xlu1 %v870_v13  ;;  %v752_v56 = vpop.f32.mrf.mxu0 }
 0x36b   :  { %v864_v54 = vsel %vm860_vm4, %v752_v56, -inf }
 0x36c   :  { %865 = vmax.xlane.f32.xlu0 %v864_v54  ;;  %v5319_v15 = vpop.f32.mrf.mxu0 }
 0x36d   :  { %v879_v26 = vsel %vm860_vm4, %v5319_v15, -inf }
 0x36e   :  { %v5321_v17 = vpop.f32.mrf.mxu0 }
 0x36f   :  { %v873_v22 = vsel %vm860_vm4, %v5321_v17, -inf }
 0x370   :  { %874 = vmax.xlane.f32.xlu0 %v873_v22  ;;  %v4316_v23 = vpop.f32.mrf.mxu0 }
 0x371   :  { %v882_v24 = vsel %vm860_vm4, %v4316_v23, -inf }
 0x372   :  { %883 = vmax.xlane.f32.xlu1 %v882_v24  ;;  %v5326_v25 = vpop.f32.mrf.mxu0 }
 0x373   :  { %v876_v28 = vsel %vm860_vm4, %v5326_v25, -inf }
 0x374   :  { %880 = vmax.xlane.f32.xlu0 %v879_v26  ;;  %v5330_v27 = vpop.f32.mrf.mxu0 }
 0x375   :  { %v891_v36 = vsel %vm860_vm4, %v5330_v27, -inf }
 0x376   :  { %877 = vmax.xlane.f32.xlu1 %v876_v28  ;;  %v5334_v30 = vpop.f32.mrf.mxu0 }
 0x377   :  { %v885_v32 = vsel %vm860_vm4, %v5334_v30, -inf }
 0x378   :  { %886 = vmax.xlane.f32.xlu0 %v885_v32  ;;  %v5338_v34 = vpop.f32.mrf.mxu0 }
 0x379   :  { %v894_v33 = vsel %vm860_vm4, %v5338_v34, -inf }
 0x37a   :  { %895 = vmax.xlane.f32.xlu1 %v894_v33  ;;  %v5342_v35 = vpop.f32.mrf.mxu0 }
 0x37b   :  { %v888_v39 = vsel %vm860_vm4, %v5342_v35, -inf }
 0x37c   :  { %892 = vmax.xlane.f32.xlu0 %v891_v36  ;;  %v5346_v38 = vpop.f32.mrf.mxu0 }
 0x37d   :  { %v903_v58 = vsel %vm860_vm4, %v5346_v38, -inf }
 0x37e   :  { %889 = vmax.xlane.f32.xlu1 %v888_v39  ;;  %v5350_v40 = vpop.f32.mrf.mxu0 }
 0x37f   :  { %v897_v37 = vsel %vm860_vm4, %v5350_v40, -inf }
 0x380   :  { %898 = vmax.xlane.f32.xlu0 %v897_v37  ;;  %v5362_v42 = vpop.f32.mrf.mxu0 }
 0x381   :  { %v906_v44 = vsel %vm860_vm4, %v5362_v42, -inf }
 0x382   :  { %v5366_v47 = vpop.f32.mrf.mxu0 }
 0x383   :  { %v900_v50 = vsel %vm860_vm4, %v5366_v47, -inf }
 0x384   :  { %904 = vmax.xlane.f32.xlu0 %v903_v58 }
 0x38f   :  { %1235 = vrot.lane.b32.xlu1 %v5232_v14, %s4913_s2 }
 0x393   :  { %1127 = vrot.lane.b32.xlu1 %v5240_v21, %s4914_s8 }
 0x39a   :  { %1046 = vrot.lane.b32.xlu0 %v5232_v14, %s4914_s8 }
 0x39e   :  { %1229 = vrot.lane.b32.xlu0 %v5254_v29, %s4913_s2 }
 0x3b7   :  { %907 = vmax.xlane.f32.xlu1 %v906_v44 }
 0x3bb   :  { %901 = vmax.xlane.f32.xlu1 %v900_v50 }
 0x3cc   :  { %1227 = vrot.lane.b32.xlu1 %v5214_v43, %s4913_s2 }
 0x3d0   :  { %1231 = vrot.lane.b32.xlu1 %v5259_v31, %s4913_s2 }
 0x3ef   :  { %v869_v59 = vpop.xlane.xlu1 %868 }
 0x3f0   :  { %v911_v61 = vsub.f32 %v4311_v4, %v869_v59 }
 0x3f1   :  { %v863_v2 = vpop.xlane.xlu0 %862 }
 0x3f2   :  { %v929_v48 = vmul.f32 1.442695, %v911_v61  ;;  %v909_v46 = vsub.f32 %v749_v7, %v863_v2 }
 0x3f3   :  { %v872_v55 = vpop.xlane.xlu1 %871 }
 0x3f4   :  { %4593 = vpow2.f32 %v929_v48  ;;  %v925_v5 = vmul.f32 1.442695, %v909_v46  ;;  %v912_v11 = vsub.f32 %v4312_v12, %v872_v55 }
 0x3f5   :  { %v866_v13 = vpop.xlane.xlu0 %865 }
 0x3f6   :  { %4595 = vpow2.f32 %v925_v5  ;;  %v931_v54 = vmul.f32 1.442695, %v912_v11  ;;  %v910_v22 = vsub.f32 %v752_v56, %v866_v13 }
 0x3f8   :  { %4597 = vpow2.f32 %v931_v54  ;;  %v927_v24 = vmul.f32 1.442695, %v910_v22 }
 0x3f9   :  { %v875_v26 = vpop.xlane.xlu0 %874 }
 0x3fa   :  { %4599 = vpow2.f32 %v927_v24  ;;  %v913_v28 = vsub.f32 %v5321_v17, %v875_v26 }
 0x3fb   :  { %v884_v32 = vpop.xlane.xlu1 %883 }
 0x3fc   :  { %v916_v33 = vsub.f32 %v4316_v23, %v884_v32  ;;  %v933_v39 = vmul.f32 1.442695, %v913_v28 }
 0x3fd   :  { %v881_v4 = vpop.xlane.xlu0 %880 }
 0x3fe   :  { %v939_v36 = vmul.f32 1.442695, %v916_v33  ;;  %v915_v7 = vsub.f32 %v5319_v15, %v881_v4 }
 0x3ff   :  { %v878_v37 = vpop.xlane.xlu1 %877 }
 0x400   :  { %4601 = vpow2.f32 %v939_v36  ;;  %v937_v12 = vmul.f32 1.442695, %v915_v7  ;;  %v914_v58 = vsub.f32 %v5326_v25, %v878_v37 }
 0x401   :  { %v5377_v44 = vpop.eup %4593  ;;  %v887_v56 = vpop.xlane.xlu0 %886 }
 0x402   :  { %4603 = vpow2.f32 %v937_v12  ;;  %v935_v50 = vmul.f32 1.442695, %v914_v58  ;;  %v963_v17 = vsel %vm860_vm4, %v5377_v44, 0.0  ;;  %v917_v23 = vsub.f32 %v5334_v30, %v887_v56 }
 0x403   :  { %v5381_v59 = vpop.eup %4595  ;;  %4605 = vpow2.f32 %v933_v39  ;;  %v896_v15 = vpop.xlane.xlu1 %895  ;;  %964 = vadd.xlane.f32.xlu0 %v963_v17 }
 0x404   :  { %4607 = vpow2.f32 %v935_v50  ;;  %v920_v61 = vsub.f32 %v5338_v34, %v896_v15  ;;  %v957_v55 = vsel %vm860_vm4, %v5381_v59, 0.0  ;;  %v941_v30 = vmul.f32 1.442695, %v917_v23 }
 0x405   :  { %v5385_v2 = vpop.eup %4597  ;;  %v893_v25 = vpop.xlane.xlu0 %892 }
 0x406   :  { %v947_v48 = vmul.f32 1.442695, %v920_v61  ;;  %v919_v46 = vsub.f32 %v5330_v27, %v893_v25  ;;  %v966_v5 = vsel %vm860_vm4, %v5385_v2, 0.0 }
 0x407   :  { %v5392_v11 = vpop.eup %4599  ;;  %v890_v13 = vpop.xlane.xlu1 %889  ;;  %958 = vadd.xlane.f32.xlu0 %v957_v55  ;;  %967 = vadd.xlane.f32.xlu1 %v966_v5 }
 0x408   :  { %4609 = vpow2.f32 %v947_v48  ;;  %v945_v34 = vmul.f32 1.442695, %v919_v46  ;;  %v918_v54 = vsub.f32 %v5342_v35, %v890_v13  ;;  %v960_v27 = vsel %vm860_vm4, %v5392_v11, 0.0 }
 0x409   :  { %v899_v22 = vpop.xlane.xlu0 %898 }
 0x40a   :  { %4611 = vpow2.f32 %v945_v34  ;;  %v943_v24 = vmul.f32 1.442695, %v918_v54  ;;  %v921_v28 = vsub.f32 %v5350_v40, %v899_v22 }
 0x40b   :  { %4613 = vpow2.f32 %v941_v30  ;;  %v5397_v26 = vpop.permute.xlu1 %1235  ;;  %961 = vadd.xlane.f32.xlu1 %v960_v27 }
 0x40c   :  { %4615 = vpow2.f32 %v943_v24  ;;  %v949_v37 = vmul.f32 1.442695, %v921_v28 }
 0x40d   :  { %v5400_v32 = vpop.eup %4601  ;;  %v905_v33 = vpop.xlane.xlu0 %904 }
 0x40e   :  { %v923_v4 = vsub.f32 %v5346_v38, %v905_v33  ;;  %v978_v35 = vsel %vm860_vm4, %v5400_v32, 0.0 }
 0x40f   :  { %v5405_v36 = vpop.eup %4603  ;;  %v1128_v7 = vpop.permute.xlu1 %1127  ;;  %979 = vadd.xlane.f32.xlu1 %v978_v35 }
 0x410   :  { %v5407_v39 = vpop.eup %4605  ;;  %v953_v12 = vmul.f32 1.442695, %v923_v4  ;;  %4337 = vmatprep.subr.bf16.mxu0 %v1128_v7  ;;  %v975_v40 = vsel %vm860_vm4, %v5405_v36, 0.0 }
 0x411   :  { %v5411_v58 = vpop.eup %4607  ;;  %4338 = vmatpush3.bf16.msra.mxu0 %v1128_v7  ;;  %976 = vadd.xlane.f32.xlu0 %v975_v40  ;;  %v1047_v38 = vpop.permute.xlu0 %1046  ;;  %v969_v50 = vsel %vm860_vm4, %v5407_v39, 0.0 }
 0x412   :  { %4617 = vpow2.f32 %v953_v12  ;;  %4327 = vmatprep.subr.bf16.mxu1 %v1047_v38  ;;  %v972_v56 = vsel %vm860_vm4, %v5411_v58, 0.0 }
 0x413   :  { %4328 = vmatpush3.bf16.msra.mxu1 %v1047_v38  ;;  %973 = vadd.xlane.f32.xlu1 %v972_v56  ;;  %4619 = vpow2.f32 %v949_v37 }
 0x414   :  { %4558 = vmatprep.subr.msk.bf16.mxu1 %vm303_vm2, %v5397_v26 }
 0x415   :  { %v5419_v17 = vpop.eup %4609  ;;  %970 = vadd.xlane.f32.xlu0 %v969_v50  ;;  %v5465_v37 = vpop.permute.xlu0 %1229 }
 0x416   :  { %v990_v23 = vsel %vm860_vm4, %v5419_v17, 0.0 }
 0x417   :  { %v5423_v15 = vpop.eup %4611  ;;  %991 = vadd.xlane.f32.xlu1 %v990_v23 }
 0x418   :  { %v5425_v61 = vpop.eup %4613  ;;  %v987_v25 = vsel %vm860_vm4, %v5423_v15, 0.0 }
 0x419   :  { %v5429_v48 = vpop.eup %4615  ;;  %988 = vadd.xlane.f32.xlu0 %v987_v25  ;;  %v981_v55 = vsel %vm860_vm4, %v5425_v61, 0.0 }
 0x41a   :  { %v984_v46 = vsel %vm860_vm4, %v5429_v48, 0.0 }
 0x41b   :  { %985 = vadd.xlane.f32.xlu1 %v984_v46 }
 0x41d   :  { %982 = vadd.xlane.f32.xlu0 %v981_v55 }
 0x41f   :  { %v5435_v5 = vpop.eup %4617 }
 0x420   :  { %v999_v30 = vsel %vm860_vm4, %v5435_v5, 0.0  ;;  %v5439_v13 = vpop.eup %4619 }
 0x421   :  { %1000 = vadd.xlane.f32.xlu0 %v999_v30  ;;  %v993_v34 = vsel %vm860_vm4, %v5439_v13, 0.0 }
 0x425   :  { %994 = vadd.xlane.f32.xlu0 %v993_v34 }
 0x43b   :  { %1233 = vrot.lane.b32.xlu0 %v5276_v41, %s4913_s2 }
 0x43f   :  { %1321 = vrot.lane.b32.xlu0 %v5281_v45, %s4913_s2 }
 0x440   :  { %v908_v54 = vpop.xlane.xlu1 %907 }
 0x441   :  { %v924_v22 = vsub.f32 %v5362_v42, %v908_v54 }
 0x443   :  { %v955_v24 = vmul.f32 1.442695, %v924_v22  ;;  %1325 = vrot.lane.b32.xlu0 %v5301_v3, %s4913_s2 }
 0x444   :  { %v902_v27 = vpop.xlane.xlu1 %901 }
 0x445   :  { %4621 = vpow2.f32 %v955_v24  ;;  %v922_v28 = vsub.f32 %v5366_v47, %v902_v27 }
 0x447   :  { %v951_v33 = vmul.f32 1.442695, %v922_v28 }
 0x448   :  { %v1228_v47 = vpop.permute.xlu1 %1227 }
 0x449   :  { %4623 = vpow2.f32 %v951_v33 }
 0x44c   :  { %v5467_v12 = vpop.permute.xlu1 %1231 }
 0x452   :  { %v5451_v4 = vpop.eup %4621 }
 0x453   :  { %v1002_v35 = vsel %vm860_vm4, %v5451_v4, 0.0 }
 0x454   :  { %1003 = vadd.xlane.f32.xlu1 %v1002_v35 }
 0x456   :  { %v5455_v7 = vpop.eup %4623 }
 0x457   :  { %v996_v42 = vsel %vm860_vm4, %v5455_v7, 0.0 }
 0x458   :  { %997 = vadd.xlane.f32.xlu1 %v996_v42 }
 0x469   :  { %1329 = vrot.lane.b32.xlu1 %v5240_v21, %s4913_s2 }
 0x46d   :  { %1323 = vrot.lane.b32.xlu1 %v5296_v1, %s4913_s2 }
 0x471   :  { %1327 = vrot.lane.b32.xlu1 %v5311_v57, %s4913_s2 }
 0x48c   :  { %v965_v40 = vpop.xlane.xlu0 %964 }
 0x490   :  { %v959_v38 = vpop.xlane.xlu0 %958  ;;  %v968_v56 = vpop.xlane.xlu1 %967 }
 0x491   :  { %4625 = vrcp.f32 %v968_v56 }
 0x492   :  { %4627 = vrcp.f32 %v959_v38 }
 0x493   :  { %4629 = vrcp.f32 %v965_v40 }
 0x494   :  { %v962_v50 = vpop.xlane.xlu1 %961 }
 0x495   :  { %4631 = vrcp.f32 %v962_v50 }
 0x498   :  { %v980_v23 = vpop.xlane.xlu1 %979 }
 0x49a   :  { %v977_v25 = vpop.xlane.xlu0 %976 }
 0x49b   :  { %4633 = vrcp.f32 %v977_v25 }
 0x49c   :  { %v974_v46 = vpop.xlane.xlu1 %973 }
 0x49d   :  { %4635 = vrcp.f32 %v974_v46 }
 0x49e   :  { %4637 = vrcp.f32 %v980_v23  ;;  %v971_v55 = vpop.xlane.xlu0 %970  ;;  %v4626_v30 = vpop.eup %4625 }
 0x49f   :  { %4639 = vrcp.f32 %v971_v55  ;;  %v4628_v34 = vpop.eup %4627  ;;  %v1024_v28 = vmul.f32 %v4626_v30, %v5385_v2  ;;  %v1250_v2 = vsel %vm303_vm2, %v5397_v26, 0 }
 0x4a0   :  { %v992_v54 = vpop.xlane.xlu1 %991  ;;  %v4630_v22 = vpop.eup %4629  ;;  %v1021_v33 = vmul.f32 %v4628_v34, %v5381_v59 }
 0x4a1   :  { %v1023_v40 = vmul.f32 %v4630_v22, %v5377_v44 }
 0x4a2   :  { %v4632_v24 = vpop.eup %4631  ;;  %v989_v27 = vpop.xlane.xlu0 %988 }
 0x4a3   :  { %v1022_v35 = vmul.f32 %v4632_v24, %v5392_v11  ;;  %4641 = vrcp.f32 %v989_v27  ;;  %v1038_v50 = vpack.c.bf16 %v1024_v28, %v1023_v40 }
 0x4a4   :  { %v986_v42 = vpop.xlane.xlu1 %985 }
 0x4a5   :  { %4643 = vrcp.f32 %v986_v42  ;;  %v1037_v38 = vpack.c.bf16 %v1022_v35, %v1021_v33 }
 0x4a6   :  { %4645 = vrcp.f32 %v992_v54  ;;  %v983_v56 = vpop.xlane.xlu0 %982 }
 0x4a7   :  { %4647 = vrcp.f32 %v983_v56  ;;  %4329 = vmatprep.mubr.msk.bf16.mxu1 %vm860_vm4, %v1037_v38 }
 0x4a8   :  { %4330 = vmatmul.mubr.msk.bf16.vlgmr.msra.gmra.mxu1 %vm860_vm4, %v1038_v50  ;;  %v4634_v59 = vpop.eup %4633 }
 0x4a9   :  { %4348 = vmatpush3.bf16.xpose.msra.mxu1 %v1250_v2  ;;  %v1027_v44 = vmul.f32 %v4634_v59, %v5405_v36 }
 0x4aa   :  { %v4636_v11 = vpop.eup %4635  ;;  %v1001_v28 = vpop.xlane.xlu0 %1000 }
 0x4ab   :  { %v4638_v23 = vpop.eup %4637  ;;  %v1026_v55 = vmul.f32 %v4636_v11, %v5411_v58 }
 0x4ac   :  { %v4640_v25 = vpop.eup %4639  ;;  %v1028_v30 = vmul.f32 %v4638_v23, %v5400_v32 }
 0x4ad   :  { %v1025_v46 = vmul.f32 %v4640_v25, %v5407_v39 }
 0x4ae   :  { %v1040_v54 = vpack.c.bf16 %v1028_v30, %v1027_v44 }
 0x4af   :  { %v1039_v34 = vpack.c.bf16 %v1026_v55, %v1025_v46 }
 0x4b0   :  { %v4642_v22 = vpop.eup %4641 }
 0x4b1   :  { %4333 = vmatprep.mubr.msk.bf16.mxu1 %vm860_vm4, %v1039_v34  ;;  %v1031_v36 = vmul.f32 %v4642_v22, %v5423_v15 }
 0x4b2   :  { %v4644_v24 = vpop.eup %4643  ;;  %4334 = vmatmul.mubr.msk.bf16.gmra.mxu1 %vm860_vm4, %v1040_v54 }
 0x4b3   :  { %v4646_v26 = vpop.eup %4645  ;;  %4349 = vmatprep.mubr.msk.bf16.mxu1 %vm303_vm2, %v1228_v47  ;;  %v1030_v58 = vmul.f32 %v4644_v24, %v5429_v48  ;;  %v995_v47 = vpop.xlane.xlu0 %994 }
 0x4b4   :  { %v4648_v27 = vpop.eup %4647  ;;  %v1032_v32 = vmul.f32 %v4646_v26, %v5419_v17 }
 0x4b5   :  { %v1029_v39 = vmul.f32 %v4648_v27, %v5425_v61 }
 0x4b6   :  { %v1042_v35 = vpack.c.bf16 %v1032_v32, %v1031_v36 }
 0x4b7   :  { %v1041_v33 = vpack.c.bf16 %v1030_v58, %v1029_v39  ;;  %v1234_v15 = vpop.permute.xlu0 %1233 }
 0x4b9   :  { %4339 = vmatprep.mubr.msk.bf16.mxu0 %vm860_vm4, %v1041_v33 }
 0x4ba   :  { %4340 = vmatmul.mubr.msk.bf16.vlgmr.msra.gmra.mxu0 %vm860_vm4, %v1042_v35  ;;  %4350 = vmatmul.mubr.msk.bf16.vlgmr.msra.gmra.mxu1 %vm303_vm2, %v5465_v37 }
 0x4bb   :  { %4353 = vmatprep.mubr.msk.bf16.mxu1 %vm303_vm2, %v5467_v12  ;;  %v1322_v25 = vpop.permute.xlu0 %1321 }
 0x4bf   :  { %v1326_v46 = vpop.permute.xlu0 %1325 }
 0x4c2   :  { %4354 = vmatmul.mubr.msk.bf16.gmra.mxu1 %vm303_vm2, %v1234_v15 }
 0x4dd   :  { %v1004_v61 = vpop.xlane.xlu1 %1003 }
 0x4de   :  { %4649 = vrcp.f32 %v1004_v61 }
 0x4df   :  { %4651 = vrcp.f32 %v995_v47 }
 0x4e0   :  { %4653 = vrcp.f32 %v1001_v28 }
 0x4e1   :  { %v998_v17 = vpop.xlane.xlu1 %997 }
 0x4e2   :  { %4655 = vrcp.f32 %v998_v17 }
 0x4e5   :  { %v1330_v48 = vpop.permute.xlu1 %1329 }
 0x4e6   :  { %4559 = vmatprep.subr.msk.bf16.mxu0 %vm303_vm2, %v1330_v48  ;;  %v1344_v42 = vsel %vm303_vm2, %v1330_v48, 0 }
 0x4e7   :  { %4358 = vmatpush3.bf16.xpose.msra.mxu0 %v1344_v42 }
 0x4e9   :  { %v1324_v44 = vpop.permute.xlu1 %1323 }
 0x4eb   :  { %v4650_v37 = vpop.eup %4649 }
 0x4ec   :  { %v4652_v40 = vpop.eup %4651  ;;  %v1036_v12 = vmul.f32 %v4650_v37, %v5451_v4 }
 0x4ed   :  { %v4654_v38 = vpop.eup %4653  ;;  %v1033_v50 = vmul.f32 %v4652_v40, %v5439_v13  ;;  %v1328_v13 = vpop.permute.xlu1 %1327 }
 0x4ee   :  { %v1035_v59 = vmul.f32 %v4654_v38, %v5435_v5 }
 0x4ef   :  { %v4656_v56 = vpop.eup %4655 }
 0x4f0   :  { %v1034_v2 = vmul.f32 %v4656_v56, %v5455_v7  ;;  %v1044_v23 = vpack.c.bf16 %v1036_v12, %v1035_v59 }
 0x4f2   :  { %v1043_v11 = vpack.c.bf16 %v1034_v2, %v1033_v50 }
 0x4f4   :  { %4343 = vmatprep.mubr.msk.bf16.mxu0 %vm860_vm4, %v1043_v11 }
 0x4f5   :  { %4344 = vmatmul.mubr.msk.bf16.gmra.mxu0 %vm860_vm4, %v1044_v23 }
 0x4f6   :  { %4359 = vmatprep.mubr.msk.bf16.mxu0 %vm303_vm2, %v1322_v25 }
 0x4fd   :  { %4360 = vmatmul.mubr.msk.bf16.vlgmr.msra.gmra.mxu0 %vm303_vm2, %v1324_v44 }
 0x4fe   :  { %4363 = vmatprep.mubr.msk.bf16.mxu0 %vm303_vm2, %v1326_v46 }
 0x505   :  { %4364 = vmatmul.mubr.msk.bf16.gmra.mxu0 %vm303_vm2, %v1328_v13 }
 0x568   :  { %v4331_v4 = vpop.f32.mrf.mxu1 }
 0x569   :  { %1209 = vst.msk [vmem:[#allocation2 + $0x10] sm:$0xff] %vm303_vm2, %v4331_v4 }
 0x56a   :  { %v1095_v5 = vpop.f32.mrf.mxu1 }
 0x56b   :  { %1207 = vst.msk [vmem:[#allocation2] sm:$0xff] %vm303_vm2, %v1095_v5 }
 0x56c   :  { %v4332_v7 = vpop.f32.mrf.mxu1 }
 0x56d   :  { %1210 = vst.msk [vmem:[#allocation2 + $0x18] sm:$0xff] %vm303_vm2, %v4332_v7 }
 0x56e   :  { %v1098_v55 = vpop.f32.mrf.mxu1 }
 0x56f   :  { %1208 = vst.msk [vmem:[#allocation2 + $0x8] sm:$0xff] %vm303_vm2, %v1098_v55 }
 0x572   :  { %v4335_v30 = vpop.f32.mrf.mxu1 }
 0x573   :  { %1213 = vst.msk [vmem:[#allocation2 + $0x30] sm:$0xff] %vm303_vm2, %v4335_v30 }
 0x574   :  { %v1111_v34 = vpop.f32.mrf.mxu1 }
 0x575   :  { %1211 = vst.msk [vmem:[#allocation2 + $0x20] sm:$0xff] %vm303_vm2, %v1111_v34 }
 0x576   :  { %v4336_v54 = vpop.f32.mrf.mxu1 }
 0x577   :  { %1214 = vst.msk [vmem:[#allocation2 + $0x38] sm:$0xff] %vm303_vm2, %v4336_v54 }
 0x578   :  { %v1114_v22 = vpop.f32.mrf.mxu1 }
 0x579   :  { %1212 = vst.msk [vmem:[#allocation2 + $0x28] sm:$0xff] %vm303_vm2, %v1114_v22 }
 0x57a   :  { %v4341_v24 = vpop.f32.mrf.mxu0  ;;  %v5515_v26 = vpop.f32.mrf.mxu1 }
 0x57b   :  { %1217 = vst.msk [vmem:[#allocation2 + $0x50] sm:$0xff] %vm303_vm2, %v4341_v24  ;;  %v1417_v27 = vsel %vm860_vm4, %v5515_v26, -inf }
 0x57c   :  { %1418 = vmax.xlane.f32.xlu0 %v1417_v27  ;;  %v1176_v36 = vpop.f32.mrf.mxu0  ;;  %v5520_v28 = vpop.f32.mrf.mxu1 }
 0x57d   :  { %1215 = vst.msk [vmem:[#allocation2 + $0x40] sm:$0xff] %vm303_vm2, %v1176_v36  ;;  %v1411_v32 = vsel %vm860_vm4, %v5520_v28, -inf }
 0x57e   :  { %v4342_v39 = vpop.f32.mrf.mxu0  ;;  %v5523_v58 = vpop.f32.mrf.mxu1 }
 0x57f   :  { %1218 = vst.msk [vmem:[#allocation2 + $0x58] sm:$0xff] %vm303_vm2, %v4342_v39  ;;  %v1420_v61 = vsel %vm860_vm4, %v5523_v58, -inf }
 0x580   :  { %1412 = vmax.xlane.f32.xlu0 %v1411_v32  ;;  %v1179_v33 = vpop.f32.mrf.mxu0  ;;  %v5528_v35 = vpop.f32.mrf.mxu1 }
 0x581   :  { %1216 = vst.msk [vmem:[#allocation2 + $0x48] sm:$0xff] %vm303_vm2, %v1179_v33  ;;  %v1414_v47 = vsel %vm860_vm4, %v5528_v35, -inf }
 0x582   :  { %1415 = vmax.xlane.f32.xlu1 %v1414_v47  ;;  %v5533_v15 = vpop.f32.mrf.mxu1 }
 0x583   :  { %v1429_v38 = vsel %vm860_vm4, %v5533_v15, -inf }
 0x584   :  { %1421 = vmax.xlane.f32.xlu0 %v1420_v61  ;;  %v5537_v17 = vpop.f32.mrf.mxu1 }
 0x585   :  { %v1423_v42 = vsel %vm860_vm4, %v5537_v17, -inf }
 0x586   :  { %v5539_v48 = vpop.f32.mrf.mxu1 }
 0x587   :  { %v1432_v37 = vsel %vm860_vm4, %v5539_v48, -inf }
 0x588   :  { %1424 = vmax.xlane.f32.xlu0 %v1423_v42  ;;  %1433 = vmax.xlane.f32.xlu1 %v1432_v37  ;;  %v5545_v40 = vpop.f32.mrf.mxu1 }
 0x589   :  { %v1426_v56 = vsel %vm860_vm4, %v5545_v40, -inf }
 0x58c   :  { %1430 = vmax.xlane.f32.xlu0 %v1429_v38  ;;  %1427 = vmax.xlane.f32.xlu1 %v1426_v56 }
 0x5b5   :  { %v4345_v12 = vpop.f32.mrf.mxu0 }
 0x5b6   :  { %1221 = vst.msk [vmem:[#allocation2 + $0x70] sm:$0xff] %vm303_vm2, %v4345_v12 }
 0x5b7   :  { %v1192_v50 = vpop.f32.mrf.mxu0 }
 0x5b8   :  { %1219 = vst.msk [vmem:[#allocation2 + $0x60] sm:$0xff] %vm303_vm2, %v1192_v50 }
 0x5b9   :  { %v4346_v2 = vpop.f32.mrf.mxu0 }
 0x5ba   :  { %1222 = vst.msk [vmem:[#allocation2 + $0x78] sm:$0xff] %vm303_vm2, %v4346_v2 }
 0x5bb   :  { %v1195_v59 = vpop.f32.mrf.mxu0 }
 0x5bc   :  { %1220 = vst.msk [vmem:[#allocation2 + $0x68] sm:$0xff] %vm303_vm2, %v1195_v59 }
 0x5bd   :  { %v5555_v11 = vpop.f32.mrf.mxu0 }
 0x5be   :  { %v1441_v4 = vsel %vm860_vm4, %v5555_v11, -inf }
 0x5bf   :  { %v5557_v23 = vpop.f32.mrf.mxu0 }
 0x5c0   :  { %v1435_v25 = vsel %vm860_vm4, %v5557_v23, -inf }
 0x5c1   :  { %1436 = vmax.xlane.f32.xlu0 %v1435_v25  ;;  %v5561_v44 = vpop.f32.mrf.mxu0 }
 0x5c2   :  { %v1444_v46 = vsel %vm860_vm4, %v5561_v44, -inf }
 0x5c3   :  { %1445 = vmax.xlane.f32.xlu1 %v1444_v46  ;;  %v5565_v13 = vpop.f32.mrf.mxu0 }
 0x5c4   :  { %v1438_v7 = vsel %vm860_vm4, %v5565_v13, -inf }
 0x5c5   :  { %1442 = vmax.xlane.f32.xlu0 %v1441_v4  ;;  %v5569_v5 = vpop.f32.mrf.mxu0 }
 0x5c6   :  { %v1453_v34 = vsel %vm860_vm4, %v5569_v5, -inf }
 0x5c7   :  { %1439 = vmax.xlane.f32.xlu1 %v1438_v7  ;;  %v5573_v55 = vpop.f32.mrf.mxu0 }
 0x5c8   :  { %v1447_v30 = vsel %vm860_vm4, %v5573_v55, -inf }
 0x5c9   :  { %1448 = vmax.xlane.f32.xlu0 %v1447_v30  ;;  %v5585_v54 = vpop.f32.mrf.mxu0 }
 0x5ca   :  { %v1456_v22 = vsel %vm860_vm4, %v5585_v54, -inf }
 0x5cb   :  { %v5589_v24 = vpop.f32.mrf.mxu0 }
 0x5cc   :  { %v1450_v27 = vsel %vm860_vm4, %v5589_v24, -inf }
 0x5cd   :  { %1454 = vmax.xlane.f32.xlu0 %v1453_v34 }
 0x5d8   :  { %1844 = vrot.lane.b32.xlu1 %v5232_v14, %s4915_s7 }
 0x5dc   :  { %1675 = vrot.lane.b32.xlu1 %v5240_v21, %s4916_s9 }
 0x5e3   :  { %1595 = vrot.lane.b32.xlu0 %v5232_v14, %s4916_s9 }
 0x5e7   :  { %1838 = vrot.lane.b32.xlu0 %v5254_v29, %s4915_s7 }
 0x600   :  { %1457 = vmax.xlane.f32.xlu1 %v1456_v22 }
 0x604   :  { %1451 = vmax.xlane.f32.xlu1 %v1450_v27 }
 0x605   :  { %v1419_v36 = vpop.xlane.xlu0 %1418 }
 0x606   :  { %v1461_v39 = vsub.f32 %v5515_v26, %v1419_v36 }
 0x608   :  { %v1479_v32 = vmul.f32 1.442695, %v1461_v39 }
 0x609   :  { %v1413_v33 = vpop.xlane.xlu0 %1412 }
 0x60a   :  { %4657 = vpow2.f32 %v1479_v32  ;;  %v1459_v47 = vsub.f32 %v5520_v28, %v1413_v33 }
 0x60c   :  { %v1475_v61 = vmul.f32 1.442695, %v1459_v47 }
 0x60d   :  { %v1422_v42 = vpop.xlane.xlu0 %1421 }
 0x60e   :  { %4659 = vpow2.f32 %v1475_v61  ;;  %v1462_v25 = vsub.f32 %v5523_v58, %v1422_v42 }
 0x610   :  { %v1481_v30 = vmul.f32 1.442695, %v1462_v25 }
 0x611   :  { %v1425_v37 = vpop.xlane.xlu0 %1424 }
 0x612   :  { %v1463_v38 = vsub.f32 %v5537_v17, %v1425_v37 }
 0x614   :  { %v1483_v26 = vmul.f32 1.442695, %v1463_v38 }
 0x615   :  { %v1431_v56 = vpop.xlane.xlu0 %1430  ;;  %1836 = vrot.lane.b32.xlu1 %v5214_v43, %s4915_s7 }
 0x616   :  { %v1465_v12 = vsub.f32 %v5533_v15, %v1431_v56  ;;  %v1416_v15 = vpop.xlane.xlu1 %1415 }
 0x617   :  { %v5599_v50 = vpop.eup %4657  ;;  %v1460_v7 = vsub.f32 %v5528_v35, %v1416_v15 }
 0x618   :  { %v1487_v2 = vmul.f32 1.442695, %v1465_v12  ;;  %v1513_v59 = vsel %vm860_vm4, %v5599_v50, 0.0 }
 0x619   :  { %1514 = vadd.xlane.f32.xlu0 %v1513_v59  ;;  %1840 = vrot.lane.b32.xlu1 %v5259_v31, %s4915_s7  ;;  %v1477_v27 = vmul.f32 1.442695, %v1460_v7 }
 0x61a   :  { %4661 = vpow2.f32 %v1487_v2  ;;  %v1434_v4 = vpop.xlane.xlu1 %1433 }
 0x61b   :  { %v5605_v28 = vpop.eup %4659  ;;  %4663 = vpow2.f32 %v1483_v26  ;;  %v1466_v36 = vsub.f32 %v5539_v48, %v1434_v4 }
 0x61c   :  { %v1507_v17 = vsel %vm860_vm4, %v5605_v28, 0.0  ;;  %4665 = vpow2.f32 %v1481_v30 }
 0x61d   :  { %1508 = vadd.xlane.f32.xlu0 %v1507_v17  ;;  %4667 = vpow2.f32 %v1477_v27  ;;  %v1489_v32 = vmul.f32 1.442695, %v1466_v36 }
 0x61e   :  { %v1428_v58 = vpop.xlane.xlu1 %1427 }
 0x61f   :  { %v1464_v35 = vsub.f32 %v5545_v40, %v1428_v58  ;;  %4669 = vpow2.f32 %v1489_v32 }
 0x621   :  { %v1485_v33 = vmul.f32 1.442695, %v1464_v35 }
 0x623   :  { %4671 = vpow2.f32 %v1485_v33 }
 0x627   :  { %v5610_v46 = vpop.eup %4661 }
 0x628   :  { %v1525_v34 = vsel %vm860_vm4, %v5610_v46, 0.0  ;;  %v5615_v22 = vpop.eup %4663 }
 0x629   :  { %1526 = vadd.xlane.f32.xlu0 %v1525_v34  ;;  %v1519_v39 = vsel %vm860_vm4, %v5615_v22, 0.0  ;;  %v5621_v47 = vpop.eup %4665 }
 0x62a   :  { %v1516_v61 = vsel %vm860_vm4, %v5621_v47, 0.0  ;;  %v5625_v42 = vpop.eup %4667 }
 0x62b   :  { %v1510_v48 = vsel %vm860_vm4, %v5625_v42, 0.0 }
 0x62c   :  { %v5629_v37 = vpop.eup %4669 }
 0x62d   :  { %1520 = vadd.xlane.f32.xlu0 %v1519_v39  ;;  %v1528_v40 = vsel %vm860_vm4, %v5629_v37, 0.0 }
 0x630   :  { %v5633_v38 = vpop.eup %4671 }
 0x631   :  { %v1522_v56 = vsel %vm860_vm4, %v5633_v38, 0.0 }
 0x63d   :  { %1517 = vadd.xlane.f32.xlu1 %v1516_v61 }
 0x641   :  { %1511 = vadd.xlane.f32.xlu1 %v1510_v48 }
 0x645   :  { %1529 = vadd.xlane.f32.xlu1 %v1528_v40 }
 0x649   :  { %1523 = vadd.xlane.f32.xlu1 %v1522_v56 }
 0x64a   :  { %v1437_v12 = vpop.xlane.xlu0 %1436 }
 0x64b   :  { %v1467_v26 = vsub.f32 %v5557_v23, %v1437_v12 }
 0x64c   :  { %v1446_v2 = vpop.xlane.xlu1 %1445 }
 0x64d   :  { %v1470_v59 = vsub.f32 %v5561_v44, %v1446_v2  ;;  %v1491_v4 = vmul.f32 1.442695, %v1467_v26 }
 0x64e   :  { %v1443_v17 = vpop.xlane.xlu0 %1442 }
 0x64f   :  { %v1497_v15 = vmul.f32 1.442695, %v1470_v59  ;;  %v1469_v25 = vsub.f32 %v5555_v11, %v1443_v17 }
 0x650   :  { %v1440_v7 = vpop.xlane.xlu1 %1439 }
 0x651   :  { %4673 = vpow2.f32 %v1497_v15  ;;  %v1495_v30 = vmul.f32 1.442695, %v1469_v25  ;;  %v1468_v34 = vsub.f32 %v5565_v13, %v1440_v7 }
 0x652   :  { %v1449_v27 = vpop.xlane.xlu0 %1448 }
 0x653   :  { %4675 = vpow2.f32 %v1495_v30  ;;  %v1493_v36 = vmul.f32 1.442695, %v1468_v34  ;;  %v1471_v23 = vsub.f32 %v5573_v55, %v1449_v27 }
 0x654   :  { %4677 = vpow2.f32 %v1491_v4  ;;  %v5641_v39 = vpop.permute.xlu1 %1844 }
 0x655   :  { %4679 = vpow2.f32 %v1493_v36  ;;  %v1499_v11 = vmul.f32 1.442695, %v1471_v23 }
 0x656   :  { %v1455_v44 = vpop.xlane.xlu0 %1454 }
 0x657   :  { %v1473_v58 = vsub.f32 %v5569_v5, %v1455_v44 }
 0x658   :  { %v1676_v32 = vpop.permute.xlu1 %1675 }
 0x659   :  { %v1503_v35 = vmul.f32 1.442695, %v1473_v58  ;;  %4377 = vmatprep.subr.bf16.mxu0 %v1676_v32 }
 0x65a   :  { %v1596_v33 = vpop.permute.xlu0 %1595  ;;  %4378 = vmatpush3.bf16.msra.mxu0 %v1676_v32 }
 0x65b   :  { %4681 = vpow2.f32 %v1503_v35  ;;  %4367 = vmatprep.subr.bf16.mxu1 %v1596_v33 }
 0x65c   :  { %4368 = vmatpush3.bf16.msra.mxu1 %v1596_v33  ;;  %4683 = vpow2.f32 %v1499_v11 }
 0x65d   :  { %4560 = vmatprep.subr.msk.bf16.mxu1 %vm303_vm2, %v5641_v39 }
 0x65e   :  { %v5647_v13 = vpop.eup %4673 }
 0x65f   :  { %v1540_v55 = vsel %vm860_vm4, %v5647_v13, 0.0 }
 0x660   :  { %v5651_v61 = vpop.eup %4675  ;;  %1541 = vadd.xlane.f32.xlu1 %v1540_v55 }
 0x661   :  { %v5653_v5 = vpop.eup %4677  ;;  %v1537_v48 = vsel %vm860_vm4, %v5651_v61, 0.0 }
 0x662   :  { %v5657_v40 = vpop.eup %4679  ;;  %1538 = vadd.xlane.f32.xlu0 %v1537_v48  ;;  %v1531_v12 = vsel %vm860_vm4, %v5653_v5, 0.0 }
 0x663   :  { %v1534_v56 = vsel %vm860_vm4, %v5657_v40, 0.0 }
 0x664   :  { %1535 = vadd.xlane.f32.xlu1 %v1534_v56 }
 0x666   :  { %1532 = vadd.xlane.f32.xlu0 %v1531_v12 }
 0x668   :  { %v5663_v26 = vpop.eup %4681 }
 0x669   :  { %v1549_v2 = vsel %vm860_vm4, %v5663_v26, 0.0  ;;  %v5667_v59 = vpop.eup %4683 }
 0x66a   :  { %1550 = vadd.xlane.f32.xlu0 %v1549_v2  ;;  %v1543_v17 = vsel %vm860_vm4, %v5667_v59, 0.0 }
 0x66e   :  { %1544 = vadd.xlane.f32.xlu0 %v1543_v17 }
 0x684   :  { %1842 = vrot.lane.b32.xlu0 %v5276_v41, %s4915_s7 }
 0x688   :  { %1926 = vrot.lane.b32.xlu0 %v5281_v45, %s4915_s7 }
 0x689   :  { %v1458_v15 = vpop.xlane.xlu1 %1457 }
 0x68a   :  { %v1474_v25 = vsub.f32 %v5585_v54, %v1458_v15 }
 0x68c   :  { %v1505_v4 = vmul.f32 1.442695, %v1474_v25  ;;  %1930 = vrot.lane.b32.xlu0 %v5301_v3, %s4915_s7 }
 0x68d   :  { %v1452_v7 = vpop.xlane.xlu1 %1451 }
 0x68e   :  { %4685 = vpow2.f32 %v1505_v4  ;;  %v1472_v30 = vsub.f32 %v5589_v24, %v1452_v7  ;;  %v1839_v24 = vpop.permute.xlu0 %1838 }
 0x690   :  { %v1501_v34 = vmul.f32 1.442695, %v1472_v30 }
 0x691   :  { %v1837_v44 = vpop.permute.xlu1 %1836 }
 0x692   :  { %4687 = vpow2.f32 %v1501_v34 }
 0x695   :  { %v1841_v32 = vpop.permute.xlu1 %1840 }
 0x69b   :  { %v5679_v27 = vpop.eup %4685 }
 0x69c   :  { %v1552_v36 = vsel %vm860_vm4, %v5679_v27, 0.0 }
 0x69d   :  { %1553 = vadd.xlane.f32.xlu1 %v1552_v36 }
 0x69f   :  { %v5683_v23 = vpop.eup %4687 }
 0x6a0   :  { %v1546_v54 = vsel %vm860_vm4, %v5683_v23, 0.0 }
 0x6a1   :  { %1547 = vadd.xlane.f32.xlu1 %v1546_v54 }
 0x6a2   :  { %v1515_v58 = vpop.xlane.xlu0 %1514 }
 0x6a6   :  { %v1509_v11 = vpop.xlane.xlu0 %1508 }
 0x6b2   :  { %1934 = vrot.lane.b32.xlu1 %v5240_v21, %s4915_s7  ;;  %v1527_v33 = vpop.xlane.xlu0 %1526 }
 0x6b6   :  { %1928 = vrot.lane.b32.xlu1 %v5296_v1, %s4915_s7  ;;  %v1521_v48 = vpop.xlane.xlu0 %1520 }
 0x6ba   :  { %1932 = vrot.lane.b32.xlu1 %v5311_v57, %s4915_s7 }
 0x6c6   :  { %v1518_v35 = vpop.xlane.xlu1 %1517 }
 0x6c7   :  { %4689 = vrcp.f32 %v1518_v35  ;;  %v1859_v35 = vsel %vm303_vm2, %v5641_v39, 0 }
 0x6c8   :  { %4691 = vrcp.f32 %v1509_v11 }
 0x6c9   :  { %4693 = vrcp.f32 %v1515_v58 }
 0x6ca   :  { %v1512_v55 = vpop.xlane.xlu1 %1511 }
 0x6cb   :  { %4695 = vrcp.f32 %v1512_v55 }
 0x6ce   :  { %v1530_v56 = vpop.xlane.xlu1 %1529 }
 0x6cf   :  { %4697 = vrcp.f32 %v1530_v56 }
 0x6d0   :  { %4699 = vrcp.f32 %v1521_v48 }
 0x6d1   :  { %4701 = vrcp.f32 %v1527_v33 }
 0x6d2   :  { %v1524_v12 = vpop.xlane.xlu1 %1523 }
 0x6d3   :  { %4703 = vrcp.f32 %v1524_v12 }
 0x6d4   :  { %v4690_v2 = vpop.eup %4689 }
 0x6d5   :  { %v4692_v17 = vpop.eup %4691  ;;  %v1574_v4 = vmul.f32 %v4690_v2, %v5621_v47 }
 0x6d6   :  { %v4694_v15 = vpop.eup %4693  ;;  %v1571_v7 = vmul.f32 %v4692_v17, %v5605_v28 }
 0x6d7   :  { %v1573_v34 = vmul.f32 %v4694_v15, %v5599_v50 }
 0x6d8   :  { %v4696_v25 = vpop.eup %4695 }
 0x6d9   :  { %v1572_v30 = vmul.f32 %v4696_v25, %v5625_v42  ;;  %v1588_v54 = vpack.c.bf16 %v1574_v4, %v1573_v34 }
 0x6db   :  { %v1587_v36 = vpack.c.bf16 %v1572_v30, %v1571_v7 }
 0x6dc   :  { %v4698_v58 = vpop.eup %4697 }
 0x6dd   :  { %4369 = vmatprep.mubr.msk.bf16.mxu1 %vm860_vm4, %v1587_v36  ;;  %v4700_v11 = vpop.eup %4699  ;;  %v1578_v28 = vmul.f32 %v4698_v58, %v5629_v37 }
 0x6de   :  { %4370 = vmatmul.mubr.msk.bf16.vlgmr.msra.gmra.mxu1 %vm860_vm4, %v1588_v54  ;;  %v4702_v33 = vpop.eup %4701  ;;  %v1575_v42 = vmul.f32 %v4700_v11, %v5615_v22 }
 0x6df   :  { %4388 = vmatpush3.bf16.xpose.msra.mxu1 %v1859_v35  ;;  %v1577_v55 = vmul.f32 %v4702_v33, %v5610_v46 }
 0x6e0   :  { %v4704_v47 = vpop.eup %4703 }
 0x6e1   :  { %v1576_v50 = vmul.f32 %v4704_v47, %v5633_v38  ;;  %v1590_v56 = vpack.c.bf16 %v1578_v28, %v1577_v55 }
 0x6e3   :  { %v1589_v48 = vpack.c.bf16 %v1576_v50, %v1575_v42 }
 0x6e5   :  { %4373 = vmatprep.mubr.msk.bf16.mxu1 %vm860_vm4, %v1589_v48 }
 0x6e6   :  { %4374 = vmatmul.mubr.msk.bf16.gmra.mxu1 %vm860_vm4, %v1590_v56 }
 0x6e7   :  { %4389 = vmatprep.mubr.msk.bf16.mxu1 %vm303_vm2, %v1837_v44 }
 0x6e9   :  { %v1542_v39 = vpop.xlane.xlu1 %1541 }
 0x6eb   :  { %v1539_v12 = vpop.xlane.xlu0 %1538 }
 0x6ec   :  { %4705 = vrcp.f32 %v1539_v12 }
 0x6ed   :  { %v1536_v2 = vpop.xlane.xlu1 %1535 }
 0x6ee   :  { %4707 = vrcp.f32 %v1536_v2  ;;  %4390 = vmatmul.mubr.msk.bf16.vlgmr.msra.gmra.mxu1 %vm303_vm2, %v1839_v24 }
 0x6ef   :  { %4709 = vrcp.f32 %v1542_v39  ;;  %v1533_v22 = vpop.xlane.xlu0 %1532  ;;  %4393 = vmatprep.mubr.msk.bf16.mxu1 %vm303_vm2, %v1841_v32 }
 0x6f0   :  { %4711 = vrcp.f32 %v1533_v22 }
 0x6f3   :  { %v1551_v46 = vpop.xlane.xlu0 %1550 }
 0x6f7   :  { %v1545_v37 = vpop.xlane.xlu0 %1544 }
 0x6f9   :  { %v4706_v38 = vpop.eup %4705 }
 0x6fa   :  { %v1581_v4 = vmul.f32 %v4706_v38, %v5651_v61 }
 0x6fb   :  { %v4708_v17 = vpop.eup %4707  ;;  %v1843_v15 = vpop.permute.xlu0 %1842 }
 0x6fc   :  { %v4710_v25 = vpop.eup %4709  ;;  %4394 = vmatmul.mubr.msk.bf16.gmra.mxu1 %vm303_vm2, %v1843_v15  ;;  %v1580_v24 = vmul.f32 %v4708_v17, %v5657_v40 }
 0x6fd   :  { %v4712_v44 = vpop.eup %4711  ;;  %v1582_v30 = vmul.f32 %v4710_v25, %v5647_v13 }
 0x6fe   :  { %v1579_v7 = vmul.f32 %v4712_v44, %v5653_v5 }
 0x6ff   :  { %v1592_v32 = vpack.c.bf16 %v1582_v30, %v1581_v4  ;;  %v1927_v55 = vpop.permute.xlu0 %1926 }
 0x700   :  { %v1591_v34 = vpack.c.bf16 %v1580_v24, %v1579_v7 }
 0x702   :  { %4379 = vmatprep.mubr.msk.bf16.mxu0 %vm860_vm4, %v1591_v34 }
 0x703   :  { %4380 = vmatmul.mubr.msk.bf16.vlgmr.msra.gmra.mxu0 %vm860_vm4, %v1592_v32  ;;  %v1931_v56 = vpop.permute.xlu0 %1930 }
 0x726   :  { %v1554_v36 = vpop.xlane.xlu1 %1553 }
 0x727   :  { %4713 = vrcp.f32 %v1554_v36 }
 0x728   :  { %4715 = vrcp.f32 %v1545_v37 }
 0x729   :  { %4717 = vrcp.f32 %v1551_v46 }
 0x72a   :  { %v1548_v54 = vpop.xlane.xlu1 %1547 }
 0x72b   :  { %4719 = vrcp.f32 %v1548_v54 }
 0x72e   :  { %v1935_v58 = vpop.permute.xlu1 %1934 }
 0x72f   :  { %4561 = vmatprep.subr.msk.bf16.mxu0 %vm303_vm2, %v1935_v58  ;;  %v1949_v61 = vsel %vm303_vm2, %v1935_v58, 0 }
 0x730   :  { %4398 = vmatpush3.bf16.xpose.msra.mxu0 %v1949_v61 }
 0x732   :  { %v1929_v48 = vpop.permute.xlu1 %1928 }
 0x734   :  { %v4714_v5 = vpop.eup %4713 }
 0x735   :  { %v4716_v13 = vpop.eup %4715  ;;  %v1586_v35 = vmul.f32 %v4714_v5, %v5679_v27 }
 0x736   :  { %v4718_v40 = vpop.eup %4717  ;;  %v1583_v33 = vmul.f32 %v4716_v13, %v5667_v59  ;;  %v1933_v59 = vpop.permute.xlu1 %1932 }
 0x737   :  { %v1585_v28 = vmul.f32 %v4718_v40, %v5663_v26 }
 0x738   :  { %v4720_v11 = vpop.eup %4719 }
 0x739   :  { %v1584_v47 = vmul.f32 %v4720_v11, %v5683_v23  ;;  %v1594_v50 = vpack.c.bf16 %v1586_v35, %v1585_v28 }
 0x73b   :  { %v1593_v42 = vpack.c.bf16 %v1584_v47, %v1583_v33 }
 0x73d   :  { %4383 = vmatprep.mubr.msk.bf16.mxu0 %vm860_vm4, %v1593_v42 }
 0x73e   :  { %4384 = vmatmul.mubr.msk.bf16.gmra.mxu0 %vm860_vm4, %v1594_v50 }
 0x73f   :  { %4399 = vmatprep.mubr.msk.bf16.mxu0 %vm303_vm2, %v1927_v55 }
 0x746   :  { %4400 = vmatmul.mubr.msk.bf16.vlgmr.msra.gmra.mxu0 %vm303_vm2, %v1929_v48 }
 0x747   :  { %4403 = vmatprep.mubr.msk.bf16.mxu0 %vm303_vm2, %v1931_v56 }
 0x74e   :  { %4404 = vmatmul.mubr.msk.bf16.gmra.mxu0 %vm303_vm2, %v1933_v59 }
 0x79e   :  { %v5729_v27 = vpop.f32.mrf.mxu1 }
 0x7a0   :  { %v5731_v26 = vpop.f32.mrf.mxu1 }
 0x7a2   :  { %v5733_v23 = vpop.f32.mrf.mxu1 }
 0x7a4   :  { %v5735_v39 = vpop.f32.mrf.mxu1 }
 0x7a6   :  { %v5737_v12 = vpop.f32.mrf.mxu1 }
 0x7a8   :  { %v5739_v2 = vpop.f32.mrf.mxu1 }
 0x7aa   :  { %v5741_v22 = vpop.f32.mrf.mxu1 }
 0x7ac   :  { %v5743_v46 = vpop.f32.mrf.mxu1 }
 0x7ae   :  { %v4391_v37 = vpop.f32.mrf.mxu1 }
 0x7af   :  { %v2022_v38 = vsel %vm860_vm4, %v4391_v37, -inf }
 0x7b0   :  { %2023 = vmax.xlane.f32.xlu0 %v2022_v38  ;;  %v1895_v17 = vpop.f32.mrf.mxu1 }
 0x7b1   :  { %v2016_v25 = vsel %vm860_vm4, %v1895_v17, -inf }
 0x7b2   :  { %v5746_v15 = vpop.f32.mrf.mxu1 }
 0x7b3   :  { %v2025_v7 = vsel %vm860_vm4, %v5746_v15, -inf }
 0x7b4   :  { %2017 = vmax.xlane.f32.xlu0 %v2016_v25  ;;  %v5749_v44 = vpop.f32.mrf.mxu1 }
 0x7b5   :  { %v2019_v4 = vsel %vm860_vm4, %v5749_v44, -inf }
 0x7b6   :  { %2020 = vmax.xlane.f32.xlu1 %v2019_v4 }
 0x7b8   :  { %2026 = vmax.xlane.f32.xlu0 %v2025_v7 }
 0x7bc   :  { %v5755_v24 = vpop.f32.mrf.mxu1 }
 0x7bd   :  { %v2034_v58 = vsel %vm860_vm4, %v5755_v24, -inf }
 0x7be   :  { %v5757_v30 = vpop.f32.mrf.mxu1 }
 0x7bf   :  { %v2028_v34 = vsel %vm860_vm4, %v5757_v30, -inf }
 0x7c0   :  { %2029 = vmax.xlane.f32.xlu0 %v2028_v34  ;;  %v5761_v32 = vpop.f32.mrf.mxu1 }
 0x7c1   :  { %v2037_v36 = vsel %vm860_vm4, %v5761_v32, -inf }
 0x7c2   :  { %2038 = vmax.xlane.f32.xlu1 %v2037_v36  ;;  %v5765_v54 = vpop.f32.mrf.mxu1 }
 0x7c3   :  { %v2031_v61 = vsel %vm860_vm4, %v5765_v54, -inf  ;;  %v5771_v5 = vpop.f32.mrf.mxu0 }
 0x7c4   :  { %2035 = vmax.xlane.f32.xlu0 %v2034_v58 }
 0x7c5   :  { %v5773_v13 = vpop.f32.mrf.mxu0 }
 0x7c6   :  { %2032 = vmax.xlane.f32.xlu1 %v2031_v61 }
 0x7c7   :  { %v5775_v40 = vpop.f32.mrf.mxu0 }
 0x7c9   :  { %v5777_v11 = vpop.f32.mrf.mxu0 }
 0x7fe   :  { %v5779_v35 = vpop.f32.mrf.mxu0 }
 0x800   :  { %v5781_v33 = vpop.f32.mrf.mxu0 }
 0x802   :  { %v5783_v47 = vpop.f32.mrf.mxu0 }
 0x804   :  { %v5785_v28 = vpop.f32.mrf.mxu0 }
 0x806   :  { %v5787_v42 = vpop.f32.mrf.mxu0 }
 0x807   :  { %v2046_v38 = vsel %vm860_vm4, %v5787_v42, -inf }
 0x808   :  { %v5789_v50 = vpop.f32.mrf.mxu0 }
 0x809   :  { %v2040_v55 = vsel %vm860_vm4, %v5789_v50, -inf }
 0x80a   :  { %2041 = vmax.xlane.f32.xlu0 %v2040_v55  ;;  %v5793_v48 = vpop.f32.mrf.mxu0 }
 0x80b   :  { %v2049_v56 = vsel %vm860_vm4, %v5793_v48, -inf }
 0x80c   :  { %2050 = vmax.xlane.f32.xlu1 %v2049_v56  ;;  %v5797_v59 = vpop.f32.mrf.mxu0 }
 0x80d   :  { %v2043_v4 = vsel %vm860_vm4, %v5797_v59, -inf }
 0x80e   :  { %2047 = vmax.xlane.f32.xlu0 %v2046_v38  ;;  %v5801_v25 = vpop.f32.mrf.mxu0 }
 0x80f   :  { %v2058_v36 = vsel %vm860_vm4, %v5801_v25, -inf }
 0x810   :  { %2044 = vmax.xlane.f32.xlu1 %v2043_v4  ;;  %v5805_v7 = vpop.f32.mrf.mxu0 }
 0x811   :  { %v2052_v34 = vsel %vm860_vm4, %v5805_v7, -inf }
 0x812   :  { %2053 = vmax.xlane.f32.xlu0 %v2052_v34  ;;  %v5817_v34 = vpop.f32.mrf.mxu0 }
 0x813   :  { %v2061_v19 = vsel %vm860_vm4, %v5817_v34, -inf }
 0x814   :  { %v5821_v20 = vpop.f32.mrf.mxu0 }
 0x816   :  { %2059 = vmax.xlane.f32.xlu0 %v2058_v36 }
 0x821   :  { %2449 = vrot.lane.b32.xlu1 %v5232_v14, %s4917_s28 }
 0x825   :  { %2280 = vrot.lane.b32.xlu1 %v5240_v21, %s4918_s30 }
 0x82c   :  { %2200 = vrot.lane.b32.xlu0 %v5232_v14, %s4918_s30 }
 0x830   :  { %2443 = vrot.lane.b32.xlu0 %v5254_v29, %s4917_s28 }
 0x839   :  { %v2024_v58 = vpop.xlane.xlu0 %2023 }
 0x83a   :  { %v2066_v61 = vsub.f32 %v4391_v37, %v2024_v58  ;;  %v2055_v37 = vsel %vm860_vm4, %v5821_v20, -inf }
 0x83c   :  { %v2084_v55 = vmul.f32 1.442695, %v2066_v61 }
 0x83d   :  { %v2018_v56 = vpop.xlane.xlu0 %2017 }
 0x83e   :  { %4721 = vpow2.f32 %v2084_v55  ;;  %v2064_v38 = vsub.f32 %v1895_v17, %v2018_v56 }
 0x840   :  { %v2080_v4 = vmul.f32 1.442695, %v2064_v38 }
 0x841   :  { %v2027_v36 = vpop.xlane.xlu0 %2026 }
 0x842   :  { %4723 = vpow2.f32 %v2080_v4 }
 0x849   :  { %v2030_v16 = vpop.xlane.xlu0 %2029  ;;  %2062 = vmax.xlane.f32.xlu1 %v2061_v19 }
 0x84a   :  { %v2068_v29 = vsub.f32 %v5757_v30, %v2030_v16 }
 0x84b   :  { %v5823_v18 = vpop.eup %4721 }
 0x84c   :  { %v2118_v61 = vsel %vm860_vm4, %v5823_v18, 0.0  ;;  %v2088_v56 = vmul.f32 1.442695, %v2068_v29  ;;  %v2021_v29 = vpop.xlane.xlu1 %2020 }
 0x84d   :  { %v2036_v17 = vpop.xlane.xlu0 %2035  ;;  %2056 = vmax.xlane.f32.xlu1 %v2055_v37  ;;  %v2067_v37 = vsub.f32 %v5746_v15, %v2027_v36 }
 0x84e   :  { %v2070_v58 = vsub.f32 %v5755_v24, %v2036_v17 }
 0x84f   :  { %v5831_v55 = vpop.eup %4723  ;;  %2119 = vadd.xlane.f32.xlu0 %v2118_v61 }
 0x850   :  { %v2092_v38 = vmul.f32 1.442695, %v2070_v58  ;;  %v2112_v19 = vsel %vm860_vm4, %v5831_v55, 0.0  ;;  %v2039_v17 = vpop.xlane.xlu1 %2038  ;;  %v2086_v58 = vmul.f32 1.442695, %v2067_v37 }
 0x852   :  { %4725 = vpow2.f32 %v2092_v38 }
 0x853   :  { %2113 = vadd.xlane.f32.xlu0 %v2112_v19  ;;  %4727 = vpow2.f32 %v2088_v56  ;;  %v2071_v56 = vsub.f32 %v5761_v32, %v2039_v17 }
 0x854   :  { %4729 = vpow2.f32 %v2086_v58  ;;  %v2033_v38 = vpop.xlane.xlu1 %2032 }
 0x855   :  { %v2094_v19 = vmul.f32 1.442695, %v2071_v56 }
 0x85e   :  { %2441 = vrot.lane.b32.xlu1 %v5214_v43, %s4917_s28  ;;  %v2065_v43 = vsub.f32 %v5749_v44, %v2021_v29 }
 0x85f   :  { %v5837_v16 = vpop.eup %4725 }
 0x860   :  { %v2130_v24 = vsel %vm860_vm4, %v5837_v16, 0.0  ;;  %v5841_v30 = vpop.eup %4727  ;;  %v2082_v61 = vmul.f32 1.442695, %v2065_v43 }
 0x861   :  { %2131 = vadd.xlane.f32.xlu0 %v2130_v24  ;;  %v2124_v4 = vsel %vm860_vm4, %v5841_v30, 0.0 }
 0x862   :  { %2445 = vrot.lane.b32.xlu1 %v5259_v31, %s4917_s28  ;;  %4731 = vpow2.f32 %v2082_v61  ;;  %v2069_v31 = vsub.f32 %v5765_v54, %v2033_v38 }
 0x863   :  { %4733 = vpow2.f32 %v2094_v19 }
 0x864   :  { %v2090_v24 = vmul.f32 1.442695, %v2069_v31 }
 0x865   :  { %2125 = vadd.xlane.f32.xlu0 %v2124_v4  ;;  %v5851_v4 = vpop.eup %4729 }
 0x866   :  { %4735 = vpow2.f32 %v2090_v24  ;;  %v2121_v15 = vsel %vm860_vm4, %v5851_v4, 0.0 }
 0x86f   :  { %v5855_v36 = vpop.eup %4731 }
 0x870   :  { %v2115_v44 = vsel %vm860_vm4, %v5855_v36, 0.0  ;;  %v5859_v32 = vpop.eup %4733 }
 0x871   :  { %v2133_v54 = vsel %vm860_vm4, %v5859_v32, 0.0 }
 0x873   :  { %v5863_v29 = vpop.eup %4735 }
 0x874   :  { %v2127_v37 = vsel %vm860_vm4, %v5863_v29, 0.0 }
 0x886   :  { %2122 = vadd.xlane.f32.xlu1 %v2121_v15 }
 0x88a   :  { %2116 = vadd.xlane.f32.xlu1 %v2115_v44 }
 0x88e   :  { %2134 = vadd.xlane.f32.xlu1 %v2133_v54 }
 0x892   :  { %2128 = vadd.xlane.f32.xlu1 %v2127_v37 }
 0x893   :  { %v2042_v17 = vpop.xlane.xlu0 %2041 }
 0x894   :  { %v2072_v43 = vsub.f32 %v5789_v50, %v2042_v17 }
 0x895   :  { %v2051_v58 = vpop.xlane.xlu1 %2050 }
 0x896   :  { %v2075_v61 = vsub.f32 %v5793_v48, %v2051_v58  ;;  %v2096_v31 = vmul.f32 1.442695, %v2072_v43 }
 0x897   :  { %v2048_v56 = vpop.xlane.xlu0 %2047 }
 0x898   :  { %v2102_v38 = vmul.f32 1.442695, %v2075_v61  ;;  %v2074_v19 = vsub.f32 %v5787_v42, %v2048_v56 }
 0x899   :  { %v2045_v24 = vpop.xlane.xlu1 %2044 }
 0x89a   :  { %4737 = vpow2.f32 %v2102_v38  ;;  %v2100_v15 = vmul.f32 1.442695, %v2074_v19  ;;  %v2073_v44 = vsub.f32 %v5797_v59, %v2045_v24 }
 0x89b   :  { %v2054_v54 = vpop.xlane.xlu0 %2053 }
 0x89c   :  { %4739 = vpow2.f32 %v2100_v15  ;;  %v2098_v9 = vmul.f32 1.442695, %v2073_v44  ;;  %v2076_v50 = vsub.f32 %v5805_v7, %v2054_v54 }
 0x89d   :  { %4741 = vpow2.f32 %v2096_v31  ;;  %v5871_v37 = vpop.permute.xlu1 %2449 }
 0x89e   :  { %4743 = vpow2.f32 %v2098_v9  ;;  %v2104_v42 = vmul.f32 1.442695, %v2076_v50 }
 0x89f   :  { %v2060_v48 = vpop.xlane.xlu0 %2059 }
 0x8a0   :  { %v2078_v17 = vsub.f32 %v5801_v25, %v2060_v48 }
 0x8a1   :  { %v2281_v58 = vpop.permute.xlu1 %2280 }
 0x8a2   :  { %v2108_v43 = vmul.f32 1.442695, %v2078_v17  ;;  %4417 = vmatprep.subr.bf16.mxu0 %v2281_v58 }
 0x8a3   :  { %v2201_v61 = vpop.permute.xlu0 %2200  ;;  %4418 = vmatpush3.bf16.msra.mxu0 %v2281_v58 }
 0x8a4   :  { %4745 = vpow2.f32 %v2108_v43  ;;  %4407 = vmatprep.subr.bf16.mxu1 %v2201_v61 }
 0x8a5   :  { %4408 = vmatpush3.bf16.msra.mxu1 %v2201_v61  ;;  %4747 = vpow2.f32 %v2104_v42 }
 0x8a6   :  { %4562 = vmatprep.subr.msk.bf16.mxu1 %vm303_vm2, %v5871_v37 }
 0x8a7   :  { %v5877_v59 = vpop.eup %4737 }
 0x8a8   :  { %v2145_v9 = vsel %vm860_vm4, %v5877_v59, 0.0 }
 0x8a9   :  { %v5881_v7 = vpop.eup %4739  ;;  %2146 = vadd.xlane.f32.xlu1 %v2145_v9 }
 0x8aa   :  { %v5883_v25 = vpop.eup %4741  ;;  %v2142_v56 = vsel %vm860_vm4, %v5881_v7, 0.0 }
 0x8ab   :  { %v5887_v38 = vpop.eup %4743  ;;  %2143 = vadd.xlane.f32.xlu0 %v2142_v56  ;;  %v2136_v31 = vsel %vm860_vm4, %v5883_v25, 0.0 }
 0x8ac   :  { %v2139_v19 = vsel %vm860_vm4, %v5887_v38, 0.0 }
 0x8ad   :  { %2140 = vadd.xlane.f32.xlu1 %v2139_v19 }
 0x8af   :  { %2137 = vadd.xlane.f32.xlu0 %v2136_v31 }
 0x8b1   :  { %v5893_v24 = vpop.eup %4745 }
 0x8b2   :  { %v2154_v15 = vsel %vm860_vm4, %v5893_v24, 0.0  ;;  %v5897_v44 = vpop.eup %4747 }
 0x8b3   :  { %2155 = vadd.xlane.f32.xlu0 %v2154_v15  ;;  %v2148_v54 = vsel %vm860_vm4, %v5897_v44, 0.0 }
 0x8b7   :  { %2149 = vadd.xlane.f32.xlu0 %v2148_v54 }
 0x8cd   :  { %2447 = vrot.lane.b32.xlu0 %v5276_v41, %s4917_s28 }
 0x8d1   :  { %2531 = vrot.lane.b32.xlu0 %v5281_v45, %s4917_s28 }
 0x8d2   :  { %v2063_v50 = vpop.xlane.xlu1 %2062 }
 0x8d3   :  { %v2079_v48 = vsub.f32 %v5817_v34, %v2063_v50 }
 0x8d5   :  { %v2110_v17 = vmul.f32 1.442695, %v2079_v48  ;;  %2535 = vrot.lane.b32.xlu0 %v5301_v3, %s4917_s28 }
 0x8d6   :  { %v2057_v58 = vpop.xlane.xlu1 %2056 }
 0x8d7   :  { %4749 = vpow2.f32 %v2110_v17  ;;  %v2077_v42 = vsub.f32 %v5821_v20, %v2057_v58  ;;  %v2444_v20 = vpop.permute.xlu0 %2443 }
 0x8d9   :  { %v2106_v43 = vmul.f32 1.442695, %v2077_v42 }
 0x8da   :  { %v2442_v3 = vpop.permute.xlu1 %2441 }
 0x8db   :  { %4751 = vpow2.f32 %v2106_v43  ;;  %v2120_v9 = vpop.xlane.xlu0 %2119 }
 0x8de   :  { %v2446_v56 = vpop.permute.xlu1 %2445 }
 0x8df   :  { %v2114_v19 = vpop.xlane.xlu0 %2113 }
 0x8e4   :  { %v5909_v61 = vpop.eup %4749 }
 0x8e5   :  { %v2157_v41 = vsel %vm860_vm4, %v5909_v61, 0.0 }
 0x8e6   :  { %2158 = vadd.xlane.f32.xlu1 %v2157_v41 }
 0x8e8   :  { %v5913_v45 = vpop.eup %4751 }
 0x8e9   :  { %v2151_v34 = vsel %vm860_vm4, %v5913_v45, 0.0 }
 0x8ea   :  { %2152 = vadd.xlane.f32.xlu1 %v2151_v34  ;;  %v2132_v15 = vpop.xlane.xlu0 %2131 }
 0x8ee   :  { %v2126_v50 = vpop.xlane.xlu0 %2125 }
 0x8fb   :  { %2539 = vrot.lane.b32.xlu1 %v5240_v21, %s4917_s28 }
 0x8ff   :  { %2533 = vrot.lane.b32.xlu1 %v5296_v1, %s4917_s28 }
 0x903   :  { %2537 = vrot.lane.b32.xlu1 %v5311_v57, %s4917_s28 }
 0x90f   :  { %v2123_v31 = vpop.xlane.xlu1 %2122 }
 0x910   :  { %4753 = vrcp.f32 %v2123_v31 }
 0x911   :  { %4755 = vrcp.f32 %v2114_v19 }
 0x912   :  { %4757 = vrcp.f32 %v2120_v9 }
 0x913   :  { %v2117_v54 = vpop.xlane.xlu1 %2116 }
 0x914   :  { %4759 = vrcp.f32 %v2117_v54 }
 0x917   :  { %v2135_v48 = vpop.xlane.xlu1 %2134 }
 0x918   :  { %4761 = vrcp.f32 %v2135_v48 }
 0x919   :  { %4763 = vrcp.f32 %v2126_v50  ;;  %v2464_v50 = vsel %vm303_vm2, %v5871_v37, 0 }
 0x91a   :  { %4765 = vrcp.f32 %v2132_v15 }
 0x91b   :  { %v2129_v1 = vpop.xlane.xlu1 %2128 }
 0x91c   :  { %4767 = vrcp.f32 %v2129_v1 }
 0x91d   :  { %v4754_v17 = vpop.eup %4753 }
 0x91e   :  { %v4756_v57 = vpop.eup %4755  ;;  %v2179_v43 = vmul.f32 %v4754_v17, %v5851_v4 }
 0x91f   :  { %v4758_v58 = vpop.eup %4757  ;;  %v2176_v41 = vmul.f32 %v4756_v57, %v5831_v55 }
 0x920   :  { %v2178_v9 = vmul.f32 %v4758_v58, %v5823_v18 }
 0x921   :  { %v4760_v42 = vpop.eup %4759 }
 0x922   :  { %v2177_v34 = vmul.f32 %v4760_v42, %v5855_v36  ;;  %v2193_v31 = vpack.c.bf16 %v2179_v43, %v2178_v9 }
 0x924   :  { %v2192_v19 = vpack.c.bf16 %v2177_v34, %v2176_v41 }
 0x925   :  { %v4762_v54 = vpop.eup %4761 }
 0x926   :  { %4409 = vmatprep.mubr.msk.bf16.mxu1 %vm860_vm4, %v2192_v19  ;;  %v4764_v15 = vpop.eup %4763  ;;  %v2183_v55 = vmul.f32 %v4762_v54, %v5859_v32 }
 0x927   :  { %4410 = vmatmul.mubr.msk.bf16.vlgmr.msra.gmra.mxu1 %vm860_vm4, %v2193_v31  ;;  %v4766_v48 = vpop.eup %4765  ;;  %v2180_v36 = vmul.f32 %v4764_v15, %v5841_v30 }
 0x928   :  { %4428 = vmatpush3.bf16.xpose.msra.mxu1 %v2464_v50  ;;  %v2182_v1 = vmul.f32 %v4766_v48, %v5837_v16 }
 0x929   :  { %v4768_v4 = vpop.eup %4767 }
 0x92a   :  { %v2181_v18 = vmul.f32 %v4768_v4, %v5863_v29  ;;  %v2195_v57 = vpack.c.bf16 %v2183_v55, %v2182_v1 }
 0x92c   :  { %v2194_v17 = vpack.c.bf16 %v2181_v18, %v2180_v36 }
 0x92e   :  { %4413 = vmatprep.mubr.msk.bf16.mxu1 %vm860_vm4, %v2194_v17 }
 0x92f   :  { %4414 = vmatmul.mubr.msk.bf16.gmra.mxu1 %vm860_vm4, %v2195_v57 }
 0x930   :  { %4429 = vmatprep.mubr.msk.bf16.mxu1 %vm303_vm2, %v2442_v3 }
 0x932   :  { %v2147_v37 = vpop.xlane.xlu1 %2146 }
 0x934   :  { %v2144_v58 = vpop.xlane.xlu0 %2143 }
 0x935   :  { %4769 = vrcp.f32 %v2144_v58 }
 0x936   :  { %v2141_v42 = vpop.xlane.xlu1 %2140 }
 0x937   :  { %4771 = vrcp.f32 %v2141_v42  ;;  %4430 = vmatmul.mubr.msk.bf16.vlgmr.msra.gmra.mxu1 %vm303_vm2, %v2444_v20 }
 0x938   :  { %4773 = vrcp.f32 %v2147_v37  ;;  %v2138_v30 = vpop.xlane.xlu0 %2137  ;;  %4433 = vmatprep.mubr.msk.bf16.mxu1 %vm303_vm2, %v2446_v56 }
 0x939   :  { %4775 = vrcp.f32 %v2138_v30 }
 0x93c   :  { %v2156_v16 = vpop.xlane.xlu0 %2155 }
 0x940   :  { %v2150_v32 = vpop.xlane.xlu0 %2149 }
 0x942   :  { %v4770_v29 = vpop.eup %4769 }
 0x943   :  { %v2186_v9 = vmul.f32 %v4770_v29, %v5881_v7 }
 0x944   :  { %v4772_v43 = vpop.eup %4771  ;;  %v2448_v41 = vpop.permute.xlu0 %2447 }
 0x945   :  { %v4774_v34 = vpop.eup %4773  ;;  %4434 = vmatmul.mubr.msk.bf16.gmra.mxu1 %vm303_vm2, %v2448_v41  ;;  %v2185_v20 = vmul.f32 %v4772_v43, %v5887_v38 }
 0x946   :  { %v4776_v3 = vpop.eup %4775  ;;  %v2187_v31 = vmul.f32 %v4774_v34, %v5877_v59 }
 0x947   :  { %v2184_v19 = vmul.f32 %v4776_v3, %v5883_v25 }
 0x948   :  { %v2197_v56 = vpack.c.bf16 %v2187_v31, %v2186_v9  ;;  %v2532_v37 = vpop.permute.xlu0 %2531 }
 0x949   :  { %v2196_v54 = vpack.c.bf16 %v2185_v20, %v2184_v19 }
 0x94b   :  { %4419 = vmatprep.mubr.msk.bf16.mxu0 %vm860_vm4, %v2196_v54 }
 0x94c   :  { %4420 = vmatmul.mubr.msk.bf16.vlgmr.msra.gmra.mxu0 %vm860_vm4, %v2197_v56  ;;  %v2536_v42 = vpop.permute.xlu0 %2535 }
 0x96f   :  { %v2159_v15 = vpop.xlane.xlu1 %2158 }
 0x970   :  { %4777 = vrcp.f32 %v2159_v15 }
 0x971   :  { %4779 = vrcp.f32 %v2150_v32 }
 0x972   :  { %4781 = vrcp.f32 %v2156_v16 }
 0x973   :  { %v2153_v50 = vpop.xlane.xlu1 %2152 }
 0x974   :  { %4783 = vrcp.f32 %v2153_v50 }
 0x977   :  { %v2540_v48 = vpop.permute.xlu1 %2539 }
 0x978   :  { %v2554_v7 = vsel %vm303_vm2, %v2540_v48, 0  ;;  %4563 = vmatprep.subr.msk.bf16.mxu0 %vm303_vm2, %v2540_v48 }
 0x979   :  { %4438 = vmatpush3.bf16.xpose.msra.mxu0 %v2554_v7 }
 0x97b   :  { %v2534_v58 = vpop.permute.xlu1 %2533 }
 0x97d   :  { %v4778_v25 = vpop.eup %4777 }
 0x97e   :  { %v4780_v59 = vpop.eup %4779  ;;  %v2191_v55 = vmul.f32 %v4778_v25, %v5909_v61 }
 0x97f   :  { %v4782_v38 = vpop.eup %4781  ;;  %v2188_v36 = vmul.f32 %v4780_v59, %v5897_v44  ;;  %v2538_v44 = vpop.permute.xlu1 %2537 }
 0x980   :  { %v2190_v1 = vmul.f32 %v4782_v38, %v5893_v24 }
 0x981   :  { %v4784_v4 = vpop.eup %4783 }
 0x982   :  { %v2189_v18 = vmul.f32 %v4784_v4, %v5913_v45  ;;  %v2199_v57 = vpack.c.bf16 %v2191_v55, %v2190_v1 }
 0x984   :  { %v2198_v17 = vpack.c.bf16 %v2189_v18, %v2188_v36 }
 0x986   :  { %4423 = vmatprep.mubr.msk.bf16.mxu0 %vm860_vm4, %v2198_v17 }
 0x987   :  { %4424 = vmatmul.mubr.msk.bf16.gmra.mxu0 %vm860_vm4, %v2199_v57 }
 0x988   :  { %4439 = vmatprep.mubr.msk.bf16.mxu0 %vm303_vm2, %v2532_v37 }
 0x98f   :  { %4440 = vmatmul.mubr.msk.bf16.vlgmr.msra.gmra.mxu0 %vm303_vm2, %v2534_v58 }
 0x990   :  { %4443 = vmatprep.mubr.msk.bf16.mxu0 %vm303_vm2, %v2536_v42 }
 0x997   :  { %4444 = vmatmul.mubr.msk.bf16.gmra.mxu0 %vm303_vm2, %v2538_v44 }
 0x9e7   :  { %v5959_v61 = vpop.f32.mrf.mxu1 }
 0x9e9   :  { %v5961_v24 = vpop.f32.mrf.mxu1 }
 0x9eb   :  { %v5963_v45 = vpop.f32.mrf.mxu1 }
 0x9ed   :  { %v5965_v30 = vpop.f32.mrf.mxu1 }
 0x9ef   :  { %v5967_v16 = vpop.f32.mrf.mxu1 }
 0x9f1   :  { %v5969_v32 = vpop.f32.mrf.mxu1 }
 0x9f3   :  { %v5971_v29 = vpop.f32.mrf.mxu1 }
 0x9f5   :  { %v5973_v43 = vpop.f32.mrf.mxu1 }
 0x9f7   :  { %v4431_v41 = vpop.f32.mrf.mxu1 }
 0x9f8   :  { %v2627_v20 = vsel %vm860_vm4, %v4431_v41, -inf }
 0x9f9   :  { %v2500_v34 = vpop.f32.mrf.mxu1 }
 0x9fa   :  { %v2621_v3 = vsel %vm860_vm4, %v2500_v34, -inf }
 0x9fb   :  { %2622 = vmax.xlane.f32.xlu0 %v2621_v3  ;;  %v5976_v9 = vpop.f32.mrf.mxu1 }
 0x9fc   :  { %v2630_v54 = vsel %vm860_vm4, %v5976_v9, -inf }
 0x9fd   :  { %v5978_v19 = vpop.f32.mrf.mxu1 }
 0x9fe   :  { %v2624_v31 = vsel %vm860_vm4, %v5978_v19, -inf }
 0x9ff   :  { %2628 = vmax.xlane.f32.xlu0 %v2627_v20  ;;  %2625 = vmax.xlane.f32.xlu1 %v2624_v31 }
 0xa03   :  { %2631 = vmax.xlane.f32.xlu0 %v2630_v54 }
 0xa05   :  { %v5985_v56 = vpop.f32.mrf.mxu1 }
 0xa06   :  { %v2639_v25 = vsel %vm860_vm4, %v5985_v56, -inf }
 0xa07   :  { %v5987_v15 = vpop.f32.mrf.mxu1 }
 0xa08   :  { %v2633_v50 = vsel %vm860_vm4, %v5987_v15, -inf }
 0xa09   :  { %2634 = vmax.xlane.f32.xlu0 %v2633_v50  ;;  %v5991_v48 = vpop.f32.mrf.mxu1 }
 0xa0a   :  { %v2642_v38 = vsel %vm860_vm4, %v5991_v48, -inf }
 0xa0b   :  { %v5993_v7 = vpop.f32.mrf.mxu1 }
 0xa0c   :  { %v2636_v59 = vsel %vm860_vm4, %v5993_v7, -inf  ;;  %v6001_v4 = vpop.f32.mrf.mxu0 }
 0xa0d   :  { %2640 = vmax.xlane.f32.xlu0 %v2639_v25  ;;  %2637 = vmax.xlane.f32.xlu1 %v2636_v59 }
 0xa0e   :  { %v6003_v55 = vpop.f32.mrf.mxu0 }
 0xa10   :  { %v6005_v36 = vpop.f32.mrf.mxu0 }
 0xa11   :  { %2643 = vmax.xlane.f32.xlu1 %v2642_v38 }
 0xa12   :  { %v6007_v18 = vpop.f32.mrf.mxu0 }
 0xa47   :  { %v6009_v1 = vpop.f32.mrf.mxu0 }
 0xa49   :  { %v6011_v17 = vpop.f32.mrf.mxu0 }
 0xa4b   :  { %v6013_v57 = vpop.f32.mrf.mxu0 }
 0xa4c   :  { %6605 = vst [vmem:[#allocation19_spill] sm:$0xff] %v6013_v57 }
 0xa4d   :  { %v6015_v37 = vpop.f32.mrf.mxu0 }
 0xa4f   :  { %v6017_v58 = vpop.f32.mrf.mxu0 }
 0xa50   :  { %v2651_v31 = vsel %vm860_vm4, %v6017_v58, -inf }
 0xa51   :  { %v6019_v42 = vpop.f32.mrf.mxu0 }
 0xa52   :  { %v2645_v44 = vsel %vm860_vm4, %v6019_v42, -inf }
 0xa53   :  { %2646 = vmax.xlane.f32.xlu0 %v2645_v44  ;;  %v6023_v3 = vpop.f32.mrf.mxu0 }
 0xa54   :  { %v2654_v59 = vsel %vm860_vm4, %v6023_v3, -inf }
 0xa55   :  { %v6025_v20 = vpop.f32.mrf.mxu0 }
 0xa56   :  { %v2648_v54 = vsel %vm860_vm4, %v6025_v20, -inf }
 0xa57   :  { %2652 = vmax.xlane.f32.xlu0 %v2651_v31  ;;  %2649 = vmax.xlane.f32.xlu1 %v2648_v54  ;;  %v6031_v50 = vpop.f32.mrf.mxu0 }
 0xa58   :  { %v2663_v31 = vsel %vm860_vm4, %v6031_v50, -inf }
 0xa59   :  { %v6033_v25 = vpop.f32.mrf.mxu0 }
 0xa5a   :  { %v2657_v38 = vsel %vm860_vm4, %v6033_v25, -inf }
 0xa5b   :  { %2655 = vmax.xlane.f32.xlu1 %v2654_v59  ;;  %2658 = vmax.xlane.f32.xlu0 %v2657_v38  ;;  %v6039_v44 = vpop.f32.mrf.mxu0 }
 0xa5c   :  { %v2666_v6 = vsel %vm860_vm4, %v6039_v44, -inf }
 0xa5d   :  { %v6041_v10 = vpop.f32.mrf.mxu0 }
 0xa5e   :  { %v2660_v54 = vsel %vm860_vm4, %v6041_v10, -inf }
 0xa5f   :  { %2664 = vmax.xlane.f32.xlu0 %v2663_v31  ;;  %2661 = vmax.xlane.f32.xlu1 %v2660_v54 }
 0xa63   :  { %2667 = vmax.xlane.f32.xlu1 %v2666_v6 }
 0xa84   :  { %v2623_v8 = vpop.xlane.xlu0 %2622 }
 0xa85   :  { %v2669_v63 = vsub.f32 %v2500_v34, %v2623_v8 }
 0xa87   :  { %v2685_v60 = vmul.f32 1.442695, %v2669_v63 }
 0xa88   :  { %v2629_v59 = vpop.xlane.xlu0 %2628  ;;  %v2626_v38 = vpop.xlane.xlu1 %2625 }
 0xa89   :  { %v2671_v0 = vsub.f32 %v4431_v41, %v2629_v59  ;;  %v2670_v52 = vsub.f32 %v5978_v19, %v2626_v38 }
 0xa8b   :  { %v2689_v62 = vmul.f32 1.442695, %v2671_v0  ;;  %v2687_v31 = vmul.f32 1.442695, %v2670_v52 }
 0xa8c   :  { %v2632_v53 = vpop.xlane.xlu0 %2631 }
 0xa8d   :  { %4785 = vpow2.f32 %v2689_v62  ;;  %v2672_v49 = vsub.f32 %v5976_v9, %v2632_v53 }
 0xa8e   :  { %4787 = vpow2.f32 %v2685_v60 }
 0xa8f   :  { %v2691_v54 = vmul.f32 1.442695, %v2672_v49 }
 0xa91   :  { %4789 = vpow2.f32 %v2691_v54 }
 0xa92   :  { %v2635_v51 = vpop.xlane.xlu0 %2634  ;;  %4791 = vpow2.f32 %v2687_v31 }
 0xa93   :  { %v2673_v6 = vsub.f32 %v5987_v15, %v2635_v51 }
 0xa95   :  { %v2693_v63 = vmul.f32 1.442695, %v2673_v6 }
 0xa96   :  { %v2641_v8 = vpop.xlane.xlu0 %2640  ;;  %v2638_v34 = vpop.xlane.xlu1 %2637 }
 0xa97   :  { %v2675_v41 = vsub.f32 %v5985_v56, %v2641_v8  ;;  %v2674_v19 = vsub.f32 %v5993_v7, %v2638_v34 }
 0xa99   :  { %v2697_v0 = vmul.f32 1.442695, %v2675_v41  ;;  %v2695_v51 = vmul.f32 1.442695, %v2674_v19 }
 0xa9a   :  { %v6054_v59 = vpop.eup %4785  ;;  %v2644_v62 = vpop.xlane.xlu1 %2643 }
 0xa9b   :  { %4793 = vpow2.f32 %v2697_v0  ;;  %v2676_v52 = vsub.f32 %v5991_v48, %v2644_v62  ;;  %v2723_v49 = vsel %vm860_vm4, %v6054_v59, 0.0  ;;  %v6059_v53 = vpop.eup %4787 }
 0xa9c   :  { %2724 = vadd.xlane.f32.xlu0 %v2723_v49  ;;  %4795 = vpow2.f32 %v2693_v63  ;;  %v2717_v56 = vsel %vm860_vm4, %v6059_v53, 0.0 }
 0xa9d   :  { %v2699_v60 = vmul.f32 1.442695, %v2676_v52 }
 0xa9e   :  { %v6061_v9 = vpop.eup %4789 }
 0xa9f   :  { %4797 = vpow2.f32 %v2699_v60  ;;  %v2726_v15 = vsel %vm860_vm4, %v6061_v9, 0.0  ;;  %v6067_v7 = vpop.eup %4791 }
 0xaa0   :  { %2718 = vadd.xlane.f32.xlu0 %v2717_v56  ;;  %2727 = vadd.xlane.f32.xlu1 %v2726_v15  ;;  %4799 = vpow2.f32 %v2695_v51  ;;  %v2720_v48 = vsel %vm860_vm4, %v6067_v7, 0.0 }
 0xaa4   :  { %2721 = vadd.xlane.f32.xlu1 %v2720_v48 }
 0xaa8   :  { %v6071_v38 = vpop.eup %4793 }
 0xaa9   :  { %v2735_v31 = vsel %vm860_vm4, %v6071_v38, 0.0  ;;  %v6075_v54 = vpop.eup %4795 }
 0xaaa   :  { %2736 = vadd.xlane.f32.xlu0 %v2735_v31  ;;  %v2729_v8 = vsel %vm860_vm4, %v6075_v54, 0.0 }
 0xaac   :  { %v6077_v6 = vpop.eup %4797 }
 0xaad   :  { %v2738_v34 = vsel %vm860_vm4, %v6077_v6, 0.0  ;;  %v6083_v41 = vpop.eup %4799 }
 0xaae   :  { %2730 = vadd.xlane.f32.xlu0 %v2729_v8  ;;  %2739 = vadd.xlane.f32.xlu1 %v2738_v34  ;;  %v2732_v63 = vsel %vm860_vm4, %v6083_v41, 0.0 }
 0xab2   :  { %2733 = vadd.xlane.f32.xlu1 %v2732_v63 }
 0xadc   :  { %v2647_v0 = vpop.xlane.xlu0 %2646 }
 0xadd   :  { %v2677_v19 = vsub.f32 %v6019_v42, %v2647_v0 }
 0xadf   :  { %v2701_v51 = vmul.f32 1.442695, %v2677_v19 }
 0xae0   :  { %v2653_v62 = vpop.xlane.xlu0 %2652  ;;  %v2650_v52 = vpop.xlane.xlu1 %2649 }
 0xae1   :  { %v2679_v49 = vsub.f32 %v6017_v58, %v2653_v62  ;;  %v2678_v56 = vsub.f32 %v6025_v20, %v2650_v52 }
 0xae3   :  { %v2705_v60 = vmul.f32 1.442695, %v2679_v49  ;;  %v2703_v63 = vmul.f32 1.442695, %v2678_v56 }
 0xae4   :  { %v2659_v15 = vpop.xlane.xlu0 %2658  ;;  %v2656_v48 = vpop.xlane.xlu1 %2655 }
 0xae5   :  { %4801 = vpow2.f32 %v2705_v60  ;;  %v2680_v31 = vsub.f32 %v6023_v3, %v2656_v48  ;;  %v2681_v8 = vsub.f32 %v6033_v25, %v2659_v15 }
 0xae6   :  { %4803 = vpow2.f32 %v2701_v51 }
 0xae7   :  { %v2707_v34 = vmul.f32 1.442695, %v2680_v31  ;;  %v2709_v58 = vmul.f32 1.442695, %v2681_v8 }
 0xae8   :  { %v2665_v57 = vpop.xlane.xlu0 %2664  ;;  %v2662_v42 = vpop.xlane.xlu1 %2661 }
 0xae9   :  { %v2683_v0 = vsub.f32 %v6031_v50, %v2665_v57  ;;  %4805 = vpow2.f32 %v2707_v34  ;;  %v2682_v20 = vsub.f32 %v6041_v10, %v2662_v42 }
 0xaea   :  { %4807 = vpow2.f32 %v2703_v63 }
 0xaeb   :  { %v2713_v19 = vmul.f32 1.442695, %v2683_v0  ;;  %v2711_v49 = vmul.f32 1.442695, %v2682_v20 }
 0xaec   :  { %v2668_v62 = vpop.xlane.xlu1 %2667 }
 0xaed   :  { %4809 = vpow2.f32 %v2713_v19  ;;  %v2684_v52 = vsub.f32 %v6039_v44, %v2668_v62 }
 0xaee   :  { %4811 = vpow2.f32 %v2709_v58 }
 0xaef   :  { %v2715_v3 = vmul.f32 1.442695, %v2684_v52 }
 0xaf1   :  { %4813 = vpow2.f32 %v2715_v3 }
 0xaf2   :  { %v6095_v25 = vpop.eup %4801  ;;  %4815 = vpow2.f32 %v2711_v49 }
 0xaf3   :  { %v2747_v51 = vsel %vm860_vm4, %v6095_v25, 0.0  ;;  %v6099_v57 = vpop.eup %4803 }
 0xaf4   :  { %2748 = vadd.xlane.f32.xlu0 %v2747_v51  ;;  %v2741_v10 = vsel %vm860_vm4, %v6099_v57, 0.0 }
 0xaf6   :  { %v6101_v50 = vpop.eup %4805 }
 0xaf7   :  { %v2750_v44 = vsel %vm860_vm4, %v6101_v50, 0.0  ;;  %v6107_v60 = vpop.eup %4807 }
 0xaf8   :  { %2742 = vadd.xlane.f32.xlu0 %v2741_v10  ;;  %2751 = vadd.xlane.f32.xlu1 %v2750_v44  ;;  %v2744_v31 = vsel %vm860_vm4, %v6107_v60, 0.0 }
 0xafa   :  { %v6109_v56 = vpop.eup %4809 }
 0xafb   :  { %v2759_v15 = vsel %vm860_vm4, %v6109_v56, 0.0  ;;  %v6113_v48 = vpop.eup %4811 }
 0xafc   :  { %2760 = vadd.xlane.f32.xlu0 %v2759_v15  ;;  %2745 = vadd.xlane.f32.xlu1 %v2744_v31  ;;  %v2753_v34 = vsel %vm860_vm4, %v6113_v48, 0.0 }
 0xafe   :  { %v6117_v8 = vpop.eup %4813 }
 0xaff   :  { %v2762_v63 = vsel %vm860_vm4, %v6117_v8, 0.0  ;;  %v6123_v42 = vpop.eup %4815 }
 0xb00   :  { %2754 = vadd.xlane.f32.xlu0 %v2753_v34  ;;  %2763 = vadd.xlane.f32.xlu1 %v2762_v63  ;;  %v2756_v0 = vsel %vm860_vm4, %v6123_v42, 0.0 }
 0xb04   :  { %2757 = vadd.xlane.f32.xlu1 %v2756_v0 }
 0xb15   :  { %2885 = vrot.lane.b32.xlu1 %v5240_v21, %s4919_s4 }
 0xb16   :  { %2805 = vrot.lane.b32.xlu0 %v5232_v14, %s4919_s4 }
 0xb19   :  { %1771 = vrot.lane.b32.xlu1 %v5731_v26, %s4920_s19 }
 0xb1a   :  { %1775 = vrot.lane.b32.xlu0 %v5729_v27, %s4920_s19 }
 0xb1d   :  { %1773 = vrot.lane.b32.xlu1 %v5735_v39, %s4920_s19 }
 0xb1e   :  { %2376 = vrot.lane.b32.xlu0 %v5961_v24, %s4921_s20 }
 0xb21   :  { %1777 = vrot.lane.b32.xlu1 %v5733_v23, %s4920_s19 }
 0xb22   :  { %2380 = vrot.lane.b32.xlu0 %v5959_v61, %s4921_s20 }
 0xb25   :  { %v2725_v14 = vpop.xlane.xlu0 %2724  ;;  %2378 = vrot.lane.b32.xlu1 %v5965_v30, %s4921_s20 }
 0xb26   :  { %1779 = vrot.lane.b32.xlu0 %v5739_v2, %s4920_s19  ;;  %4817 = vrcp.f32 %v2725_v14 }
 0xb29   :  { %v2719_v21 = vpop.xlane.xlu0 %2718  ;;  %v2728_v27 = vpop.xlane.xlu1 %2727  ;;  %2382 = vrot.lane.b32.xlu1 %v5963_v45, %s4921_s20 }
 0xb2a   :  { %1783 = vrot.lane.b32.xlu0 %v5737_v12, %s4920_s19  ;;  %4819 = vrcp.f32 %v2728_v27 }
 0xb2b   :  { %4821 = vrcp.f32 %v2719_v21 }
 0xb2d   :  { %v2722_v26 = vpop.xlane.xlu1 %2721  ;;  %1781 = vrot.lane.b32.xlu1 %v5743_v46, %s4920_s19 }
 0xb2e   :  { %4823 = vrcp.f32 %v2722_v26  ;;  %2384 = vrot.lane.b32.xlu0 %v5969_v32, %s4921_s20 }
 0xb31   :  { %1785 = vrot.lane.b32.xlu1 %v5741_v22, %s4920_s19 }
 0xb32   :  { %2388 = vrot.lane.b32.xlu0 %v5967_v16, %s4921_s20 }
 0xb33   :  { %v4818_v23 = vpop.eup %4817 }
 0xb34   :  { %v6162_v2 = vmul.f32 %v4818_v23, %v6054_v59 }
 0xb35   :  { %2386 = vrot.lane.b32.xlu1 %v5973_v43, %s4921_s20 }
 0xb36   :  { %1787 = vrot.lane.b32.xlu0 %v5773_v13, %s4920_s19 }
 0xb37   :  { %v4820_v39 = vpop.eup %4819 }
 0xb38   :  { %v4822_v12 = vpop.eup %4821  ;;  %v2784_v46 = vmul.f32 %v4820_v39, %v6061_v9 }
 0xb39   :  { %2390 = vrot.lane.b32.xlu1 %v5971_v29, %s4921_s20  ;;  %v2781_v24 = vmul.f32 %v4822_v12, %v6059_v53 }
 0xb3a   :  { %1791 = vrot.lane.b32.xlu0 %v5771_v5, %s4920_s19  ;;  %v2798_v61 = vpack.c.bf16 %v2784_v46, %v6162_v2  ;;  %v2737_v5 = vpop.xlane.xlu0 %2736 }
 0xb3b   :  { %v4824_v22 = vpop.eup %4823 }
 0xb3c   :  { %v2782_v13 = vmul.f32 %v4824_v22, %v6067_v7 }
 0xb3d   :  { %1789 = vrot.lane.b32.xlu1 %v5777_v11, %s4920_s19 }
 0xb3e   :  { %2392 = vrot.lane.b32.xlu0 %v6003_v55, %s4921_s20  ;;  %v2797_v45 = vpack.c.bf16 %v2782_v13, %v2781_v24  ;;  %v2731_v11 = vpop.xlane.xlu0 %2730 }
 0xb40   :  { %4449 = vmatprep.mubr.msk.bf16.mxu1 %vm860_vm4, %v2797_v45 }
 0xb41   :  { %1793 = vrot.lane.b32.xlu1 %v5775_v40, %s4920_s19  ;;  %v2740_v40 = vpop.xlane.xlu1 %2739 }
 0xb42   :  { %2396 = vrot.lane.b32.xlu0 %v6001_v4, %s4921_s20 }
 0xb45   :  { %2394 = vrot.lane.b32.xlu1 %v6007_v18, %s4921_s20 }
 0xb46   :  { %1795 = vrot.lane.b32.xlu0 %v5781_v33, %s4920_s19  ;;  %v2734_v33 = vpop.xlane.xlu1 %2733 }
 0xb47   :  { %4825 = vrcp.f32 %v2734_v33 }
 0xb48   :  { %4827 = vrcp.f32 %v2731_v11 }
 0xb49   :  { %2398 = vrot.lane.b32.xlu1 %v6005_v36, %s4921_s20  ;;  %4829 = vrcp.f32 %v2737_v5 }
 0xb4a   :  { %1799 = vrot.lane.b32.xlu0 %v5779_v35, %s4920_s19  ;;  %4831 = vrcp.f32 %v2740_v40 }
 0xb4d   :  { %1797 = vrot.lane.b32.xlu1 %v5785_v28, %s4920_s19 }
 0xb4e   :  { %2400 = vrot.lane.b32.xlu0 %v6011_v17, %s4921_s20 }
 0xb51   :  { %1801 = vrot.lane.b32.xlu1 %v5783_v47, %s4920_s19 }
 0xb54   :  { %v4826_v29 = vpop.eup %4825 }
 0xb55   :  { %2402 = vrot.lane.b32.xlu1 %v6015_v37, %s4921_s20  ;;  %v4828_v4 = vpop.eup %4827  ;;  %v2786_v36 = vmul.f32 %v4826_v29, %v6083_v41 }
 0xb56   :  { %v4830_v17 = vpop.eup %4829  ;;  %v2785_v37 = vmul.f32 %v4828_v4, %v6075_v54 }
 0xb57   :  { %v4832_v59 = vpop.eup %4831  ;;  %v2787_v44 = vmul.f32 %v4830_v17, %v6071_v38 }
 0xb58   :  { %v2799_v7 = vpack.c.bf16 %v2786_v36, %v2785_v37  ;;  %v2788_v54 = vmul.f32 %v4832_v59, %v6077_v6 }
 0xb7d   :  { %v2749_v30 = vpop.xlane.xlu0 %2748 }
 0xb81   :  { %v2743_v35 = vpop.xlane.xlu0 %2742  ;;  %v2752_v16 = vpop.xlane.xlu1 %2751 }
 0xb82   :  { %4833 = vrcp.f32 %v2752_v16 }
 0xb83   :  { %4835 = vrcp.f32 %v2743_v35 }
 0xb84   :  { %4837 = vrcp.f32 %v2749_v30 }
 0xb85   :  { %v2761_v28 = vpop.xlane.xlu0 %2760  ;;  %v2746_v32 = vpop.xlane.xlu1 %2745 }
 0xb86   :  { %4839 = vrcp.f32 %v2746_v32 }
 0xb89   :  { %v2755_v47 = vpop.xlane.xlu0 %2754  ;;  %v2764_v43 = vpop.xlane.xlu1 %2763 }
 0xb8a   :  { %4841 = vrcp.f32 %v2764_v43  ;;  %v4581_v43 = vld [vmem:[%s6555_s10 + $0x8] sm:$0xff]  }
 0xb8b   :  { %4843 = vrcp.f32 %v2755_v47 }
 0xb8c   :  { %4845 = vrcp.f32 %v2761_v28 }
 0xb8d   :  { %v2806_v55 = vpop.permute.xlu0 %2805  ;;  %v2758_v18 = vpop.xlane.xlu1 %2757 }
 0xb8e   :  { %4447 = vmatprep.subr.bf16.mxu1 %v2806_v55  ;;  %4847 = vrcp.f32 %v2758_v18 }
 0xb8f   :  { %4448 = vmatpush3.bf16.msra.mxu1 %v2806_v55  ;;  %v4834_v53 = vpop.eup %4833  ;;  %v4582_v55 = vld [vmem:[%s6555_s10] sm:$0xff]  }
 0xb90   :  { %v4836_v58 = vpop.eup %4835  ;;  %v2792_v62 = vmul.f32 %v4834_v53, %v6101_v50  ;;  %v2800_v50 = vpack.c.bf16 %v2788_v54, %v2787_v44  ;;  %4467 = vmatprep.subr.bf16.mxu1 %v4581_v43 }
 0xb91   :  { %v1776_v9 = vpop.permute.xlu0 %1775  ;;  %v2886_v19 = vpop.permute.xlu1 %2885  ;;  %v2789_v3 = vmul.f32 %v4836_v58, %v6099_v57 }
 0xb92   :  { %1822 = vst.msk [vmem:[#allocation2 + $0x10] sm:$0xff] %vm1819_vm5, %v1776_v9  ;;  %4450 = vmatmul.mubr.msk.bf16.vlgmr.msra.gmra.mxu1 %vm860_vm4, %v2798_v61  ;;  %v4838_v41 = vpop.eup %4837  ;;  %4457 = vmatprep.subr.bf16.mxu0 %v2886_v19 }
 0xb93   :  { %4453 = vmatprep.mubr.msk.bf16.mxu1 %vm860_vm4, %v2799_v7  ;;  %v4840_v20 = vpop.eup %4839  ;;  %4458 = vmatpush3.bf16.msra.mxu0 %v2886_v19  ;;  %v2791_v51 = vmul.f32 %v4838_v41, %v6095_v25 }
 0xb94   :  { %v2790_v49 = vmul.f32 %v4840_v20, %v6107_v60  ;;  %4468 = vmatpush3.bf16.msra.mxu1 %v4581_v43 }
 0xb95   :  { %v2377_v52 = vpop.permute.xlu0 %2376  ;;  %v1772_v10 = vpop.permute.xlu1 %1771  ;;  %v2802_v31 = vpack.c.bf16 %v2792_v62, %v2791_v51  ;;  %4469 = vmatprep.subr.bf16.mxu1 %v4582_v55 }
 0xb96   :  { %1820 = vst.msk [vmem:[#allocation2] sm:$0xff] %vm1819_vm5, %v1772_v10  ;;  %v2801_v15 = vpack.c.bf16 %v2790_v49, %v2789_v3 }
 0xb97   :  { %2425 = vst.msk [vmem:[#allocation2] sm:$0xff] %vm2424_vm6, %v2377_v52  ;;  %v4842_v34 = vpop.eup %4841  ;;  %v6606_v52 = vld [vmem:[#allocation19_spill] sm:$0xff] }
 0xb98   :  { %4459 = vmatprep.mubr.msk.bf16.mxu0 %vm860_vm4, %v2801_v15  ;;  %v4844_v57 = vpop.eup %4843  ;;  %v2796_v63 = vmul.f32 %v4842_v34, %v6117_v8  ;;  %4470 = vmatpush3.bf16.msra.mxu1 %v4582_v55 }
 0xb99   :  { %v2381_v6 = vpop.permute.xlu0 %2380  ;;  %4460 = vmatmul.mubr.msk.bf16.vlgmr.msra.gmra.mxu0 %vm860_vm4, %v2802_v31  ;;  %v1774_v25 = vpop.permute.xlu1 %1773  ;;  %v2793_v14 = vmul.f32 %v4844_v57, %v6113_v48 }
 0xb9a   :  { %2427 = vst.msk [vmem:[#allocation2 + $0x10] sm:$0xff] %vm2424_vm6, %v2381_v6  ;;  %4454 = vmatmul.mubr.msk.bf16.gmra.mxu1 %vm860_vm4, %v2800_v50  ;;  %v4846_v38 = vpop.eup %4845 }
 0xb9b   :  { %1821 = vst.msk [vmem:[#allocation2 + $0x8] sm:$0xff] %vm1819_vm5, %v1774_v25  ;;  %v4848_v60 = vpop.eup %4847  ;;  %v2795_v26 = vmul.f32 %v4846_v38, %v6109_v56 }
 0xb9c   :  { %v2794_v21 = vmul.f32 %v4848_v60, %v6123_v42 }
 0xb9d   :  { %v1780_v0 = vpop.permute.xlu0 %1779  ;;  %v1778_v27 = vpop.permute.xlu1 %1777  ;;  %v2804_v39 = vpack.c.bf16 %v2796_v63, %v2795_v26 }
 0xb9e   :  { %1824 = vst.msk [vmem:[#allocation2 + $0x20] sm:$0xff] %vm1819_vm5, %v1780_v0  ;;  %1823 = vst.msk [vmem:[#allocation2 + $0x18] sm:$0xff] %vm1819_vm5, %v1778_v27  ;;  %v2803_v23 = vpack.c.bf16 %v2794_v21, %v2793_v14 }
 0xba0   :  { %4463 = vmatprep.mubr.msk.bf16.mxu0 %vm860_vm4, %v2803_v23 }
 0xba1   :  { %v1784_v12 = vpop.permute.xlu0 %1783  ;;  %4464 = vmatmul.mubr.msk.bf16.gmra.mxu0 %vm860_vm4, %v2804_v39  ;;  %v2379_v8 = vpop.permute.xlu1 %2378 }
 0xba2   :  { %1826 = vst.msk [vmem:[#allocation2 + $0x30] sm:$0xff] %vm1819_vm5, %v1784_v12 }
 0xba3   :  { %2426 = vst.msk [vmem:[#allocation2 + $0x8] sm:$0xff] %vm2424_vm6, %v2379_v8 }
 0xba5   :  { %v2385_v48 = vpop.permute.xlu0 %2384  ;;  %v2383_v42 = vpop.permute.xlu1 %2382 }
 0xba6   :  { %2429 = vst.msk [vmem:[#allocation2 + $0x20] sm:$0xff] %vm2424_vm6, %v2385_v48  ;;  %2428 = vst.msk [vmem:[#allocation2 + $0x18] sm:$0xff] %vm2424_vm6, %v2383_v42 }
 0xba9   :  { %v2389_v56 = vpop.permute.xlu0 %2388  ;;  %v1782_v2 = vpop.permute.xlu1 %1781 }
 0xbaa   :  { %2431 = vst.msk [vmem:[#allocation2 + $0x30] sm:$0xff] %vm2424_vm6, %v2389_v56 }
 0xbab   :  { %1825 = vst.msk [vmem:[#allocation2 + $0x28] sm:$0xff] %vm1819_vm5, %v1782_v2 }
 0xbad   :  { %v1788_v46 = vpop.permute.xlu0 %1787  ;;  %v1786_v22 = vpop.permute.xlu1 %1785 }
 0xbae   :  { %1828 = vst.msk [vmem:[#allocation2 + $0x40] sm:$0xff] %vm1819_vm5, %v1788_v46  ;;  %1827 = vst.msk [vmem:[#allocation2 + $0x38] sm:$0xff] %vm1819_vm5, %v1786_v22 }
 0xbb1   :  { %v1792_v61 = vpop.permute.xlu0 %1791  ;;  %v2387_v24 = vpop.permute.xlu1 %2386 }
 0xbb2   :  { %1830 = vst.msk [vmem:[#allocation2 + $0x50] sm:$0xff] %vm1819_vm5, %v1792_v61 }
 0xbb3   :  { %2430 = vst.msk [vmem:[#allocation2 + $0x28] sm:$0xff] %vm2424_vm6, %v2387_v24 }
 0xbb5   :  { %v2393_v13 = vpop.permute.xlu0 %2392  ;;  %v2391_v45 = vpop.permute.xlu1 %2390 }
 0xbb6   :  { %2433 = vst.msk [vmem:[#allocation2 + $0x40] sm:$0xff] %vm2424_vm6, %v2393_v13  ;;  %2432 = vst.msk [vmem:[#allocation2 + $0x38] sm:$0xff] %vm2424_vm6, %v2391_v45 }
 0xbb9   :  { %v2397_v5 = vpop.permute.xlu0 %2396  ;;  %v1790_v40 = vpop.permute.xlu1 %1789 }
 0xbba   :  { %2435 = vst.msk [vmem:[#allocation2 + $0x50] sm:$0xff] %vm2424_vm6, %v2397_v5 }
 0xbbb   :  { %1829 = vst.msk [vmem:[#allocation2 + $0x48] sm:$0xff] %vm1819_vm5, %v1790_v40 }
 0xbbd   :  { %v1796_v11 = vpop.permute.xlu0 %1795  ;;  %v1794_v33 = vpop.permute.xlu1 %1793 }
 0xbbe   :  { %1832 = vst.msk [vmem:[#allocation2 + $0x60] sm:$0xff] %vm1819_vm5, %v1796_v11  ;;  %1831 = vst.msk [vmem:[#allocation2 + $0x58] sm:$0xff] %vm1819_vm5, %v1794_v33 }
 0xbc1   :  { %v1800_v30 = vpop.permute.xlu0 %1799  ;;  %v2395_v35 = vpop.permute.xlu1 %2394 }
 0xbc2   :  { %1834 = vst.msk [vmem:[#allocation2 + $0x70] sm:$0xff] %vm1819_vm5, %v1800_v30 }
 0xbc3   :  { %2434 = vst.msk [vmem:[#allocation2 + $0x48] sm:$0xff] %vm2424_vm6, %v2395_v35 }
 0xbc5   :  { %v2401_v16 = vpop.permute.xlu0 %2400  ;;  %v2399_v28 = vpop.permute.xlu1 %2398 }
 0xbc6   :  { %2437 = vst.msk [vmem:[#allocation2 + $0x60] sm:$0xff] %vm2424_vm6, %v2401_v16  ;;  %2436 = vst.msk [vmem:[#allocation2 + $0x58] sm:$0xff] %vm2424_vm6, %v2399_v28 }
 0xbc9   :  { %v1798_v32 = vpop.permute.xlu1 %1797 }
 0xbca   :  { %1833 = vst.msk [vmem:[#allocation2 + $0x68] sm:$0xff] %vm1819_vm5, %v1798_v32  ;;  %v4583_v32 = vld [vmem:[%s6556_s12 + $0x8] sm:$0xff]  }
 0xbcb   :  { %4487 = vmatprep.subr.bf16.mxu0 %v4583_v32 }
 0xbcc   :  { %4488 = vmatpush3.bf16.msra.mxu0 %v4583_v32 }
 0xbcd   :  { %v1802_v47 = vpop.permute.xlu1 %1801 }
 0xbce   :  { %1835 = vst.msk [vmem:[#allocation2 + $0x78] sm:$0xff] %vm1819_vm5, %v1802_v47  ;;  %v4584_v47 = vld [vmem:[%s6556_s12] sm:$0xff]  }
 0xbcf   :  { %4489 = vmatprep.subr.bf16.mxu0 %v4584_v47 }
 0xbd0   :  { %4490 = vmatpush3.bf16.msra.mxu0 %v4584_v47  ;;  %v6621_v47 = vld [vmem:[#allocation18_spill] sm:$0xff] }
 0xbd1   :  { %v2403_v29 = vpop.permute.xlu1 %2402 }
 0xbd2   :  { %2438 = vst.msk [vmem:[#allocation2 + $0x68] sm:$0xff] %vm2424_vm6, %v2403_v29  ;;  %v4585_v29 = vld [vmem:[%s6557_s14 + $0x18] sm:$0xff]  }
 0xbd3   :  { %4507 = vmatprep.subr.bf16.mxu1 %v4585_v29 }
 0xc52   :  { %v4451_v4 = vpop.f32.mrf.mxu1 }
 0xc53   :  { %2985 = vrot.lane.b32.xlu0 %v4451_v4, %s4922_s5 }
 0xc54   :  { %v2854_v36 = vpop.f32.mrf.mxu1 }
 0xc56   :  { %v4452_v18 = vpop.f32.mrf.mxu1 }
 0xc57   :  { %2981 = vrot.lane.b32.xlu0 %v2854_v36, %s4922_s5  ;;  %2987 = vrot.lane.b32.xlu1 %v4452_v18, %s4922_s5  ;;  %v6607_v36 = vld [vmem:[#allocation4_spill] sm:$0xff] }
 0xc58   :  { %v2857_v17 = vpop.f32.mrf.mxu1 }
 0xc59   :  { %v4461_v37 = vpop.f32.mrf.mxu0 }
 0xc5a   :  { %v4455_v59 = vpop.f32.mrf.mxu1 }
 0xc5b   :  { %2983 = vrot.lane.b32.xlu1 %v2857_v17, %s4922_s5  ;;  %2993 = vrot.lane.b32.xlu0 %v4455_v59, %s4922_s5  ;;  %v2934_v53 = vpop.f32.mrf.mxu0  ;;  %v6608_v17 = vld [vmem:[#allocation3_spill] sm:$0xff]  ;;  %v6609_v59 = vld [vmem:[#allocation6_spill] sm:$0xff] }
 0xc5c   :  { %v2870_v9 = vpop.f32.mrf.mxu1 }
 0xc5d   :  { %v4462_v7 = vpop.f32.mrf.mxu0 }
 0xc5e   :  { %v4456_v58 = vpop.f32.mrf.mxu1 }
 0xc5f   :  { %2989 = vrot.lane.b32.xlu0 %v2870_v9, %s4922_s5  ;;  %2995 = vrot.lane.b32.xlu1 %v4456_v58, %s4922_s5  ;;  %v2937_v19 = vpop.f32.mrf.mxu0  ;;  %v6610_v58 = vld [vmem:[#allocation5_spill] sm:$0xff] }
 0xc60   :  { %v2873_v41 = vpop.f32.mrf.mxu1 }
 0xc61   :  { %v4465_v20 = vpop.f32.mrf.mxu0 }
 0xc63   :  { %2991 = vrot.lane.b32.xlu1 %v2873_v41, %s4922_s5  ;;  %3001 = vrot.lane.b32.xlu0 %v4461_v37, %s4922_s5  ;;  %v2950_v62 = vpop.f32.mrf.mxu0 }
 0xc65   :  { %v4466_v54 = vpop.f32.mrf.mxu0 }
 0xc67   :  { %2997 = vrot.lane.b32.xlu0 %v2934_v53, %s4922_s5  ;;  %3003 = vrot.lane.b32.xlu1 %v4462_v7, %s4922_s5  ;;  %v2953_v3 = vpop.f32.mrf.mxu0  ;;  %v4015_v7 = vld [vmem:[%s6558_s11] ss:$0 sm:$0xff] }
 0xc6b   :  { %2404 = vrot.lane.b32.xlu0 %v6009_v1, %s4921_s20  ;;  %2999 = vrot.lane.b32.xlu1 %v2937_v19, %s4922_s5 }
 0xc6f   :  { %2406 = vrot.lane.b32.xlu1 %v6606_v52, %s4921_s20  ;;  %3005 = vrot.lane.b32.xlu0 %v2950_v62, %s4922_s5 }
 0xc73   :  { %3009 = vrot.lane.b32.xlu0 %v4465_v20, %s4922_s5  ;;  %3007 = vrot.lane.b32.xlu1 %v2953_v3, %s4922_s5 }
 0xc77   :  { %3011 = vrot.lane.b32.xlu1 %v4466_v54, %s4922_s5 }
 0xcc5   :  { %v2986_v49 = vpop.permute.xlu0 %2985 }
 0xcc6   :  { %3032 = vst.msk [vmem:[#allocation2 + $0x10] sm:$0xff] %vm3029_vm7, %v2986_v49 }
 0xcc9   :  { %v2982_v1 = vpop.permute.xlu0 %2981  ;;  %v2988_v51 = vpop.permute.xlu1 %2987 }
 0xcca   :  { %3030 = vst.msk [vmem:[#allocation2] sm:$0xff] %vm3029_vm7, %v2982_v1  ;;  %3033 = vst.msk [vmem:[#allocation2 + $0x18] sm:$0xff] %vm3029_vm7, %v2988_v51 }
 0xccd   :  { %v2994_v10 = vpop.permute.xlu0 %2993  ;;  %v2984_v44 = vpop.permute.xlu1 %2983  ;;  %v3048_v60 = vld [vmem:[#allocation2 + $0x10] sm:$0xff] }
 0xcce   :  { %3036 = vst.msk [vmem:[#allocation2 + $0x30] sm:$0xff] %vm3029_vm7, %v2994_v10  ;;  %3031 = vst.msk [vmem:[#allocation2 + $0x8] sm:$0xff] %vm3029_vm7, %v2984_v44  ;;  %v6611_v10 = vld [vmem:[#allocation8_spill] sm:$0xff] }
 0xcd1   :  { %v2990_v15 = vpop.permute.xlu0 %2989  ;;  %v2996_v31 = vpop.permute.xlu1 %2995  ;;  %v3049_v50 = vld [vmem:[#allocation2 + $0x18] sm:$0xff]  ;;  %v3046_v57 = vld [vmem:[#allocation2] sm:$0xff] }
 0xcd2   :  { %3034 = vst.msk [vmem:[#allocation2 + $0x20] sm:$0xff] %vm3029_vm7, %v2990_v15  ;;  %3037 = vst.msk [vmem:[#allocation2 + $0x38] sm:$0xff] %vm3029_vm7, %v2996_v31  ;;  %v3063_v63 = vpack.c.bf16 %v3049_v50, %v3048_v60  ;;  %v6612_v15 = vld [vmem:[#allocation7_spill] sm:$0xff]  ;;  %v6613_v50 = vld [vmem:[#allocation10_spill] sm:$0xff] }
 0xcd5   :  { %v3002_v34 = vpop.permute.xlu0 %3001  ;;  %v2992_v6 = vpop.permute.xlu1 %2991  ;;  %v3047_v25 = vld [vmem:[#allocation2 + $0x8] sm:$0xff]  ;;  %v3052_v8 = vld [vmem:[#allocation2 + $0x30] sm:$0xff] }
 0xcd6   :  { %3040 = vst.msk [vmem:[#allocation2 + $0x50] sm:$0xff] %vm3029_vm7, %v3002_v34  ;;  %3035 = vst.msk [vmem:[#allocation2 + $0x28] sm:$0xff] %vm3029_vm7, %v2992_v6  ;;  %v3062_v38 = vpack.c.bf16 %v3047_v25, %v3046_v57  ;;  %v6614_v57 = vld [vmem:[#allocation9_spill] sm:$0xff] }
 0xcd8   :  { %4471 = vmatprep.mubr.msk.bf16.mxu1 %vm493_vm3, %v3062_v38 }
 0xcd9   :  { %v2998_v0 = vpop.permute.xlu0 %2997  ;;  %4472 = vmatmul.mubr.msk.bf16.vlgmr.msra.gmra.mxu1 %vm493_vm3, %v3063_v63  ;;  %v3004_v14 = vpop.permute.xlu1 %3003  ;;  %v3053_v21 = vld [vmem:[#allocation2 + $0x38] sm:$0xff]  ;;  %v3050_v23 = vld [vmem:[#allocation2 + $0x20] sm:$0xff] }
 0xcda   :  { %3038 = vst.msk [vmem:[#allocation2 + $0x40] sm:$0xff] %vm3029_vm7, %v2998_v0  ;;  %3041 = vst.msk [vmem:[#allocation2 + $0x58] sm:$0xff] %vm3029_vm7, %v3004_v14  ;;  %v3065_v48 = vpack.c.bf16 %v3053_v21, %v3052_v8  ;;  %4508 = vmatpush3.bf16.msra.mxu1 %v4585_v29  ;;  %v6616_v8 = vld [vmem:[#allocation11_spill] sm:$0xff] }
 0xcdd   :  { %v2405_v27 = vpop.permute.xlu0 %2404  ;;  %v3000_v26 = vpop.permute.xlu1 %2999  ;;  %v3051_v39 = vld [vmem:[#allocation2 + $0x28] sm:$0xff]  ;;  %v3056_v45 = vld [vmem:[#allocation2 + $0x50] sm:$0xff] }
 0xcde   :  { %2439 = vst.msk [vmem:[#allocation2 + $0x70] sm:$0xff] %vm2424_vm6, %v2405_v27  ;;  %v3064_v12 = vpack.c.bf16 %v3051_v39, %v3050_v23  ;;  %v6615_v39 = vld [vmem:[#allocation12_spill] sm:$0xff] }
 0xcdf   :  { %3039 = vst.msk [vmem:[#allocation2 + $0x48] sm:$0xff] %vm3029_vm7, %v3000_v26 }
 0xce0   :  { %4475 = vmatprep.mubr.msk.bf16.mxu1 %vm493_vm3, %v3064_v12 }
 0xce1   :  { %v3006_v42 = vpop.permute.xlu0 %3005  ;;  %4476 = vmatmul.mubr.msk.bf16.gmra.mxu1 %vm493_vm3, %v3065_v48  ;;  %v2407_v56 = vpop.permute.xlu1 %2406  ;;  %v3057_v2 = vld [vmem:[#allocation2 + $0x58] sm:$0xff]  ;;  %v3054_v61 = vld [vmem:[#allocation2 + $0x40] sm:$0xff] }
 0xce2   :  { %3042 = vst.msk [vmem:[#allocation2 + $0x60] sm:$0xff] %vm3029_vm7, %v3006_v42  ;;  %v3067_v5 = vpack.c.bf16 %v3057_v2, %v3056_v45  ;;  %v6617_v42 = vld [vmem:[#allocation14_spill] sm:$0xff] }
 0xce3   :  { %2440 = vst.msk [vmem:[#allocation2 + $0x78] sm:$0xff] %vm2424_vm6, %v2407_v56 }
 0xce5   :  { %v3010_v46 = vpop.permute.xlu0 %3009  ;;  %v3008_v22 = vpop.permute.xlu1 %3007 }
 0xce6   :  { %v3055_v24 = vld [vmem:[#allocation2 + $0x48] sm:$0xff]  ;;  %3044 = vst.msk [vmem:[#allocation2 + $0x70] sm:$0xff] %vm3029_vm7, %v3010_v46  ;;  %3043 = vst.msk [vmem:[#allocation2 + $0x68] sm:$0xff] %vm3029_vm7, %v3008_v22  ;;  %v6618_v46 = vld [vmem:[#allocation13_spill] sm:$0xff] }
 0xce7   :  { %v3066_v13 = vpack.c.bf16 %v3055_v24, %v3054_v61 }
 0xce9   :  { %4479 = vmatprep.mubr.msk.bf16.mxu1 %vm493_vm3, %v3066_v13  ;;  %v3012_v40 = vpop.permute.xlu1 %3011  ;;  %v3058_v11 = vld [vmem:[#allocation2 + $0x60] sm:$0xff] }
 0xcea   :  { %4480 = vmatmul.mubr.msk.bf16.gmra.mxu1 %vm493_vm3, %v3067_v5  ;;  %3045 = vst.msk [vmem:[#allocation2 + $0x78] sm:$0xff] %vm3029_vm7, %v3012_v40 }
 0xced   :  { %v3059_v33 = vld [vmem:[#allocation2 + $0x68] sm:$0xff]  ;;  %v3060_v35 = vld [vmem:[#allocation2 + $0x70] sm:$0xff] }
 0xcee   :  { %v3068_v30 = vpack.c.bf16 %v3059_v33, %v3058_v11 }
 0xcf0   :  { %4483 = vmatprep.mubr.msk.bf16.mxu1 %vm493_vm3, %v3068_v30 }
 0xcf1   :  { %v3061_v16 = vld [vmem:[#allocation2 + $0x78] sm:$0xff] }
 0xcf2   :  { %v3069_v28 = vpack.c.bf16 %v3061_v16, %v3060_v35  ;;  %v6619_v35 = vld [vmem:[#allocation16_spill] sm:$0xff] }
 0xcf4   :  { %4484 = vmatmul.mubr.msk.bf16.gmra.mxu1 %vm493_vm3, %v3069_v28  ;;  %v6620_v28 = vld [vmem:[#allocation15_spill] sm:$0xff] }
 0xd99   :  { %v4473_v43 = vpop.f32.mrf.mxu1 }
 0xd9a   :  { %v3209_v53 = vadd.f32 %v4473_v43, %v6609_v59 }
 0xd9b   :  { %v3144_v4 = vpop.f32.mrf.mxu1 }
 0xd9c   :  { %v3207_v18 = vadd.f32 %v3144_v4, %v6607_v36  ;;  %v3232_v52 = vadd.f32 %v4015_v7, %v3209_v53  ;;  %v6622_v4 = vld [vmem:[#allocation17_spill] sm:$0xff] }
 0xd9d   :  { %v4474_v55 = vpop.f32.mrf.mxu1 }
 0xd9e   :  { %v3210_v37 = vadd.f32 %v4474_v55, %v6608_v17  ;;  %v3230_v62 = vadd.f32 %v4015_v7, %v3207_v18 }
 0xd9f   :  { %v3147_v9 = vpop.f32.mrf.mxu1 }
 0xda0   :  { %v3208_v19 = vadd.f32 %v3147_v9, %v6610_v58  ;;  %v3233_v41 = vadd.f32 %v4015_v7, %v3210_v37  ;;  %v4586_v9 = vld [vmem:[%s6557_s14 + $0x10] sm:$0xff]   ;;  %v4587_v58 = vld [vmem:[%s6557_s14 + $0x8] sm:$0xff]  }
 0xda1   :  { %v4477_v20 = vpop.f32.mrf.mxu1  ;;  %4509 = vmatprep.subr.bf16.mxu1 %v4586_v9 }
 0xda2   :  { %v3231_v54 = vadd.f32 %v4015_v7, %v3208_v19  ;;  %v3247_v1 = vpack.c.bf16 %v3233_v41, %v3232_v52  ;;  %v3213_v34 = vadd.f32 %v4477_v20, %v6613_v50  ;;  %4510 = vmatpush3.bf16.msra.mxu1 %v4586_v9  ;;  %v4589_v19 = vld [vmem:[%s6559_s16 + $0x18] sm:$0xff]  }
 0xda3   :  { %v3160_v3 = vpop.f32.mrf.mxu1  ;;  %4511 = vmatprep.subr.bf16.mxu1 %v4587_v58  ;;  %4531 = vmatprep.subr.bf16.mxu0 %v4589_v19 }
 0xda4   :  { %v3246_v49 = vpack.c.bf16 %v3231_v54, %v3230_v62  ;;  %v3211_v44 = vadd.f32 %v3160_v3, %v6611_v10  ;;  %v3236_v14 = vadd.f32 %v4015_v7, %v3213_v34  ;;  %v4016_v62 = vld [vmem:[%s6560_s13] ss:$0 sm:$0xff] }
 0xda5   :  { %v4478_v51 = vpop.f32.mrf.mxu1 }
 0xda6   :  { %v3214_v31 = vadd.f32 %v4478_v51, %v6612_v15  ;;  %4491 = vmatprep.mubr.msk.bf16.mxu0 %vm493_vm3, %v3246_v49  ;;  %v3234_v63 = vadd.f32 %v4015_v7, %v3211_v44  ;;  %4512 = vmatpush3.bf16.msra.mxu1 %v4587_v58 }
 0xda7   :  { %v3163_v6 = vpop.f32.mrf.mxu1  ;;  %4492 = vmatmul.mubr.msk.bf16.vlgmr.msra.gmra.mxu0 %vm493_vm3, %v3247_v1 }
 0xda8   :  { %v3212_v25 = vadd.f32 %v3163_v6, %v6614_v57  ;;  %v3237_v38 = vadd.f32 %v4015_v7, %v3214_v31  ;;  %4532 = vmatpush3.bf16.msra.mxu0 %v4589_v19 }
 0xdaa   :  { %v4481_v60 = vpop.f32.mrf.mxu1  ;;  %v3235_v0 = vadd.f32 %v4015_v7, %v3212_v25  ;;  %v3249_v26 = vpack.c.bf16 %v3237_v38, %v3236_v14 }
 0xdab   :  { %v3217_v56 = vadd.f32 %v4481_v60, %v6617_v42 }
 0xdac   :  { %v3176_v21 = vpop.f32.mrf.mxu1  ;;  %v3248_v27 = vpack.c.bf16 %v3235_v0, %v3234_v63 }
 0xdad   :  { %v3215_v12 = vadd.f32 %v3176_v21, %v6615_v39  ;;  %v3240_v45 = vadd.f32 %v4015_v7, %v3217_v56 }
 0xdae   :  { %v4482_v23 = vpop.f32.mrf.mxu1  ;;  %4495 = vmatprep.mubr.msk.bf16.mxu0 %vm493_vm3, %v3248_v27 }
 0xdaf   :  { %v3218_v48 = vadd.f32 %v4482_v23, %v6616_v8  ;;  %4496 = vmatmul.mubr.msk.bf16.gmra.mxu0 %vm493_vm3, %v3249_v26  ;;  %v3238_v24 = vadd.f32 %v4015_v7, %v3215_v12 }
 0xdb0   :  { %v3179_v2 = vpop.f32.mrf.mxu1 }
 0xdb1   :  { %v3216_v22 = vadd.f32 %v3179_v2, %v6618_v46  ;;  %v3241_v61 = vadd.f32 %v4015_v7, %v3218_v48 }
 0xdb3   :  { %v3239_v13 = vadd.f32 %v4015_v7, %v3216_v22  ;;  %v3251_v11 = vpack.c.bf16 %v3241_v61, %v3240_v45 }
 0xdb4   :  { %v4485_v40 = vpop.f32.mrf.mxu1 }
 0xdb5   :  { %v3250_v5 = vpack.c.bf16 %v3239_v13, %v3238_v24  ;;  %v3221_v29 = vadd.f32 %v4485_v40, %v6621_v47 }
 0xdb6   :  { %v3192_v33 = vpop.f32.mrf.mxu1 }
 0xdb7   :  { %4499 = vmatprep.mubr.msk.bf16.mxu0 %vm493_vm3, %v3250_v5  ;;  %v3219_v16 = vadd.f32 %v3192_v33, %v6619_v35  ;;  %v3244_v37 = vadd.f32 %v4015_v7, %v3221_v29 }
 0xdb8   :  { %4500 = vmatmul.mubr.msk.bf16.gmra.mxu0 %vm493_vm3, %v3251_v11  ;;  %v4486_v30 = vpop.f32.mrf.mxu1 }
 0xdb9   :  { %v3222_v32 = vadd.f32 %v4486_v30, %v6620_v28  ;;  %v3242_v18 = vadd.f32 %v4015_v7, %v3219_v16 }
 0xdba   :  { %v3195_v43 = vpop.f32.mrf.mxu1 }
 0xdbb   :  { %v3220_v55 = vadd.f32 %v3195_v43, %v6622_v4  ;;  %v3245_v36 = vadd.f32 %v4015_v7, %v3222_v32 }
 0xdbd   :  { %v3243_v17 = vadd.f32 %v4015_v7, %v3220_v55  ;;  %v3253_v53 = vpack.c.bf16 %v3245_v36, %v3244_v37  ;;  %v4588_v7 = vld [vmem:[%s6557_s14] sm:$0xff]   ;;  %v4590_v37 = vld [vmem:[%s6559_s16 + $0x10] sm:$0xff]  }
 0xdbe   :  { %4513 = vmatprep.subr.bf16.mxu1 %v4588_v7  ;;  %4533 = vmatprep.subr.bf16.mxu0 %v4590_v37 }
 0xdbf   :  { %v3252_v59 = vpack.c.bf16 %v3243_v17, %v3242_v18  ;;  %4514 = vmatpush3.bf16.msra.mxu1 %v4588_v7  ;;  %4534 = vmatpush3.bf16.msra.mxu0 %v4590_v37  ;;  %v4027_v7 = vld [vmem:[%s6561_s15] ss:$0 sm:$0xff] }
 0xdc1   :  { %4503 = vmatprep.mubr.msk.bf16.mxu0 %vm493_vm3, %v3252_v59  ;;  %v4591_v59 = vld [vmem:[%s6559_s16 + $0x8] sm:$0xff]  }
 0xdc2   :  { %4504 = vmatmul.mubr.msk.bf16.gmra.mxu0 %vm493_vm3, %v3253_v53  ;;  %4535 = vmatprep.subr.bf16.mxu0 %v4591_v59  ;;  %v4592_v53 = vld [vmem:[%s6559_s16] sm:$0xff]  }
 0xdc3   :  { %4536 = vmatpush3.bf16.msra.mxu0 %v4591_v59 }
 0xdc4   :  { %4537 = vmatprep.subr.bf16.mxu0 %v4592_v53 }
 0xdc7   :  { %4538 = vmatpush3.bf16.msra.mxu0 %v4592_v53 }
 0xe67   :  { %v4493_v41 = vpop.f32.mrf.mxu0 }
 0xe68   :  { %v3344_v49 = vadd.f32 %v4493_v41, %v4016_v62 }
 0xe69   :  { %v3335_v20 = vpop.f32.mrf.mxu0 }
 0xe6a   :  { %v3336_v52 = vadd.f32 %v4016_v62, %v3335_v20  ;;  %v3400_v50 = vmax.f32 %v3344_v49, 0.0 }
 0xe6b   :  { %v4494_v54 = vpop.f32.mrf.mxu0 }
 0xe6c   :  { %v3347_v3 = vadd.f32 %v4494_v54, %v4016_v62  ;;  %v3398_v15 = vmax.f32 %v3336_v52, 0.0 }
 0xe6d   :  { %v3338_v1 = vpop.f32.mrf.mxu0 }
 0xe6e   :  { %v3339_v51 = vadd.f32 %v4016_v62, %v3338_v1  ;;  %v3401_v10 = vmax.f32 %v3347_v3, 0.0 }
 0xe6f   :  { %v4497_v44 = vpop.f32.mrf.mxu0 }
 0xe70   :  { %v3399_v31 = vmax.f32 %v3339_v51, 0.0  ;;  %v3415_v57 = vpack.c.bf16 %v3401_v10, %v3400_v50  ;;  %v3360_v63 = vadd.f32 %v4497_v44, %v4016_v62 }
 0xe71   :  { %v3351_v34 = vpop.f32.mrf.mxu0 }
 0xe72   :  { %v3414_v6 = vpack.c.bf16 %v3399_v31, %v3398_v15  ;;  %v3352_v38 = vadd.f32 %v4016_v62, %v3351_v34  ;;  %v3404_v39 = vmax.f32 %v3360_v63, 0.0 }
 0xe73   :  { %v4498_v25 = vpop.f32.mrf.mxu0 }
 0xe74   :  { %v3363_v60 = vadd.f32 %v4498_v25, %v4016_v62  ;;  %4515 = vmatprep.mubr.msk.bf16.mxu1 %vm3461_vm8, %v3414_v6  ;;  %v3402_v26 = vmax.f32 %v3352_v38, 0.0 }
 0xe75   :  { %v3354_v0 = vpop.f32.mrf.mxu0  ;;  %4516 = vmatmul.mubr.msk.bf16.vlgmr.msra.gmra.mxu1 %vm3461_vm8, %v3415_v57 }
 0xe76   :  { %v3355_v14 = vadd.f32 %v4016_v62, %v3354_v0  ;;  %v3405_v21 = vmax.f32 %v3363_v60, 0.0 }
 0xe78   :  { %v4501_v27 = vpop.f32.mrf.mxu0  ;;  %v3403_v23 = vmax.f32 %v3355_v14, 0.0  ;;  %v3417_v48 = vpack.c.bf16 %v3405_v21, %v3404_v39 }
 0xe79   :  { %v3376_v46 = vadd.f32 %v4501_v27, %v4016_v62 }
 0xe7a   :  { %v3367_v12 = vpop.f32.mrf.mxu0  ;;  %v3416_v8 = vpack.c.bf16 %v3403_v23, %v3402_v26 }
 0xe7b   :  { %v3368_v56 = vadd.f32 %v4016_v62, %v3367_v12  ;;  %v3408_v5 = vmax.f32 %v3376_v46, 0.0 }
 0xe7c   :  { %v4502_v42 = vpop.f32.mrf.mxu0  ;;  %4519 = vmatprep.mubr.msk.bf16.mxu1 %vm3461_vm8, %v3416_v8 }
 0xe7d   :  { %v3379_v2 = vadd.f32 %v4502_v42, %v4016_v62  ;;  %4520 = vmatmul.mubr.msk.bf16.gmra.mxu1 %vm3461_vm8, %v3417_v48  ;;  %v3406_v13 = vmax.f32 %v3368_v56, 0.0 }
 0xe7e   :  { %v3370_v22 = vpop.f32.mrf.mxu0 }
 0xe7f   :  { %v3371_v61 = vadd.f32 %v4016_v62, %v3370_v22  ;;  %v3409_v24 = vmax.f32 %v3379_v2, 0.0 }
 0xe81   :  { %v3407_v45 = vmax.f32 %v3371_v61, 0.0  ;;  %v3419_v33 = vpack.c.bf16 %v3409_v24, %v3408_v5 }
 0xe82   :  { %v4505_v11 = vpop.f32.mrf.mxu0 }
 0xe83   :  { %v3418_v40 = vpack.c.bf16 %v3407_v45, %v3406_v13  ;;  %v3392_v32 = vadd.f32 %v4505_v11, %v4016_v62 }
 0xe84   :  { %v3383_v30 = vpop.f32.mrf.mxu0 }
 0xe85   :  { %4523 = vmatprep.mubr.msk.bf16.mxu1 %vm3461_vm8, %v3418_v40  ;;  %v3384_v16 = vadd.f32 %v4016_v62, %v3383_v30  ;;  %v3412_v36 = vmax.f32 %v3392_v32, 0.0 }
 0xe86   :  { %4524 = vmatmul.mubr.msk.bf16.gmra.mxu1 %vm3461_vm8, %v3419_v33  ;;  %v4506_v35 = vpop.f32.mrf.mxu0 }
 0xe87   :  { %v3395_v28 = vadd.f32 %v4506_v35, %v4016_v62  ;;  %v3410_v4 = vmax.f32 %v3384_v16, 0.0 }
 0xe88   :  { %v3386_v47 = vpop.f32.mrf.mxu0 }
 0xe89   :  { %v3387_v29 = vadd.f32 %v4016_v62, %v3386_v47  ;;  %v3413_v43 = vmax.f32 %v3395_v28, 0.0 }
 0xe8b   :  { %v3411_v55 = vmax.f32 %v3387_v29, 0.0  ;;  %v3421_v17 = vpack.c.bf16 %v3413_v43, %v3412_v36 }
 0xe8d   :  { %v3420_v18 = vpack.c.bf16 %v3411_v55, %v3410_v4  ;;  %v6380_v55 = vld [vmem:[%s6562_s17] ss:$0 sm:$0xff] }
 0xe8f   :  { %4527 = vmatprep.mubr.msk.bf16.mxu1 %vm3461_vm8, %v3420_v18 }
 0xe90   :  { %4528 = vmatmul.mubr.msk.bf16.gmra.mxu1 %vm3461_vm8, %v3421_v17 }
 0xf35   :  { %v4517_v9 = vpop.f32.mrf.mxu1 }
 0xf36   :  { %v3529_v62 = vadd.f32 %v4517_v9, %v4027_v7 }
 0xf37   :  { %v3520_v58 = vpop.f32.mrf.mxu1 }
 0xf38   :  { %v3521_v41 = vadd.f32 %v4027_v7, %v3520_v58  ;;  %v3585_v10 = vmax.f32 %v3529_v62, 0.0 }
 0xf39   :  { %v4518_v19 = vpop.f32.mrf.mxu1 }
 0xf3a   :  { %v3532_v20 = vadd.f32 %v4518_v19, %v4027_v7  ;;  %v3583_v1 = vmax.f32 %v3521_v41, 0.0 }
 0xf3b   :  { %v3523_v54 = vpop.f32.mrf.mxu1 }
 0xf3c   :  { %v3524_v52 = vadd.f32 %v4027_v7, %v3523_v54  ;;  %v3586_v3 = vmax.f32 %v3532_v20, 0.0 }
 0xf3d   :  { %v4521_v49 = vpop.f32.mrf.mxu1 }
 0xf3e   :  { %v3584_v51 = vmax.f32 %v3524_v52, 0.0  ;;  %v3600_v31 = vpack.c.bf16 %v3586_v3, %v3585_v10  ;;  %v3545_v57 = vadd.f32 %v4521_v49, %v4027_v7 }
 0xf3f   :  { %v3536_v44 = vpop.f32.mrf.mxu1 }
 0xf40   :  { %v3599_v15 = vpack.c.bf16 %v3584_v51, %v3583_v1  ;;  %v3537_v34 = vadd.f32 %v4027_v7, %v3536_v44  ;;  %v3589_v21 = vmax.f32 %v3545_v57, 0.0 }
 0xf41   :  { %v4522_v50 = vpop.f32.mrf.mxu1 }
 0xf42   :  { %v3548_v6 = vadd.f32 %v4522_v50, %v4027_v7  ;;  %4539 = vmatprep.mubr.msk.bf16.mxu0 %vm3461_vm8, %v3599_v15  ;;  %v3587_v0 = vmax.f32 %v3537_v34, 0.0 }
 0xf43   :  { %v3539_v25 = vpop.f32.mrf.mxu1  ;;  %4540 = vmatmul.mubr.msk.bf16.vlgmr.msra.gmra.mxu0 %vm3461_vm8, %v3600_v31 }
 0xf44   :  { %v3540_v38 = vadd.f32 %v4027_v7, %v3539_v25  ;;  %v3590_v60 = vmax.f32 %v3548_v6, 0.0 }
 0xf46   :  { %v4525_v63 = vpop.f32.mrf.mxu1  ;;  %v3588_v14 = vmax.f32 %v3540_v38, 0.0  ;;  %v3602_v23 = vpack.c.bf16 %v3590_v60, %v3589_v21 }
 0xf47   :  { %v3561_v48 = vadd.f32 %v4525_v63, %v4027_v7 }
 0xf48   :  { %v3552_v27 = vpop.f32.mrf.mxu1  ;;  %v3601_v26 = vpack.c.bf16 %v3588_v14, %v3587_v0 }
 0xf49   :  { %v3553_v12 = vadd.f32 %v4027_v7, %v3552_v27  ;;  %v3593_v61 = vmax.f32 %v3561_v48, 0.0 }
 0xf4a   :  { %v4526_v39 = vpop.f32.mrf.mxu1  ;;  %4543 = vmatprep.mubr.msk.bf16.mxu0 %vm3461_vm8, %v3601_v26 }
 0xf4b   :  { %v3564_v8 = vadd.f32 %v4526_v39, %v4027_v7  ;;  %4544 = vmatmul.mubr.msk.bf16.gmra.mxu0 %vm3461_vm8, %v3602_v23  ;;  %v3591_v46 = vmax.f32 %v3553_v12, 0.0 }
 0xf4c   :  { %v3555_v42 = vpop.f32.mrf.mxu1 }
 0xf4d   :  { %v3556_v56 = vadd.f32 %v4027_v7, %v3555_v42  ;;  %v3594_v2 = vmax.f32 %v3564_v8, 0.0 }
 0xf4f   :  { %v3592_v22 = vmax.f32 %v3556_v56, 0.0  ;;  %v3604_v45 = vpack.c.bf16 %v3594_v2, %v3593_v61  ;;  %v3767_v56 = vlaneseq }
 0xf50   :  { %v4529_v13 = vpop.f32.mrf.mxu1 }
 0xf51   :  { %v3603_v24 = vpack.c.bf16 %v3592_v22, %v3591_v46  ;;  %v3577_v30 = vadd.f32 %v4529_v13, %v4027_v7 }
 0xf52   :  { %v3568_v5 = vpop.f32.mrf.mxu1 }
 0xf53   :  { %4547 = vmatprep.mubr.msk.bf16.mxu0 %vm3461_vm8, %v3603_v24  ;;  %v3569_v11 = vadd.f32 %v4027_v7, %v3568_v5  ;;  %v3597_v29 = vmax.f32 %v3577_v30, 0.0 }
 0xf54   :  { %4548 = vmatmul.mubr.msk.bf16.gmra.mxu0 %vm3461_vm8, %v3604_v45  ;;  %v4530_v40 = vpop.f32.mrf.mxu1  ;;  %v6430_v45 = vand.u32 127, %v3767_v56 }
 0xf55   :  { %v3580_v33 = vadd.f32 %v4530_v40, %v4027_v7  ;;  %v3595_v32 = vmax.f32 %v3569_v11, 0.0 }
 0xf56   :  { %v3571_v35 = vpop.f32.mrf.mxu1  ;;  %vm3769_vm9 = vcmp.lt.s32.totalorder %v6430_v45, 2 }
 0xf57   :  { %v3572_v16 = vadd.f32 %v4027_v7, %v3571_v35  ;;  %v3598_v28 = vmax.f32 %v3580_v33, 0.0 }
 0xf59   :  { %v3596_v47 = vmax.f32 %v3572_v16, 0.0  ;;  %v3606_v4 = vpack.c.bf16 %v3598_v28, %v3597_v29 }
 0xf5b   :  { %v3605_v43 = vpack.c.bf16 %v3596_v47, %v3595_v32 }
 0xf5d   :  { %4551 = vmatprep.mubr.msk.bf16.mxu0 %vm3461_vm8, %v3605_v43 }
 0xf5e   :  { %4552 = vmatmul.mubr.msk.bf16.gmra.mxu0 %vm3461_vm8, %v3606_v4 }
0x1003   :  { %v4541_v36 = vpop.f32.mrf.mxu0 }
0x1004   :  { %v6383_v18 = vadd.f32 %v4541_v36, %v6380_v55 }
0x1005   :  { %v3704_v17 = vpop.f32.mrf.mxu0 }
0x1006   :  { %v4055_v37 = vmul.f32 -1.442695, %v6383_v18  ;;  %v6387_v59 = vadd.f32 %v6380_v55, %v3704_v17 }
0x1007   :  { %v4542_v53 = vpop.f32.mrf.mxu0 }
0x1008   :  { %4849 = vpow2.f32 %v4055_v37  ;;  %v4053_v9 = vmul.f32 -1.442695, %v6387_v59  ;;  %v6391_v58 = vadd.f32 %v4542_v53, %v6380_v55 }
0x1009   :  { %v3707_v7 = vpop.f32.mrf.mxu0 }
0x100a   :  { %4851 = vpow2.f32 %v4053_v9  ;;  %v4056_v19 = vmul.f32 -1.442695, %v6391_v58  ;;  %v6395_v41 = vadd.f32 %v6380_v55, %v3707_v7 }
0x100b   :  { %v4545_v20 = vpop.f32.mrf.mxu0 }
0x100c   :  { %4853 = vpow2.f32 %v4056_v19  ;;  %v4054_v62 = vmul.f32 -1.442695, %v6395_v41  ;;  %v6399_v54 = vadd.f32 %v4545_v20, %v6380_v55 }
0x100d   :  { %v3720_v52 = vpop.f32.mrf.mxu0 }
0x100e   :  { %4855 = vpow2.f32 %v4054_v62  ;;  %v4059_v3 = vmul.f32 -1.442695, %v6399_v54  ;;  %v6403_v49 = vadd.f32 %v6380_v55, %v3720_v52 }
0x100f   :  { %v4546_v1 = vpop.f32.mrf.mxu0 }
0x1010   :  { %4857 = vpow2.f32 %v4059_v3  ;;  %v4057_v51 = vmul.f32 -1.442695, %v6403_v49  ;;  %v6407_v10 = vadd.f32 %v4546_v1, %v6380_v55 }
0x1011   :  { %v3723_v44 = vpop.f32.mrf.mxu0 }
0x1012   :  { %4859 = vpow2.f32 %v4057_v51  ;;  %v4060_v15 = vmul.f32 -1.442695, %v6407_v10  ;;  %v6411_v31 = vadd.f32 %v6380_v55, %v3723_v44 }
0x1014   :  { %v4549_v50 = vpop.f32.mrf.mxu0  ;;  %4861 = vpow2.f32 %v4060_v15  ;;  %v4058_v34 = vmul.f32 -1.442695, %v6411_v31 }
0x1015   :  { %v6415_v6 = vadd.f32 %v4549_v50, %v6380_v55  ;;  %v4850_v57 = vpop.eup %4849 }
0x1016   :  { %v3736_v25 = vpop.f32.mrf.mxu0  ;;  %v3820_v38 = vadd.f32 1.0, %v4850_v57  ;;  %4863 = vpow2.f32 %v4058_v34 }
0x1017   :  { %v4063_v60 = vmul.f32 -1.442695, %v6415_v6  ;;  %v6419_v63 = vadd.f32 %v6380_v55, %v3736_v25  ;;  %v4852_v0 = vpop.eup %4851 }
0x1018   :  { %v4550_v14 = vpop.f32.mrf.mxu0  ;;  %4865 = vrcp.f32 %v3820_v38  ;;  %v3818_v21 = vadd.f32 1.0, %v4852_v0 }
0x1019   :  { %v4061_v27 = vmul.f32 -1.442695, %v6419_v63  ;;  %v6423_v26 = vadd.f32 %v4550_v14, %v6380_v55  ;;  %v4854_v23 = vpop.eup %4853  ;;  %4867 = vpow2.f32 %v4063_v60 }
0x101a   :  { %v3739_v39 = vpop.f32.mrf.mxu0  ;;  %4869 = vrcp.f32 %v3818_v21  ;;  %v3821_v12 = vadd.f32 1.0, %v4854_v23 }
0x101b   :  { %v4064_v8 = vmul.f32 -1.442695, %v6423_v26  ;;  %v6427_v48 = vadd.f32 %v6380_v55, %v3739_v39  ;;  %v4856_v42 = vpop.eup %4855  ;;  %4871 = vpow2.f32 %v4061_v27 }
0x101c   :  { %4873 = vrcp.f32 %v3821_v12  ;;  %v3819_v2 = vadd.f32 1.0, %v4856_v42 }
0x101d   :  { %v4062_v46 = vmul.f32 -1.442695, %v6427_v48  ;;  %v4858_v22 = vpop.eup %4857  ;;  %4875 = vpow2.f32 %v4064_v8 }
0x101e   :  { %4877 = vrcp.f32 %v3819_v2  ;;  %v3824_v61 = vadd.f32 1.0, %v4858_v22  ;;  %v4553_v24 = vpop.f32.mrf.mxu0 }
0x101f   :  { %v4860_v13 = vpop.eup %4859  ;;  %4879 = vpow2.f32 %v4062_v46  ;;  %v6433_v5 = vadd.f32 %v4553_v24, %v6380_v55 }
0x1020   :  { %4881 = vrcp.f32 %v3824_v61  ;;  %v3822_v40 = vadd.f32 1.0, %v4860_v13  ;;  %v3752_v11 = vpop.f32.mrf.mxu0 }
0x1021   :  { %v4862_v33 = vpop.eup %4861  ;;  %v4067_v30 = vmul.f32 -1.442695, %v6433_v5  ;;  %v6437_v35 = vadd.f32 %v6380_v55, %v3752_v11 }
0x1022   :  { %4883 = vrcp.f32 %v3822_v40  ;;  %v3825_v16 = vadd.f32 1.0, %v4862_v33  ;;  %v4554_v28 = vpop.f32.mrf.mxu0 }
0x1023   :  { %v4864_v32 = vpop.eup %4863  ;;  %4885 = vpow2.f32 %v4067_v30  ;;  %v4065_v47 = vmul.f32 -1.442695, %v6437_v35  ;;  %v6442_v29 = vadd.f32 %v4554_v28, %v6380_v55 }
0x1024   :  { %4887 = vrcp.f32 %v3825_v16  ;;  %v3823_v43 = vadd.f32 1.0, %v4864_v32  ;;  %v3755_v4 = vpop.f32.mrf.mxu0 }
0x1025   :  { %v4866_v36 = vpop.eup %4865  ;;  %4889 = vpow2.f32 %v4065_v47  ;;  %v4068_v17 = vmul.f32 -1.442695, %v6442_v29  ;;  %v6446_v37 = vadd.f32 %v6380_v55, %v3755_v4 }
0x1026   :  { %v4868_v53 = vpop.eup %4867  ;;  %v3868_v9 = vsel %vm3769_vm9, %v6383_v18, %v4866_v36  ;;  %4891 = vrcp.f32 %v3823_v43 }
0x1027   :  { %v4870_v7 = vpop.eup %4869  ;;  %3884 = vst [vmem:[%s6563_s18 + $0x10] sm:$0xff] %v3868_v9  ;;  %v3828_v19 = vadd.f32 1.0, %v4868_v53  ;;  %4893 = vpow2.f32 %v4068_v17  ;;  %v4066_v20 = vmul.f32 -1.442695, %v6446_v37 }
0x1028   :  { %v4872_v62 = vpop.eup %4871  ;;  %v3866_v55 = vsel %vm3769_vm9, %v6387_v59, %v4870_v7 }
0x1029   :  { %v4874_v52 = vpop.eup %4873  ;;  %3882 = vst [vmem:[%s6563_s18] sm:$0xff] %v3866_v55  ;;  %4895 = vrcp.f32 %v3828_v19  ;;  %v3826_v18 = vadd.f32 1.0, %v4872_v62 }
0x102a   :  { %v4876_v3 = vpop.eup %4875  ;;  %v3869_v1 = vsel %vm3769_vm9, %v6391_v58, %v4874_v52  ;;  %4897 = vpow2.f32 %v4066_v20 }
0x102b   :  { %v4878_v51 = vpop.eup %4877  ;;  %3885 = vst [vmem:[%s6563_s18 + $0x18] sm:$0xff] %v3869_v1  ;;  %4899 = vrcp.f32 %v3826_v18  ;;  %v3829_v59 = vadd.f32 1.0, %v4876_v3 }
0x102c   :  { %v4880_v44 = vpop.eup %4879  ;;  %v3867_v15 = vsel %vm3769_vm9, %v6395_v41, %v4878_v51 }
0x102d   :  { %v4882_v50 = vpop.eup %4881  ;;  %3883 = vst [vmem:[%s6563_s18 + $0x8] sm:$0xff] %v3867_v15  ;;  %4901 = vrcp.f32 %v3829_v59  ;;  %v3827_v58 = vadd.f32 1.0, %v4880_v44 }
0x102e   :  { %v3872_v34 = vsel %vm3769_vm9, %v6399_v54, %v4882_v50 }
0x102f   :  { %v4884_v57 = vpop.eup %4883  ;;  %3888 = vst [vmem:[%s6563_s18 + $0x30] sm:$0xff] %v3872_v34  ;;  %4903 = vrcp.f32 %v3827_v58 }
0x1030   :  { %v4886_v25 = vpop.eup %4885  ;;  %v3870_v41 = vsel %vm3769_vm9, %v6403_v49, %v4884_v57 }
0x1031   :  { %v4888_v38 = vpop.eup %4887  ;;  %3886 = vst [vmem:[%s6563_s18 + $0x20] sm:$0xff] %v3870_v41  ;;  %v3832_v60 = vadd.f32 1.0, %v4886_v25 }
0x1032   :  { %v4890_v0 = vpop.eup %4889  ;;  %v3873_v54 = vsel %vm3769_vm9, %v6407_v10, %v4888_v38 }
0x1033   :  { %v4892_v14 = vpop.eup %4891  ;;  %3889 = vst [vmem:[%s6563_s18 + $0x38] sm:$0xff] %v3873_v54  ;;  %4905 = vrcp.f32 %v3832_v60  ;;  %v3830_v21 = vadd.f32 1.0, %v4890_v0 }
0x1034   :  { %v4894_v27 = vpop.eup %4893  ;;  %v3871_v49 = vsel %vm3769_vm9, %v6411_v31, %v4892_v14 }
0x1035   :  { %3887 = vst [vmem:[%s6563_s18 + $0x28] sm:$0xff] %v3871_v49  ;;  %4907 = vrcp.f32 %v3830_v21  ;;  %v3833_v23 = vadd.f32 1.0, %v4894_v27 }
0x1036   :  { %v4896_v39 = vpop.eup %4895 }
0x1037   :  { %v4898_v10 = vpop.eup %4897  ;;  %v3876_v12 = vsel %vm3769_vm9, %v6415_v6, %v4896_v39  ;;  %4909 = vrcp.f32 %v3833_v23 }
0x1038   :  { %v4900_v8 = vpop.eup %4899  ;;  %3892 = vst [vmem:[%s6563_s18 + $0x50] sm:$0xff] %v3876_v12  ;;  %v3831_v42 = vadd.f32 1.0, %v4898_v10 }
0x1039   :  { %v3874_v31 = vsel %vm3769_vm9, %v6419_v63, %v4900_v8 }
0x103a   :  { %v4902_v56 = vpop.eup %4901  ;;  %3890 = vst [vmem:[%s6563_s18 + $0x40] sm:$0xff] %v3874_v31  ;;  %4911 = vrcp.f32 %v3831_v42 }
0x103b   :  { %v3877_v6 = vsel %vm3769_vm9, %v6423_v26, %v4902_v56 }
0x103c   :  { %v4904_v2 = vpop.eup %4903  ;;  %3893 = vst [vmem:[%s6563_s18 + $0x58] sm:$0xff] %v3877_v6 }
0x103d   :  { %v3875_v46 = vsel %vm3769_vm9, %v6427_v48, %v4904_v2 }
0x103e   :  { %3891 = vst [vmem:[%s6563_s18 + $0x48] sm:$0xff] %v3875_v46 }
0x1040   :  { %v4906_v63 = vpop.eup %4905 }
0x1041   :  { %v3880_v22 = vsel %vm3769_vm9, %v6433_v5, %v4906_v63 }
0x1042   :  { %v4908_v61 = vpop.eup %4907  ;;  %3896 = vst [vmem:[%s6563_s18 + $0x70] sm:$0xff] %v3880_v22 }
0x1043   :  { %v3878_v26 = vsel %vm3769_vm9, %v6437_v35, %v4908_v61 }
0x1044   :  { %v4910_v24 = vpop.eup %4909  ;;  %3894 = vst [vmem:[%s6563_s18 + $0x60] sm:$0xff] %v3878_v26 }
0x1045   :  { %v3881_v48 = vsel %vm3769_vm9, %v6442_v29, %v4910_v24 }
0x1046   :  { %3897 = vst [vmem:[%s6563_s18 + $0x78] sm:$0xff] %v3881_v48 }
0x1047   :  { %v4912_v13 = vpop.eup %4911 }
0x1048   :  { %v3879_v5 = vsel %vm3769_vm9, %v6446_v37, %v4912_v13 }
0x1049   :  { %3895 = vst [vmem:[%s6563_s18 + $0x68] sm:$0xff] %v3879_v5 }

</bundles_post_ra>
